<compile_context>
chip_gen: v5e
topology: v5e:2x2
jax: 0.10.0
libtpu: 0.0.40
codegen_flags: <defaults>
</compile_context>

<pallas_src>
import functools

import jax
import jax.numpy as jnp
from jax.experimental import pallas as pl
from jax.experimental.pallas import tpu as pltpu

BN_EPS = 1e-5


# ----------------------------------------------------------------------------
# Pallas kernel: full Classifier forward for NB lane-packed batch elements.
# ----------------------------------------------------------------------------
def _classifier_kernel(p_ref, x_ref, awt_ref, ah_ref, o_ref, *,
                       C, H, W, NB, num_conv, off):
    """
    p_ref  : (P,)                  SMEM  folded conv / fuse scalars
    x_ref  : (1, C, H, NB*W)       VMEM  NB images packed along lanes
    awt_ref: (NB*W, NB*Wo)  bf16   VMEM  block-diag column interp matrix (transposed)
    ah_ref : (Ho, H)        bf16   VMEM  row interpolation matrix (align_corners)
    o_ref  : (1, Ho, NB*Wo)        VMEM  lane-dense packed output slab
    """
    Wp = NB * W

    # ---- hoisted boundary masks (built once; 2 iotas + 4 compares total) ----
    hidx = jax.lax.broadcasted_iota(jnp.int32, (H, Wp), 0)
    widx = jax.lax.broadcasted_iota(jnp.int32, (H, Wp), 1) % W
    mask_h_hi = hidx < (H - 1)   # valid for di = +1 (reads row h+1)
    mask_h_lo = hidx >= 1        # valid for di = -1 (reads row h-1)
    mask_w_hi = widx < (W - 1)   # valid for dj = +1 (per-image right edge)
    mask_w_lo = widx >= 1        # valid for dj = -1 (per-image left edge)

    def row_taps(t):
        # out_di[h, w] = t[h+di, w], zero outside image rows (conv padding=1)
        rp = jnp.where(mask_h_hi, pltpu.roll(t, H - 1, axis=0), 0.0)  # di=+1
        rm = jnp.where(mask_h_lo, pltpu.roll(t, 1, axis=0), 0.0)      # di=-1
        return {-1: rm, 0: t, 1: rp}

    def col_taps(r):
        # out_dj[h, w] = r[h, w+dj], zero outside each packed image's columns
        cp = jnp.where(mask_w_hi, pltpu.roll(r, Wp - 1, axis=1), 0.0)  # dj=+1
        cm = jnp.where(mask_w_lo, pltpu.roll(r, 1, axis=1), 0.0)       # dj=-1
        return {-1: cm, 0: r, 1: cp}

    def leaky(t):
        # LeakyReLU(0.2): mul+max instead of cmp+mul+select
        return jnp.maximum(t, 0.2 * t)

    def conv3x3_folded(chans, w_off, b_off):
        # dsconv folded host-side into a single full 3x3 conv + bias + leaky.
        taps = []
        for i in range(C):
            rt = row_taps(chans[i])
            taps.append({di: col_taps(rt[di]) for di in (-1, 0, 1)})
        out = []
        for o in range(C):
            acc = None
            for i in range(C):
                for ki in range(3):          # di = ki - 1
                    for kj in range(3):      # dj = kj - 1
                        wv = p_ref[w_off + ((o * C + i) * 3 + ki) * 3 + kj]
                        term = wv * taps[i][ki - 1][kj - 1]
                        acc = term if acc is None else acc + term
            out.append(leaky(acc + p_ref[b_off + o]))
        return out

    def conv_block(chans):
        y = conv3x3_folded(chans, off['conv1_w'], off['conv1_b'])
        y = conv3x3_folded(y, off['conv2_w'], off['conv2_b'])
        # Dropout2d(p=0.2) is identity in eval mode.
        acc = None
        for c in range(C):
            term = p_ref[off['w_out'] + c] * y[c]
            acc = term if acc is None else acc + term
        return acc + p_ref[off['b_out']]

    chans = [x_ref[0, c] for c in range(C)]
    # fused = conv_fuse(cat(results)) computed on the fly as a weighted sum;
    # initialize from the first block's result (no extra zero-broadcast).
    fused = None
    for k in range(num_conv):
        res = conv_block(chans)               # (H, Wp) single channel (packed)
        term = p_ref[off['w_fuse'] + k] * res
        fused = term if fused is None else fused + term
        chans = [res]                         # x = conv(x): chain shared block
    fused = fused + p_ref[off['b_fuse']]

    # Bilinear upsample, align_corners=True, as two lane-dense bf16 MXU matmuls.
    # Column interp first (cheaper contraction order), then row interp.
    fb = fused.astype(jnp.bfloat16)
    tmp = jnp.dot(fb, awt_ref[...], preferred_element_type=jnp.float32)   # (H, NB*Wo)
    up = jnp.dot(ah_ref[...], tmp.astype(jnp.bfloat16),
                 preferred_element_type=jnp.float32)                       # (Ho, NB*Wo)
    o_ref[0] = up.astype(o_ref.dtype)


# ----------------------------------------------------------------------------
# Parameter setup / flattening (plain-JAX glue)
# ----------------------------------------------------------------------------
def init_params(key, in_channels, channels, num_conv):
    C = channels
    keys = jax.random.split(key, 12)

    def nrm(k, shape, s=0.5):
        return jax.random.normal(k, shape, jnp.float32) * s

    def bn_init(k):
        k1, k2, k3, k4 = jax.random.split(k, 4)
        return dict(gamma=jax.random.uniform(k1, (C,), jnp.float32, 0.5, 1.5),
                    beta=nrm(k2, (C,), 0.1),
                    mean=nrm(k3, (C,), 0.1),
                    var=jax.random.uniform(k4, (C,), jnp.float32, 0.5, 1.5))

    return dict(
        dw1=nrm(keys[0], (C, in_channels // C, 3, 3)),
        bn1=bn_init(keys[1]),
        pw1=nrm(keys[2], (C, C, 1, 1)),
        bn2=bn_init(keys[3]),
        dw2=nrm(keys[4], (C, 1, 3, 3)),
        bn3=bn_init(keys[5]),
        pw2=nrm(keys[6], (C, C, 1, 1)),
        bn4=bn_init(keys[7]),
        w_out=nrm(keys[8], (1, C, 1, 1)),
        b_out=nrm(keys[9], (1,), 0.1),
        w_fuse=nrm(keys[10], (1, num_conv, 1, 1)),
        b_fuse=nrm(keys[11], (1,), 0.1),
    )


def _fold_bn(bn):
    scale = bn['gamma'] / jnp.sqrt(bn['var'] + BN_EPS)
    shift = bn['beta'] - bn['mean'] * scale
    return scale, shift


def build_flat_params(params, C, num_conv):
    """Fold each dsconv (dw3x3 -> BN -> pw1x1 -> BN) into one full 3x3 conv + bias."""
    s1, b1 = _fold_bn(params['bn1'])
    s2, b2 = _fold_bn(params['bn2'])
    s3, b3 = _fold_bn(params['bn3'])
    s4, b4 = _fold_bn(params['bn4'])

    dw1 = params['dw1'].reshape(C, 3, 3)   # depthwise (C, 1, 3, 3)
    pw1 = params['pw1'].reshape(C, C)
    dw2 = params['dw2'].reshape(C, 3, 3)
    pw2 = params['pw2'].reshape(C, C)

    def fold_dsconv(dw, s_pre, b_pre, pw, s_post, b_post):
        # y = s_post * (pw @ (s_pre * dwconv(x) + b_pre)) + b_post
        #   = conv3x3_full(x, w_eff) + b_eff
        w_eff = (s_post[:, None, None, None] * pw[:, :, None, None]
                 * s_pre[None, :, None, None] * dw[None, :, :, :])     # (C,C,3,3)
        b_eff = s_post * (pw @ b_pre) + b_post                         # (C,)
        return w_eff.reshape(-1), b_eff

    w1, bb1 = fold_dsconv(dw1, s1, b1, pw1, s2, b2)
    w2, bb2 = fold_dsconv(dw2, s3, b3, pw2, s4, b4)

    pieces = [w1, bb1, w2, bb2,
              params['w_out'].reshape(-1), params['b_out'].reshape(-1),
              params['w_fuse'].reshape(-1), params['b_fuse'].reshape(-1)]
    flat = jnp.concatenate(pieces).astype(jnp.float32)

    off, o = {}, 0
    def take(name, n):
        nonlocal o
        off[name] = o
        o += n
    take('conv1_w', C * C * 9); take('conv1_b', C)
    take('conv2_w', C * C * 9); take('conv2_b', C)
    take('w_out', C); take('b_out', 1)
    take('w_fuse', num_conv); take('b_fuse', 1)
    assert o == flat.shape[0]
    return flat, off


def interp_matrix(n_in, n_out):
    # Sparse (two-tap) bilinear interpolation matrix, align_corners=True.
    i = jnp.arange(n_out, dtype=jnp.float32)
    src = i * (n_in - 1) / (n_out - 1) if n_out > 1 else jnp.zeros((1,), jnp.float32)
    i0 = jnp.clip(jnp.floor(src).astype(jnp.int32), 0, max(n_in - 2, 0))
    frac = src - i0.astype(jnp.float32)
    rows = jnp.arange(n_out)
    m = jnp.zeros((n_out, n_in), jnp.float32)
    m = m.at[rows, i0].add(1.0 - frac)
    m = m.at[rows, jnp.minimum(i0 + 1, n_in - 1)].add(frac)
    return m


def _default_grid_steps():
    # v7x has 2 TensorCores/chip: keep a 2-step "parallel" grid so both cores
    # get work.  Single-TC chips (v5e/v6e) get one merged step (less per-step
    # overhead, bigger per-instruction vreg utilization).
    try:
        kind = jax.devices()[0].device_kind.lower()
    except Exception:
        return 1
    return 2 if "v7" in kind else 1


# ----------------------------------------------------------------------------
# Pallas wrapper
# ----------------------------------------------------------------------------
def classifier_forward_pallas(x, flat_params, off, *, channels, num_conv,
                              scale_factor, grid_steps=None):
    N, Cin, H, W = x.shape
    C = channels
    assert Cin == C, "grouped 3x3 conv (groups=channels) needs in_channels==channels"
    if num_conv > 1:
        assert C == 1, "chained shared conv block requires channels == 1"
    Ho, Wo = H * scale_factor, W * scale_factor

    # Pack NB images along the lane (W) axis so each grid step works on one
    # lane-dense slab; grid length G is the number of TensorCores we want busy.
    if grid_steps is None:
        grid_steps = _default_grid_steps()
    G = max(1, min(int(grid_steps), N))
    NB = -(-N // G)
    Np = G * NB
    if Np != N:
        x = jnp.concatenate(
            [x, jnp.zeros((Np - N, Cin, H, W), x.dtype)], axis=0)

    # (Np, C, H, W) -> (G, C, H, NB*W): image b of group g occupies lanes
    # [b*W, (b+1)*W).
    xp = (x.reshape(G, NB, Cin, H, W)
           .transpose(0, 2, 3, 1, 4)
           .reshape(G, Cin, H, NB * W))

    # bf16 interp matrices (single-pass MXU, half the constant DMA / VMEM).
    A_h = interp_matrix(H, Ho).astype(jnp.bfloat16)                       # (Ho, H)
    A_w = interp_matrix(W, Wo)                                            # (Wo, W)
    # Block-diagonal column-interp matrix (transposed) for the packed layout.
    A_wT_packed = jnp.kron(jnp.eye(NB, dtype=jnp.float32),
                           A_w.T).astype(jnp.bfloat16)                    # (NB*W, NB*Wo)

    kernel = functools.partial(_classifier_kernel, C=C, H=H, W=W, NB=NB,
                               num_conv=num_conv, off=off)

    out = pl.pallas_call(
        kernel,
        out_shape=jax.ShapeDtypeStruct((G, Ho, NB * Wo), jnp.float32),
        grid_spec=pltpu.PrefetchScalarGridSpec(
            num_scalar_prefetch=1,      # flat_params -> SMEM
            grid=(G,),
            in_specs=[
                pl.BlockSpec((1, Cin, H, NB * W), lambda g, p: (g, 0, 0, 0)),
                pl.BlockSpec((NB * W, NB * Wo), lambda g, p: (0, 0)),
                pl.BlockSpec((Ho, H), lambda g, p: (0, 0)),
            ],
            out_specs=pl.BlockSpec((1, Ho, NB * Wo), lambda g, p: (g, 0, 0)),
        ),
        compiler_params=pltpu.CompilerParams(
            dimension_semantics=("parallel",)),
    )(flat_params, xp, A_wT_packed, A_h)

    # Unpack: (G, Ho, NB*Wo) -> (N, 1, Ho, Wo)
    out = (out.reshape(G, Ho, NB, Wo)
              .transpose(0, 2, 1, 3)
              .reshape(Np, 1, Ho, Wo))
    return out[:N]


# ----------------------------------------------------------------------------
# Plain-JAX reference (for verification only)
# ----------------------------------------------------------------------------
def _conv2d(x, w, b=None, groups=1, padding=0):
    out = jax.lax.conv_general_dilated(
        x, w, (1, 1), [(padding, padding), (padding, padding)],
        dimension_numbers=('NCHW', 'OIHW', 'NCHW'),
        feature_group_count=groups,
        precision=jax.lax.Precision.HIGHEST)
    if b is not None:
        out = out + b.reshape(1, -1, 1, 1)
    return out


def _bn_eval(x, bn):
    scale, shift = _fold_bn(bn)
    return x * scale.reshape(1, -1, 1, 1) + shift.reshape(1, -1, 1, 1)


def classifier_forward_ref(x, params, *, channels, num_conv, scale_factor):
    C = channels

    def dsconv(t, dw, bn_a, pw, bn_b):
        t = _conv2d(t, dw, groups=C, padding=1)
        t = _bn_eval(t, bn_a)
        t = _conv2d(t, pw)
        t = _bn_eval(t, bn_b)
        return jnp.where(t >= 0, t, 0.2 * t)

    def conv_block(t):
        t = dsconv(t, params['dw1'], params['bn1'], params['pw1'], params['bn2'])
        t = dsconv(t, params['dw2'], params['bn3'], params['pw2'], params['bn4'])
        return _conv2d(t, params['w_out'], params['b_out'])   # Dropout2d eval = id

    res, t = [], x
    for _ in range(num_conv):
        t = conv_block(t)
        res.append(t)
    r = jnp.concatenate(res, axis=1)
    r = _conv2d(r, params['w_fuse'], params['b_fuse'])
    _, _, H, W = x.shape
    A_h = interp_matrix(H, H * scale_factor)
    A_w = interp_matrix(W, W * scale_factor)
    return jnp.einsum('ph,nchw,qw->ncpq', A_h, r, A_w, precision='highest')


# ----------------------------------------------------------------------------
if __name__ == "__main__":
    key = jax.random.PRNGKey(0)
    k_x, k_p = jax.random.split(key)

    # in_channels == channels == 1 is the only configuration for which the
    # PyTorch forward (shared conv block chained onto its own 1-channel output,
    # grouped conv with groups=channels) actually runs.
    # N=16 with W=16 packs to a 256-lane slab (1 grid step on v5e/v6e) or two
    # 128-lane slabs (2 parallel steps on dual-TC v7x).
    N, Cin, C, H, W = 16, 1, 1, 16, 16
    num_conv, scale_factor = 3, 4

    x = jax.random.normal(k_x, (N, Cin, H, W), jnp.float32)
    params = init_params(k_p, Cin, C, num_conv)
    flat, off = build_flat_params(params, C, num_conv)

    out = classifier_forward_pallas(x, flat, off, channels=C,
                                    num_conv=num_conv, scale_factor=scale_factor)
    out = jax.block_until_ready(out)

    ref = jax.block_until_ready(
        classifier_forward_ref(x, params, channels=C, num_conv=num_conv,
                               scale_factor=scale_factor))

    assert out.shape == (N, 1, H * scale_factor, W * scale_factor)
    # Tolerance accounts for the bf16 inputs to the (f32-accumulated) upsample
    # matmuls; genuine kernel bugs produce O(0.1+) errors.
    err = float(jnp.max(jnp.abs(out - ref)))
    assert err < 5e-2, err
    print("KERNEL_OK")
</pallas_src>

<mosaic_0001>
module attributes {stable_mosaic.version = 11 : i64} {
  func.func @_classifier_kernel(%arg0: i32, %arg1: memref<26xf32, #tpu.memory_space<smem>>, %arg2: memref<1x1x16x256xf32, #tpu.memory_space<vmem>>, %arg3: memref<256x1024xbf16, #tpu.memory_space<vmem>>, %arg4: memref<64x16xbf16, #tpu.memory_space<vmem>>, %arg5: memref<1x64x1024xf32, #tpu.memory_space<vmem>>) attributes {dimension_semantics = [#tpu.dimension_semantics<parallel>], iteration_bounds = array<i64: 1>, scalar_prefetch = 1 : i64, scratch_operands = 0 : i64, tpu.core_type = #tpu.core_type<tc>, window_params = [{transform_indices = @transform_0, window_bounds = array<i64: 1, 1, 16, 256>}, {pipeline_mode = #tpu.pipeline_mode<synchronous>, transform_indices = @transform_1, window_bounds = array<i64: 256, 1024>}, {pipeline_mode = #tpu.pipeline_mode<synchronous>, transform_indices = @transform_2, window_bounds = array<i64: 64, 16>}, {transform_indices = @transform_3, window_bounds = array<i64: 1, 64, 1024>}]} {
    %0 = tpu.iota {dimensions = array<i32: 0>} : vector<16x256xi32>
    %1 = tpu.iota {dimensions = array<i32: 1>} : vector<16x256xi32>
    %c16_i32 = arith.constant 16 : i32
    %c0_i32 = arith.constant 0 : i32
    %2 = arith.cmpi eq, %c16_i32, %c0_i32 : i32
    %c1_i32 = arith.constant 1 : i32
    %3 = arith.select %2, %c1_i32, %c16_i32 : i32
    %4 = vector.broadcast %3 : i32 to vector<16x256xi32>
    %5 = arith.remsi %1, %4 : vector<16x256xi32>
    %c0_i32_0 = arith.constant 0 : i32
    %6 = vector.broadcast %c0_i32_0 : i32 to vector<16x256xi32>
    %7 = arith.cmpi ne, %5, %6 : vector<16x256xi32>
    %c0_i32_1 = arith.constant 0 : i32
    %8 = vector.broadcast %c0_i32_1 : i32 to vector<16x256xi32>
    %9 = arith.cmpi slt, %5, %8 : vector<16x256xi32>
    %c0_i32_2 = arith.constant 0 : i32
    %10 = arith.cmpi slt, %3, %c0_i32_2 : i32
    %11 = vector.broadcast %10 : i1 to vector<16x256xi1>
    %12 = vector.broadcast %11 : vector<16x256xi1> to vector<16x256xi1>
    %13 = arith.xori %9, %12 : vector<16x256xi1>
    %14 = arith.andi %13, %7 : vector<16x256xi1>
    %15 = vector.broadcast %3 : i32 to vector<16x256xi32>
    %16 = arith.addi %5, %15 : vector<16x256xi32>
    %17 = arith.select %14, %16, %5 : vector<16x256xi1>, vector<16x256xi32>
    %c15_i32 = arith.constant 15 : i32
    %18 = vector.broadcast %c15_i32 : i32 to vector<16x256xi32>
    %19 = arith.cmpi slt, %0, %18 : vector<16x256xi32>
    %c1_i32_3 = arith.constant 1 : i32
    %20 = vector.broadcast %c1_i32_3 : i32 to vector<16x256xi32>
    %21 = arith.cmpi sge, %0, %20 : vector<16x256xi32>
    %c15_i32_4 = arith.constant 15 : i32
    %22 = vector.broadcast %c15_i32_4 : i32 to vector<16x256xi32>
    %23 = arith.cmpi slt, %17, %22 : vector<16x256xi32>
    %c1_i32_5 = arith.constant 1 : i32
    %24 = vector.broadcast %c1_i32_5 : i32 to vector<16x256xi32>
    %25 = arith.cmpi sge, %17, %24 : vector<16x256xi32>
    %c0 = arith.constant 0 : index
    %c0_6 = arith.constant 0 : index
    %c0_7 = arith.constant 0 : index
    %c0_8 = arith.constant 0 : index
    %26 = vector.load %arg2[%c0, %c0_6, %c0_7, %c0_8] : memref<1x1x16x256xf32, #tpu.memory_space<vmem>>, vector<1x1x16x256xf32>
    %27 = vector.shape_cast %26 : vector<1x1x16x256xf32> to vector<16x256xf32>
    %c15_i32_9 = arith.constant 15 : i32
    %28 = tpu.dynamic_rotate %27 by %c15_i32_9 dim 0 : vector<16x256xf32>, i32 -> vector<16x256xf32>
    %cst = arith.constant 0.000000e+00 : f32
    %29 = vector.broadcast %cst : f32 to vector<16x256xf32>
    %30 = arith.select %19, %28, %29 : vector<16x256xi1>, vector<16x256xf32>
    %c1_i32_10 = arith.constant 1 : i32
    %31 = tpu.dynamic_rotate %27 by %c1_i32_10 dim 0 : vector<16x256xf32>, i32 -> vector<16x256xf32>
    %cst_11 = arith.constant 0.000000e+00 : f32
    %32 = vector.broadcast %cst_11 : f32 to vector<16x256xf32>
    %33 = arith.select %21, %31, %32 : vector<16x256xi1>, vector<16x256xf32>
    %c255_i32 = arith.constant 255 : i32
    %34 = tpu.dynamic_rotate %33 by %c255_i32 dim 1 : vector<16x256xf32>, i32 -> vector<16x256xf32>
    %cst_12 = arith.constant 0.000000e+00 : f32
    %35 = vector.broadcast %cst_12 : f32 to vector<16x256xf32>
    %36 = arith.select %23, %34, %35 : vector<16x256xi1>, vector<16x256xf32>
    %c1_i32_13 = arith.constant 1 : i32
    %37 = tpu.dynamic_rotate %33 by %c1_i32_13 dim 1 : vector<16x256xf32>, i32 -> vector<16x256xf32>
    %cst_14 = arith.constant 0.000000e+00 : f32
    %38 = vector.broadcast %cst_14 : f32 to vector<16x256xf32>
    %39 = arith.select %25, %37, %38 : vector<16x256xi1>, vector<16x256xf32>
    %c255_i32_15 = arith.constant 255 : i32
    %40 = tpu.dynamic_rotate %27 by %c255_i32_15 dim 1 : vector<16x256xf32>, i32 -> vector<16x256xf32>
    %cst_16 = arith.constant 0.000000e+00 : f32
    %41 = vector.broadcast %cst_16 : f32 to vector<16x256xf32>
    %42 = arith.select %23, %40, %41 : vector<16x256xi1>, vector<16x256xf32>
    %c1_i32_17 = arith.constant 1 : i32
    %43 = tpu.dynamic_rotate %27 by %c1_i32_17 dim 1 : vector<16x256xf32>, i32 -> vector<16x256xf32>
    %cst_18 = arith.constant 0.000000e+00 : f32
    %44 = vector.broadcast %cst_18 : f32 to vector<16x256xf32>
    %45 = arith.select %25, %43, %44 : vector<16x256xi1>, vector<16x256xf32>
    %c255_i32_19 = arith.constant 255 : i32
    %46 = tpu.dynamic_rotate %30 by %c255_i32_19 dim 1 : vector<16x256xf32>, i32 -> vector<16x256xf32>
    %cst_20 = arith.constant 0.000000e+00 : f32
    %47 = vector.broadcast %cst_20 : f32 to vector<16x256xf32>
    %48 = arith.select %23, %46, %47 : vector<16x256xi1>, vector<16x256xf32>
    %c1_i32_21 = arith.constant 1 : i32
    %49 = tpu.dynamic_rotate %30 by %c1_i32_21 dim 1 : vector<16x256xf32>, i32 -> vector<16x256xf32>
    %cst_22 = arith.constant 0.000000e+00 : f32
    %50 = vector.broadcast %cst_22 : f32 to vector<16x256xf32>
    %51 = arith.select %25, %49, %50 : vector<16x256xi1>, vector<16x256xf32>
    %c0_23 = arith.constant 0 : index
    %52 = memref.load %arg1[%c0_23] : memref<26xf32, #tpu.memory_space<smem>>
    %53 = vector.broadcast %52 : f32 to vector<16x256xf32>
    %54 = arith.mulf %53, %39 : vector<16x256xf32>
    %c1 = arith.constant 1 : index
    %55 = memref.load %arg1[%c1] : memref<26xf32, #tpu.memory_space<smem>>
    %56 = vector.broadcast %55 : f32 to vector<16x256xf32>
    %57 = arith.mulf %56, %33 : vector<16x256xf32>
    %58 = arith.addf %54, %57 : vector<16x256xf32>
    %c2 = arith.constant 2 : index
    %59 = memref.load %arg1[%c2] : memref<26xf32, #tpu.memory_space<smem>>
    %60 = vector.broadcast %59 : f32 to vector<16x256xf32>
    %61 = arith.mulf %60, %36 : vector<16x256xf32>
    %62 = arith.addf %58, %61 : vector<16x256xf32>
    %c3 = arith.constant 3 : index
    %63 = memref.load %arg1[%c3] : memref<26xf32, #tpu.memory_space<smem>>
    %64 = vector.broadcast %63 : f32 to vector<16x256xf32>
    %65 = arith.mulf %64, %45 : vector<16x256xf32>
    %66 = arith.addf %62, %65 : vector<16x256xf32>
    %c4 = arith.constant 4 : index
    %67 = memref.load %arg1[%c4] : memref<26xf32, #tpu.memory_space<smem>>
    %68 = vector.broadcast %67 : f32 to vector<16x256xf32>
    %69 = arith.mulf %68, %27 : vector<16x256xf32>
    %70 = arith.addf %66, %69 : vector<16x256xf32>
    %c5 = arith.constant 5 : index
    %71 = memref.load %arg1[%c5] : memref<26xf32, #tpu.memory_space<smem>>
    %72 = vector.broadcast %71 : f32 to vector<16x256xf32>
    %73 = arith.mulf %72, %42 : vector<16x256xf32>
    %74 = arith.addf %70, %73 : vector<16x256xf32>
    %c6 = arith.constant 6 : index
    %75 = memref.load %arg1[%c6] : memref<26xf32, #tpu.memory_space<smem>>
    %76 = vector.broadcast %75 : f32 to vector<16x256xf32>
    %77 = arith.mulf %76, %51 : vector<16x256xf32>
    %78 = arith.addf %74, %77 : vector<16x256xf32>
    %c7 = arith.constant 7 : index
    %79 = memref.load %arg1[%c7] : memref<26xf32, #tpu.memory_space<smem>>
    %80 = vector.broadcast %79 : f32 to vector<16x256xf32>
    %81 = arith.mulf %80, %30 : vector<16x256xf32>
    %82 = arith.addf %78, %81 : vector<16x256xf32>
    %c8 = arith.constant 8 : index
    %83 = memref.load %arg1[%c8] : memref<26xf32, #tpu.memory_space<smem>>
    %84 = vector.broadcast %83 : f32 to vector<16x256xf32>
    %85 = arith.mulf %84, %48 : vector<16x256xf32>
    %86 = arith.addf %82, %85 : vector<16x256xf32>
    %c9 = arith.constant 9 : index
    %87 = memref.load %arg1[%c9] : memref<26xf32, #tpu.memory_space<smem>>
    %88 = vector.broadcast %87 : f32 to vector<16x256xf32>
    %89 = arith.addf %86, %88 : vector<16x256xf32>
    %cst_24 = arith.constant 2.000000e-01 : f32
    %90 = vector.broadcast %cst_24 : f32 to vector<16x256xf32>
    %91 = arith.mulf %90, %89 : vector<16x256xf32>
    %92 = arith.maximumf %89, %91 : vector<16x256xf32>
    %c15_i32_25 = arith.constant 15 : i32
    %93 = tpu.dynamic_rotate %92 by %c15_i32_25 dim 0 : vector<16x256xf32>, i32 -> vector<16x256xf32>
    %cst_26 = arith.constant 0.000000e+00 : f32
    %94 = vector.broadcast %cst_26 : f32 to vector<16x256xf32>
    %95 = arith.select %19, %93, %94 : vector<16x256xi1>, vector<16x256xf32>
    %c1_i32_27 = arith.constant 1 : i32
    %96 = tpu.dynamic_rotate %92 by %c1_i32_27 dim 0 : vector<16x256xf32>, i32 -> vector<16x256xf32>
    %cst_28 = arith.constant 0.000000e+00 : f32
    %97 = vector.broadcast %cst_28 : f32 to vector<16x256xf32>
    %98 = arith.select %21, %96, %97 : vector<16x256xi1>, vector<16x256xf32>
    %c255_i32_29 = arith.constant 255 : i32
    %99 = tpu.dynamic_rotate %98 by %c255_i32_29 dim 1 : vector<16x256xf32>, i32 -> vector<16x256xf32>
    %cst_30 = arith.constant 0.000000e+00 : f32
    %100 = vector.broadcast %cst_30 : f32 to vector<16x256xf32>
    %101 = arith.select %23, %99, %100 : vector<16x256xi1>, vector<16x256xf32>
    %c1_i32_31 = arith.constant 1 : i32
    %102 = tpu.dynamic_rotate %98 by %c1_i32_31 dim 1 : vector<16x256xf32>, i32 -> vector<16x256xf32>
    %cst_32 = arith.constant 0.000000e+00 : f32
    %103 = vector.broadcast %cst_32 : f32 to vector<16x256xf32>
    %104 = arith.select %25, %102, %103 : vector<16x256xi1>, vector<16x256xf32>
    %c255_i32_33 = arith.constant 255 : i32
    %105 = tpu.dynamic_rotate %92 by %c255_i32_33 dim 1 : vector<16x256xf32>, i32 -> vector<16x256xf32>
    %cst_34 = arith.constant 0.000000e+00 : f32
    %106 = vector.broadcast %cst_34 : f32 to vector<16x256xf32>
    %107 = arith.select %23, %105, %106 : vector<16x256xi1>, vector<16x256xf32>
    %c1_i32_35 = arith.constant 1 : i32
    %108 = tpu.dynamic_rotate %92 by %c1_i32_35 dim 1 : vector<16x256xf32>, i32 -> vector<16x256xf32>
    %cst_36 = arith.constant 0.000000e+00 : f32
    %109 = vector.broadcast %cst_36 : f32 to vector<16x256xf32>
    %110 = arith.select %25, %108, %109 : vector<16x256xi1>, vector<16x256xf32>
    %c255_i32_37 = arith.constant 255 : i32
    %111 = tpu.dynamic_rotate %95 by %c255_i32_37 dim 1 : vector<16x256xf32>, i32 -> vector<16x256xf32>
    %cst_38 = arith.constant 0.000000e+00 : f32
    %112 = vector.broadcast %cst_38 : f32 to vector<16x256xf32>
    %113 = arith.select %23, %111, %112 : vector<16x256xi1>, vector<16x256xf32>
    %c1_i32_39 = arith.constant 1 : i32
    %114 = tpu.dynamic_rotate %95 by %c1_i32_39 dim 1 : vector<16x256xf32>, i32 -> vector<16x256xf32>
    %cst_40 = arith.constant 0.000000e+00 : f32
    %115 = vector.broadcast %cst_40 : f32 to vector<16x256xf32>
    %116 = arith.select %25, %114, %115 : vector<16x256xi1>, vector<16x256xf32>
    %c10 = arith.constant 10 : index
    %117 = memref.load %arg1[%c10] : memref<26xf32, #tpu.memory_space<smem>>
    %118 = vector.broadcast %117 : f32 to vector<16x256xf32>
    %119 = arith.mulf %118, %104 : vector<16x256xf32>
    %c11 = arith.constant 11 : index
    %120 = memref.load %arg1[%c11] : memref<26xf32, #tpu.memory_space<smem>>
    %121 = vector.broadcast %120 : f32 to vector<16x256xf32>
    %122 = arith.mulf %121, %98 : vector<16x256xf32>
    %123 = arith.addf %119, %122 : vector<16x256xf32>
    %c12 = arith.constant 12 : index
    %124 = memref.load %arg1[%c12] : memref<26xf32, #tpu.memory_space<smem>>
    %125 = vector.broadcast %124 : f32 to vector<16x256xf32>
    %126 = arith.mulf %125, %101 : vector<16x256xf32>
    %127 = arith.addf %123, %126 : vector<16x256xf32>
    %c13 = arith.constant 13 : index
    %128 = memref.load %arg1[%c13] : memref<26xf32, #tpu.memory_space<smem>>
    %129 = vector.broadcast %128 : f32 to vector<16x256xf32>
    %130 = arith.mulf %129, %110 : vector<16x256xf32>
    %131 = arith.addf %127, %130 : vector<16x256xf32>
    %c14 = arith.constant 14 : index
    %132 = memref.load %arg1[%c14] : memref<26xf32, #tpu.memory_space<smem>>
    %133 = vector.broadcast %132 : f32 to vector<16x256xf32>
    %134 = arith.mulf %133, %92 : vector<16x256xf32>
    %135 = arith.addf %131, %134 : vector<16x256xf32>
    %c15 = arith.constant 15 : index
    %136 = memref.load %arg1[%c15] : memref<26xf32, #tpu.memory_space<smem>>
    %137 = vector.broadcast %136 : f32 to vector<16x256xf32>
    %138 = arith.mulf %137, %107 : vector<16x256xf32>
    %139 = arith.addf %135, %138 : vector<16x256xf32>
    %c16 = arith.constant 16 : index
    %140 = memref.load %arg1[%c16] : memref<26xf32, #tpu.memory_space<smem>>
    %141 = vector.broadcast %140 : f32 to vector<16x256xf32>
    %142 = arith.mulf %141, %116 : vector<16x256xf32>
    %143 = arith.addf %139, %142 : vector<16x256xf32>
    %c17 = arith.constant 17 : index
    %144 = memref.load %arg1[%c17] : memref<26xf32, #tpu.memory_space<smem>>
    %145 = vector.broadcast %144 : f32 to vector<16x256xf32>
    %146 = arith.mulf %145, %95 : vector<16x256xf32>
    %147 = arith.addf %143, %146 : vector<16x256xf32>
    %c18 = arith.constant 18 : index
    %148 = memref.load %arg1[%c18] : memref<26xf32, #tpu.memory_space<smem>>
    %149 = vector.broadcast %148 : f32 to vector<16x256xf32>
    %150 = arith.mulf %149, %113 : vector<16x256xf32>
    %151 = arith.addf %147, %150 : vector<16x256xf32>
    %c19 = arith.constant 19 : index
    %152 = memref.load %arg1[%c19] : memref<26xf32, #tpu.memory_space<smem>>
    %153 = vector.broadcast %152 : f32 to vector<16x256xf32>
    %154 = arith.addf %151, %153 : vector<16x256xf32>
    %cst_41 = arith.constant 2.000000e-01 : f32
    %155 = vector.broadcast %cst_41 : f32 to vector<16x256xf32>
    %156 = arith.mulf %155, %154 : vector<16x256xf32>
    %157 = arith.maximumf %154, %156 : vector<16x256xf32>
    %c20 = arith.constant 20 : index
    %158 = memref.load %arg1[%c20] : memref<26xf32, #tpu.memory_space<smem>>
    %159 = vector.broadcast %158 : f32 to vector<16x256xf32>
    %160 = arith.mulf %159, %157 : vector<16x256xf32>
    %c21 = arith.constant 21 : index
    %161 = memref.load %arg1[%c21] : memref<26xf32, #tpu.memory_space<smem>>
    %162 = vector.broadcast %161 : f32 to vector<16x256xf32>
    %163 = arith.addf %160, %162 : vector<16x256xf32>
    %c22 = arith.constant 22 : index
    %164 = memref.load %arg1[%c22] : memref<26xf32, #tpu.memory_space<smem>>
    %165 = vector.broadcast %164 : f32 to vector<16x256xf32>
    %166 = arith.mulf %165, %163 : vector<16x256xf32>
    %c15_i32_42 = arith.constant 15 : i32
    %167 = tpu.dynamic_rotate %163 by %c15_i32_42 dim 0 : vector<16x256xf32>, i32 -> vector<16x256xf32>
    %cst_43 = arith.constant 0.000000e+00 : f32
    %168 = vector.broadcast %cst_43 : f32 to vector<16x256xf32>
    %169 = arith.select %19, %167, %168 : vector<16x256xi1>, vector<16x256xf32>
    %c1_i32_44 = arith.constant 1 : i32
    %170 = tpu.dynamic_rotate %163 by %c1_i32_44 dim 0 : vector<16x256xf32>, i32 -> vector<16x256xf32>
    %cst_45 = arith.constant 0.000000e+00 : f32
    %171 = vector.broadcast %cst_45 : f32 to vector<16x256xf32>
    %172 = arith.select %21, %170, %171 : vector<16x256xi1>, vector<16x256xf32>
    %c255_i32_46 = arith.constant 255 : i32
    %173 = tpu.dynamic_rotate %172 by %c255_i32_46 dim 1 : vector<16x256xf32>, i32 -> vector<16x256xf32>
    %cst_47 = arith.constant 0.000000e+00 : f32
    %174 = vector.broadcast %cst_47 : f32 to vector<16x256xf32>
    %175 = arith.select %23, %173, %174 : vector<16x256xi1>, vector<16x256xf32>
    %c1_i32_48 = arith.constant 1 : i32
    %176 = tpu.dynamic_rotate %172 by %c1_i32_48 dim 1 : vector<16x256xf32>, i32 -> vector<16x256xf32>
    %cst_49 = arith.constant 0.000000e+00 : f32
    %177 = vector.broadcast %cst_49 : f32 to vector<16x256xf32>
    %178 = arith.select %25, %176, %177 : vector<16x256xi1>, vector<16x256xf32>
    %c255_i32_50 = arith.constant 255 : i32
    %179 = tpu.dynamic_rotate %163 by %c255_i32_50 dim 1 : vector<16x256xf32>, i32 -> vector<16x256xf32>
    %cst_51 = arith.constant 0.000000e+00 : f32
    %180 = vector.broadcast %cst_51 : f32 to vector<16x256xf32>
    %181 = arith.select %23, %179, %180 : vector<16x256xi1>, vector<16x256xf32>
    %c1_i32_52 = arith.constant 1 : i32
    %182 = tpu.dynamic_rotate %163 by %c1_i32_52 dim 1 : vector<16x256xf32>, i32 -> vector<16x256xf32>
    %cst_53 = arith.constant 0.000000e+00 : f32
    %183 = vector.broadcast %cst_53 : f32 to vector<16x256xf32>
    %184 = arith.select %25, %182, %183 : vector<16x256xi1>, vector<16x256xf32>
    %c255_i32_54 = arith.constant 255 : i32
    %185 = tpu.dynamic_rotate %169 by %c255_i32_54 dim 1 : vector<16x256xf32>, i32 -> vector<16x256xf32>
    %cst_55 = arith.constant 0.000000e+00 : f32
    %186 = vector.broadcast %cst_55 : f32 to vector<16x256xf32>
    %187 = arith.select %23, %185, %186 : vector<16x256xi1>, vector<16x256xf32>
    %c1_i32_56 = arith.constant 1 : i32
    %188 = tpu.dynamic_rotate %169 by %c1_i32_56 dim 1 : vector<16x256xf32>, i32 -> vector<16x256xf32>
    %cst_57 = arith.constant 0.000000e+00 : f32
    %189 = vector.broadcast %cst_57 : f32 to vector<16x256xf32>
    %190 = arith.select %25, %188, %189 : vector<16x256xi1>, vector<16x256xf32>
    %c0_58 = arith.constant 0 : index
    %191 = memref.load %arg1[%c0_58] : memref<26xf32, #tpu.memory_space<smem>>
    %192 = vector.broadcast %191 : f32 to vector<16x256xf32>
    %193 = arith.mulf %192, %178 : vector<16x256xf32>
    %c1_59 = arith.constant 1 : index
    %194 = memref.load %arg1[%c1_59] : memref<26xf32, #tpu.memory_space<smem>>
    %195 = vector.broadcast %194 : f32 to vector<16x256xf32>
    %196 = arith.mulf %195, %172 : vector<16x256xf32>
    %197 = arith.addf %193, %196 : vector<16x256xf32>
    %c2_60 = arith.constant 2 : index
    %198 = memref.load %arg1[%c2_60] : memref<26xf32, #tpu.memory_space<smem>>
    %199 = vector.broadcast %198 : f32 to vector<16x256xf32>
    %200 = arith.mulf %199, %175 : vector<16x256xf32>
    %201 = arith.addf %197, %200 : vector<16x256xf32>
    %c3_61 = arith.constant 3 : index
    %202 = memref.load %arg1[%c3_61] : memref<26xf32, #tpu.memory_space<smem>>
    %203 = vector.broadcast %202 : f32 to vector<16x256xf32>
    %204 = arith.mulf %203, %184 : vector<16x256xf32>
    %205 = arith.addf %201, %204 : vector<16x256xf32>
    %c4_62 = arith.constant 4 : index
    %206 = memref.load %arg1[%c4_62] : memref<26xf32, #tpu.memory_space<smem>>
    %207 = vector.broadcast %206 : f32 to vector<16x256xf32>
    %208 = arith.mulf %207, %163 : vector<16x256xf32>
    %209 = arith.addf %205, %208 : vector<16x256xf32>
    %c5_63 = arith.constant 5 : index
    %210 = memref.load %arg1[%c5_63] : memref<26xf32, #tpu.memory_space<smem>>
    %211 = vector.broadcast %210 : f32 to vector<16x256xf32>
    %212 = arith.mulf %211, %181 : vector<16x256xf32>
    %213 = arith.addf %209, %212 : vector<16x256xf32>
    %c6_64 = arith.constant 6 : index
    %214 = memref.load %arg1[%c6_64] : memref<26xf32, #tpu.memory_space<smem>>
    %215 = vector.broadcast %214 : f32 to vector<16x256xf32>
    %216 = arith.mulf %215, %190 : vector<16x256xf32>
    %217 = arith.addf %213, %216 : vector<16x256xf32>
    %c7_65 = arith.constant 7 : index
    %218 = memref.load %arg1[%c7_65] : memref<26xf32, #tpu.memory_space<smem>>
    %219 = vector.broadcast %218 : f32 to vector<16x256xf32>
    %220 = arith.mulf %219, %169 : vector<16x256xf32>
    %221 = arith.addf %217, %220 : vector<16x256xf32>
    %c8_66 = arith.constant 8 : index
    %222 = memref.load %arg1[%c8_66] : memref<26xf32, #tpu.memory_space<smem>>
    %223 = vector.broadcast %222 : f32 to vector<16x256xf32>
    %224 = arith.mulf %223, %187 : vector<16x256xf32>
    %225 = arith.addf %221, %224 : vector<16x256xf32>
    %c9_67 = arith.constant 9 : index
    %226 = memref.load %arg1[%c9_67] : memref<26xf32, #tpu.memory_space<smem>>
    %227 = vector.broadcast %226 : f32 to vector<16x256xf32>
    %228 = arith.addf %225, %227 : vector<16x256xf32>
    %cst_68 = arith.constant 2.000000e-01 : f32
    %229 = vector.broadcast %cst_68 : f32 to vector<16x256xf32>
    %230 = arith.mulf %229, %228 : vector<16x256xf32>
    %231 = arith.maximumf %228, %230 : vector<16x256xf32>
    %c15_i32_69 = arith.constant 15 : i32
    %232 = tpu.dynamic_rotate %231 by %c15_i32_69 dim 0 : vector<16x256xf32>, i32 -> vector<16x256xf32>
    %cst_70 = arith.constant 0.000000e+00 : f32
    %233 = vector.broadcast %cst_70 : f32 to vector<16x256xf32>
    %234 = arith.select %19, %232, %233 : vector<16x256xi1>, vector<16x256xf32>
    %c1_i32_71 = arith.constant 1 : i32
    %235 = tpu.dynamic_rotate %231 by %c1_i32_71 dim 0 : vector<16x256xf32>, i32 -> vector<16x256xf32>
    %cst_72 = arith.constant 0.000000e+00 : f32
    %236 = vector.broadcast %cst_72 : f32 to vector<16x256xf32>
    %237 = arith.select %21, %235, %236 : vector<16x256xi1>, vector<16x256xf32>
    %c255_i32_73 = arith.constant 255 : i32
    %238 = tpu.dynamic_rotate %237 by %c255_i32_73 dim 1 : vector<16x256xf32>, i32 -> vector<16x256xf32>
    %cst_74 = arith.constant 0.000000e+00 : f32
    %239 = vector.broadcast %cst_74 : f32 to vector<16x256xf32>
    %240 = arith.select %23, %238, %239 : vector<16x256xi1>, vector<16x256xf32>
    %c1_i32_75 = arith.constant 1 : i32
    %241 = tpu.dynamic_rotate %237 by %c1_i32_75 dim 1 : vector<16x256xf32>, i32 -> vector<16x256xf32>
    %cst_76 = arith.constant 0.000000e+00 : f32
    %242 = vector.broadcast %cst_76 : f32 to vector<16x256xf32>
    %243 = arith.select %25, %241, %242 : vector<16x256xi1>, vector<16x256xf32>
    %c255_i32_77 = arith.constant 255 : i32
    %244 = tpu.dynamic_rotate %231 by %c255_i32_77 dim 1 : vector<16x256xf32>, i32 -> vector<16x256xf32>
    %cst_78 = arith.constant 0.000000e+00 : f32
    %245 = vector.broadcast %cst_78 : f32 to vector<16x256xf32>
    %246 = arith.select %23, %244, %245 : vector<16x256xi1>, vector<16x256xf32>
    %c1_i32_79 = arith.constant 1 : i32
    %247 = tpu.dynamic_rotate %231 by %c1_i32_79 dim 1 : vector<16x256xf32>, i32 -> vector<16x256xf32>
    %cst_80 = arith.constant 0.000000e+00 : f32
    %248 = vector.broadcast %cst_80 : f32 to vector<16x256xf32>
    %249 = arith.select %25, %247, %248 : vector<16x256xi1>, vector<16x256xf32>
    %c255_i32_81 = arith.constant 255 : i32
    %250 = tpu.dynamic_rotate %234 by %c255_i32_81 dim 1 : vector<16x256xf32>, i32 -> vector<16x256xf32>
    %cst_82 = arith.constant 0.000000e+00 : f32
    %251 = vector.broadcast %cst_82 : f32 to vector<16x256xf32>
    %252 = arith.select %23, %250, %251 : vector<16x256xi1>, vector<16x256xf32>
    %c1_i32_83 = arith.constant 1 : i32
    %253 = tpu.dynamic_rotate %234 by %c1_i32_83 dim 1 : vector<16x256xf32>, i32 -> vector<16x256xf32>
    %cst_84 = arith.constant 0.000000e+00 : f32
    %254 = vector.broadcast %cst_84 : f32 to vector<16x256xf32>
    %255 = arith.select %25, %253, %254 : vector<16x256xi1>, vector<16x256xf32>
    %c10_85 = arith.constant 10 : index
    %256 = memref.load %arg1[%c10_85] : memref<26xf32, #tpu.memory_space<smem>>
    %257 = vector.broadcast %256 : f32 to vector<16x256xf32>
    %258 = arith.mulf %257, %243 : vector<16x256xf32>
    %c11_86 = arith.constant 11 : index
    %259 = memref.load %arg1[%c11_86] : memref<26xf32, #tpu.memory_space<smem>>
    %260 = vector.broadcast %259 : f32 to vector<16x256xf32>
    %261 = arith.mulf %260, %237 : vector<16x256xf32>
    %262 = arith.addf %258, %261 : vector<16x256xf32>
    %c12_87 = arith.constant 12 : index
    %263 = memref.load %arg1[%c12_87] : memref<26xf32, #tpu.memory_space<smem>>
    %264 = vector.broadcast %263 : f32 to vector<16x256xf32>
    %265 = arith.mulf %264, %240 : vector<16x256xf32>
    %266 = arith.addf %262, %265 : vector<16x256xf32>
    %c13_88 = arith.constant 13 : index
    %267 = memref.load %arg1[%c13_88] : memref<26xf32, #tpu.memory_space<smem>>
    %268 = vector.broadcast %267 : f32 to vector<16x256xf32>
    %269 = arith.mulf %268, %249 : vector<16x256xf32>
    %270 = arith.addf %266, %269 : vector<16x256xf32>
    %c14_89 = arith.constant 14 : index
    %271 = memref.load %arg1[%c14_89] : memref<26xf32, #tpu.memory_space<smem>>
    %272 = vector.broadcast %271 : f32 to vector<16x256xf32>
    %273 = arith.mulf %272, %231 : vector<16x256xf32>
    %274 = arith.addf %270, %273 : vector<16x256xf32>
    %c15_90 = arith.constant 15 : index
    %275 = memref.load %arg1[%c15_90] : memref<26xf32, #tpu.memory_space<smem>>
    %276 = vector.broadcast %275 : f32 to vector<16x256xf32>
    %277 = arith.mulf %276, %246 : vector<16x256xf32>
    %278 = arith.addf %274, %277 : vector<16x256xf32>
    %c16_91 = arith.constant 16 : index
    %279 = memref.load %arg1[%c16_91] : memref<26xf32, #tpu.memory_space<smem>>
    %280 = vector.broadcast %279 : f32 to vector<16x256xf32>
    %281 = arith.mulf %280, %255 : vector<16x256xf32>
    %282 = arith.addf %278, %281 : vector<16x256xf32>
    %c17_92 = arith.constant 17 : index
    %283 = memref.load %arg1[%c17_92] : memref<26xf32, #tpu.memory_space<smem>>
    %284 = vector.broadcast %283 : f32 to vector<16x256xf32>
    %285 = arith.mulf %284, %234 : vector<16x256xf32>
    %286 = arith.addf %282, %285 : vector<16x256xf32>
    %c18_93 = arith.constant 18 : index
    %287 = memref.load %arg1[%c18_93] : memref<26xf32, #tpu.memory_space<smem>>
    %288 = vector.broadcast %287 : f32 to vector<16x256xf32>
    %289 = arith.mulf %288, %252 : vector<16x256xf32>
    %290 = arith.addf %286, %289 : vector<16x256xf32>
    %c19_94 = arith.constant 19 : index
    %291 = memref.load %arg1[%c19_94] : memref<26xf32, #tpu.memory_space<smem>>
    %292 = vector.broadcast %291 : f32 to vector<16x256xf32>
    %293 = arith.addf %290, %292 : vector<16x256xf32>
    %cst_95 = arith.constant 2.000000e-01 : f32
    %294 = vector.broadcast %cst_95 : f32 to vector<16x256xf32>
    %295 = arith.mulf %294, %293 : vector<16x256xf32>
    %296 = arith.maximumf %293, %295 : vector<16x256xf32>
    %c20_96 = arith.constant 20 : index
    %297 = memref.load %arg1[%c20_96] : memref<26xf32, #tpu.memory_space<smem>>
    %298 = vector.broadcast %297 : f32 to vector<16x256xf32>
    %299 = arith.mulf %298, %296 : vector<16x256xf32>
    %c21_97 = arith.constant 21 : index
    %300 = memref.load %arg1[%c21_97] : memref<26xf32, #tpu.memory_space<smem>>
    %301 = vector.broadcast %300 : f32 to vector<16x256xf32>
    %302 = arith.addf %299, %301 : vector<16x256xf32>
    %c23 = arith.constant 23 : index
    %303 = memref.load %arg1[%c23] : memref<26xf32, #tpu.memory_space<smem>>
    %304 = vector.broadcast %303 : f32 to vector<16x256xf32>
    %305 = arith.mulf %304, %302 : vector<16x256xf32>
    %306 = arith.addf %166, %305 : vector<16x256xf32>
    %c15_i32_98 = arith.constant 15 : i32
    %307 = tpu.dynamic_rotate %302 by %c15_i32_98 dim 0 : vector<16x256xf32>, i32 -> vector<16x256xf32>
    %cst_99 = arith.constant 0.000000e+00 : f32
    %308 = vector.broadcast %cst_99 : f32 to vector<16x256xf32>
    %309 = arith.select %19, %307, %308 : vector<16x256xi1>, vector<16x256xf32>
    %c1_i32_100 = arith.constant 1 : i32
    %310 = tpu.dynamic_rotate %302 by %c1_i32_100 dim 0 : vector<16x256xf32>, i32 -> vector<16x256xf32>
    %cst_101 = arith.constant 0.000000e+00 : f32
    %311 = vector.broadcast %cst_101 : f32 to vector<16x256xf32>
    %312 = arith.select %21, %310, %311 : vector<16x256xi1>, vector<16x256xf32>
    %c255_i32_102 = arith.constant 255 : i32
    %313 = tpu.dynamic_rotate %312 by %c255_i32_102 dim 1 : vector<16x256xf32>, i32 -> vector<16x256xf32>
    %cst_103 = arith.constant 0.000000e+00 : f32
    %314 = vector.broadcast %cst_103 : f32 to vector<16x256xf32>
    %315 = arith.select %23, %313, %314 : vector<16x256xi1>, vector<16x256xf32>
    %c1_i32_104 = arith.constant 1 : i32
    %316 = tpu.dynamic_rotate %312 by %c1_i32_104 dim 1 : vector<16x256xf32>, i32 -> vector<16x256xf32>
    %cst_105 = arith.constant 0.000000e+00 : f32
    %317 = vector.broadcast %cst_105 : f32 to vector<16x256xf32>
    %318 = arith.select %25, %316, %317 : vector<16x256xi1>, vector<16x256xf32>
    %c255_i32_106 = arith.constant 255 : i32
    %319 = tpu.dynamic_rotate %302 by %c255_i32_106 dim 1 : vector<16x256xf32>, i32 -> vector<16x256xf32>
    %cst_107 = arith.constant 0.000000e+00 : f32
    %320 = vector.broadcast %cst_107 : f32 to vector<16x256xf32>
    %321 = arith.select %23, %319, %320 : vector<16x256xi1>, vector<16x256xf32>
    %c1_i32_108 = arith.constant 1 : i32
    %322 = tpu.dynamic_rotate %302 by %c1_i32_108 dim 1 : vector<16x256xf32>, i32 -> vector<16x256xf32>
    %cst_109 = arith.constant 0.000000e+00 : f32
    %323 = vector.broadcast %cst_109 : f32 to vector<16x256xf32>
    %324 = arith.select %25, %322, %323 : vector<16x256xi1>, vector<16x256xf32>
    %c255_i32_110 = arith.constant 255 : i32
    %325 = tpu.dynamic_rotate %309 by %c255_i32_110 dim 1 : vector<16x256xf32>, i32 -> vector<16x256xf32>
    %cst_111 = arith.constant 0.000000e+00 : f32
    %326 = vector.broadcast %cst_111 : f32 to vector<16x256xf32>
    %327 = arith.select %23, %325, %326 : vector<16x256xi1>, vector<16x256xf32>
    %c1_i32_112 = arith.constant 1 : i32
    %328 = tpu.dynamic_rotate %309 by %c1_i32_112 dim 1 : vector<16x256xf32>, i32 -> vector<16x256xf32>
    %cst_113 = arith.constant 0.000000e+00 : f32
    %329 = vector.broadcast %cst_113 : f32 to vector<16x256xf32>
    %330 = arith.select %25, %328, %329 : vector<16x256xi1>, vector<16x256xf32>
    %c0_114 = arith.constant 0 : index
    %331 = memref.load %arg1[%c0_114] : memref<26xf32, #tpu.memory_space<smem>>
    %332 = vector.broadcast %331 : f32 to vector<16x256xf32>
    %333 = arith.mulf %332, %318 : vector<16x256xf32>
    %c1_115 = arith.constant 1 : index
    %334 = memref.load %arg1[%c1_115] : memref<26xf32, #tpu.memory_space<smem>>
    %335 = vector.broadcast %334 : f32 to vector<16x256xf32>
    %336 = arith.mulf %335, %312 : vector<16x256xf32>
    %337 = arith.addf %333, %336 : vector<16x256xf32>
    %c2_116 = arith.constant 2 : index
    %338 = memref.load %arg1[%c2_116] : memref<26xf32, #tpu.memory_space<smem>>
    %339 = vector.broadcast %338 : f32 to vector<16x256xf32>
    %340 = arith.mulf %339, %315 : vector<16x256xf32>
    %341 = arith.addf %337, %340 : vector<16x256xf32>
    %c3_117 = arith.constant 3 : index
    %342 = memref.load %arg1[%c3_117] : memref<26xf32, #tpu.memory_space<smem>>
    %343 = vector.broadcast %342 : f32 to vector<16x256xf32>
    %344 = arith.mulf %343, %324 : vector<16x256xf32>
    %345 = arith.addf %341, %344 : vector<16x256xf32>
    %c4_118 = arith.constant 4 : index
    %346 = memref.load %arg1[%c4_118] : memref<26xf32, #tpu.memory_space<smem>>
    %347 = vector.broadcast %346 : f32 to vector<16x256xf32>
    %348 = arith.mulf %347, %302 : vector<16x256xf32>
    %349 = arith.addf %345, %348 : vector<16x256xf32>
    %c5_119 = arith.constant 5 : index
    %350 = memref.load %arg1[%c5_119] : memref<26xf32, #tpu.memory_space<smem>>
    %351 = vector.broadcast %350 : f32 to vector<16x256xf32>
    %352 = arith.mulf %351, %321 : vector<16x256xf32>
    %353 = arith.addf %349, %352 : vector<16x256xf32>
    %c6_120 = arith.constant 6 : index
    %354 = memref.load %arg1[%c6_120] : memref<26xf32, #tpu.memory_space<smem>>
    %355 = vector.broadcast %354 : f32 to vector<16x256xf32>
    %356 = arith.mulf %355, %330 : vector<16x256xf32>
    %357 = arith.addf %353, %356 : vector<16x256xf32>
    %c7_121 = arith.constant 7 : index
    %358 = memref.load %arg1[%c7_121] : memref<26xf32, #tpu.memory_space<smem>>
    %359 = vector.broadcast %358 : f32 to vector<16x256xf32>
    %360 = arith.mulf %359, %309 : vector<16x256xf32>
    %361 = arith.addf %357, %360 : vector<16x256xf32>
    %c8_122 = arith.constant 8 : index
    %362 = memref.load %arg1[%c8_122] : memref<26xf32, #tpu.memory_space<smem>>
    %363 = vector.broadcast %362 : f32 to vector<16x256xf32>
    %364 = arith.mulf %363, %327 : vector<16x256xf32>
    %365 = arith.addf %361, %364 : vector<16x256xf32>
    %c9_123 = arith.constant 9 : index
    %366 = memref.load %arg1[%c9_123] : memref<26xf32, #tpu.memory_space<smem>>
    %367 = vector.broadcast %366 : f32 to vector<16x256xf32>
    %368 = arith.addf %365, %367 : vector<16x256xf32>
    %cst_124 = arith.constant 2.000000e-01 : f32
    %369 = vector.broadcast %cst_124 : f32 to vector<16x256xf32>
    %370 = arith.mulf %369, %368 : vector<16x256xf32>
    %371 = arith.maximumf %368, %370 : vector<16x256xf32>
    %c15_i32_125 = arith.constant 15 : i32
    %372 = tpu.dynamic_rotate %371 by %c15_i32_125 dim 0 : vector<16x256xf32>, i32 -> vector<16x256xf32>
    %cst_126 = arith.constant 0.000000e+00 : f32
    %373 = vector.broadcast %cst_126 : f32 to vector<16x256xf32>
    %374 = arith.select %19, %372, %373 : vector<16x256xi1>, vector<16x256xf32>
    %c1_i32_127 = arith.constant 1 : i32
    %375 = tpu.dynamic_rotate %371 by %c1_i32_127 dim 0 : vector<16x256xf32>, i32 -> vector<16x256xf32>
    %cst_128 = arith.constant 0.000000e+00 : f32
    %376 = vector.broadcast %cst_128 : f32 to vector<16x256xf32>
    %377 = arith.select %21, %375, %376 : vector<16x256xi1>, vector<16x256xf32>
    %c255_i32_129 = arith.constant 255 : i32
    %378 = tpu.dynamic_rotate %377 by %c255_i32_129 dim 1 : vector<16x256xf32>, i32 -> vector<16x256xf32>
    %cst_130 = arith.constant 0.000000e+00 : f32
    %379 = vector.broadcast %cst_130 : f32 to vector<16x256xf32>
    %380 = arith.select %23, %378, %379 : vector<16x256xi1>, vector<16x256xf32>
    %c1_i32_131 = arith.constant 1 : i32
    %381 = tpu.dynamic_rotate %377 by %c1_i32_131 dim 1 : vector<16x256xf32>, i32 -> vector<16x256xf32>
    %cst_132 = arith.constant 0.000000e+00 : f32
    %382 = vector.broadcast %cst_132 : f32 to vector<16x256xf32>
    %383 = arith.select %25, %381, %382 : vector<16x256xi1>, vector<16x256xf32>
    %c255_i32_133 = arith.constant 255 : i32
    %384 = tpu.dynamic_rotate %371 by %c255_i32_133 dim 1 : vector<16x256xf32>, i32 -> vector<16x256xf32>
    %cst_134 = arith.constant 0.000000e+00 : f32
    %385 = vector.broadcast %cst_134 : f32 to vector<16x256xf32>
    %386 = arith.select %23, %384, %385 : vector<16x256xi1>, vector<16x256xf32>
    %c1_i32_135 = arith.constant 1 : i32
    %387 = tpu.dynamic_rotate %371 by %c1_i32_135 dim 1 : vector<16x256xf32>, i32 -> vector<16x256xf32>
    %cst_136 = arith.constant 0.000000e+00 : f32
    %388 = vector.broadcast %cst_136 : f32 to vector<16x256xf32>
    %389 = arith.select %25, %387, %388 : vector<16x256xi1>, vector<16x256xf32>
    %c255_i32_137 = arith.constant 255 : i32
    %390 = tpu.dynamic_rotate %374 by %c255_i32_137 dim 1 : vector<16x256xf32>, i32 -> vector<16x256xf32>
    %cst_138 = arith.constant 0.000000e+00 : f32
    %391 = vector.broadcast %cst_138 : f32 to vector<16x256xf32>
    %392 = arith.select %23, %390, %391 : vector<16x256xi1>, vector<16x256xf32>
    %c1_i32_139 = arith.constant 1 : i32
    %393 = tpu.dynamic_rotate %374 by %c1_i32_139 dim 1 : vector<16x256xf32>, i32 -> vector<16x256xf32>
    %cst_140 = arith.constant 0.000000e+00 : f32
    %394 = vector.broadcast %cst_140 : f32 to vector<16x256xf32>
    %395 = arith.select %25, %393, %394 : vector<16x256xi1>, vector<16x256xf32>
    %c10_141 = arith.constant 10 : index
    %396 = memref.load %arg1[%c10_141] : memref<26xf32, #tpu.memory_space<smem>>
    %397 = vector.broadcast %396 : f32 to vector<16x256xf32>
    %398 = arith.mulf %397, %383 : vector<16x256xf32>
    %c11_142 = arith.constant 11 : index
    %399 = memref.load %arg1[%c11_142] : memref<26xf32, #tpu.memory_space<smem>>
    %400 = vector.broadcast %399 : f32 to vector<16x256xf32>
    %401 = arith.mulf %400, %377 : vector<16x256xf32>
    %402 = arith.addf %398, %401 : vector<16x256xf32>
    %c12_143 = arith.constant 12 : index
    %403 = memref.load %arg1[%c12_143] : memref<26xf32, #tpu.memory_space<smem>>
    %404 = vector.broadcast %403 : f32 to vector<16x256xf32>
    %405 = arith.mulf %404, %380 : vector<16x256xf32>
    %406 = arith.addf %402, %405 : vector<16x256xf32>
    %c13_144 = arith.constant 13 : index
    %407 = memref.load %arg1[%c13_144] : memref<26xf32, #tpu.memory_space<smem>>
    %408 = vector.broadcast %407 : f32 to vector<16x256xf32>
    %409 = arith.mulf %408, %389 : vector<16x256xf32>
    %410 = arith.addf %406, %409 : vector<16x256xf32>
    %c14_145 = arith.constant 14 : index
    %411 = memref.load %arg1[%c14_145] : memref<26xf32, #tpu.memory_space<smem>>
    %412 = vector.broadcast %411 : f32 to vector<16x256xf32>
    %413 = arith.mulf %412, %371 : vector<16x256xf32>
    %414 = arith.addf %410, %413 : vector<16x256xf32>
    %c15_146 = arith.constant 15 : index
    %415 = memref.load %arg1[%c15_146] : memref<26xf32, #tpu.memory_space<smem>>
    %416 = vector.broadcast %415 : f32 to vector<16x256xf32>
    %417 = arith.mulf %416, %386 : vector<16x256xf32>
    %418 = arith.addf %414, %417 : vector<16x256xf32>
    %c16_147 = arith.constant 16 : index
    %419 = memref.load %arg1[%c16_147] : memref<26xf32, #tpu.memory_space<smem>>
    %420 = vector.broadcast %419 : f32 to vector<16x256xf32>
    %421 = arith.mulf %420, %395 : vector<16x256xf32>
    %422 = arith.addf %418, %421 : vector<16x256xf32>
    %c17_148 = arith.constant 17 : index
    %423 = memref.load %arg1[%c17_148] : memref<26xf32, #tpu.memory_space<smem>>
    %424 = vector.broadcast %423 : f32 to vector<16x256xf32>
    %425 = arith.mulf %424, %374 : vector<16x256xf32>
    %426 = arith.addf %422, %425 : vector<16x256xf32>
    %c18_149 = arith.constant 18 : index
    %427 = memref.load %arg1[%c18_149] : memref<26xf32, #tpu.memory_space<smem>>
    %428 = vector.broadcast %427 : f32 to vector<16x256xf32>
    %429 = arith.mulf %428, %392 : vector<16x256xf32>
    %430 = arith.addf %426, %429 : vector<16x256xf32>
    %c19_150 = arith.constant 19 : index
    %431 = memref.load %arg1[%c19_150] : memref<26xf32, #tpu.memory_space<smem>>
    %432 = vector.broadcast %431 : f32 to vector<16x256xf32>
    %433 = arith.addf %430, %432 : vector<16x256xf32>
    %cst_151 = arith.constant 2.000000e-01 : f32
    %434 = vector.broadcast %cst_151 : f32 to vector<16x256xf32>
    %435 = arith.mulf %434, %433 : vector<16x256xf32>
    %436 = arith.maximumf %433, %435 : vector<16x256xf32>
    %c20_152 = arith.constant 20 : index
    %437 = memref.load %arg1[%c20_152] : memref<26xf32, #tpu.memory_space<smem>>
    %438 = vector.broadcast %437 : f32 to vector<16x256xf32>
    %439 = arith.mulf %438, %436 : vector<16x256xf32>
    %c21_153 = arith.constant 21 : index
    %440 = memref.load %arg1[%c21_153] : memref<26xf32, #tpu.memory_space<smem>>
    %441 = vector.broadcast %440 : f32 to vector<16x256xf32>
    %442 = arith.addf %439, %441 : vector<16x256xf32>
    %c24 = arith.constant 24 : index
    %443 = memref.load %arg1[%c24] : memref<26xf32, #tpu.memory_space<smem>>
    %444 = vector.broadcast %443 : f32 to vector<16x256xf32>
    %445 = arith.mulf %444, %442 : vector<16x256xf32>
    %446 = arith.addf %306, %445 : vector<16x256xf32>
    %c25 = arith.constant 25 : index
    %447 = memref.load %arg1[%c25] : memref<26xf32, #tpu.memory_space<smem>>
    %448 = vector.broadcast %447 : f32 to vector<16x256xf32>
    %449 = arith.addf %446, %448 : vector<16x256xf32>
    %450 = arith.truncf %449 : vector<16x256xf32> to vector<16x256xbf16>
    %c0_154 = arith.constant 0 : index
    %c0_155 = arith.constant 0 : index
    %451 = vector.load %arg3[%c0_154, %c0_155] : memref<256x1024xbf16, #tpu.memory_space<vmem>>, vector<256x1024xbf16>
    %cst_156 = arith.constant dense<0.000000e+00> : vector<16x1024xf32>
    %452 = tpu.matmul %450, %451, %cst_156 {dimension_numbers = #tpu.dot_dimension_numbers<[1], [0], [0], [1], [0, 0, 1, 1], [], []>} : vector<16x256xbf16>, vector<256x1024xbf16>, vector<16x1024xf32> -> vector<16x1024xf32>
    %c0_157 = arith.constant 0 : index
    %c0_158 = arith.constant 0 : index
    %453 = vector.load %arg4[%c0_157, %c0_158] : memref<64x16xbf16, #tpu.memory_space<vmem>>, vector<64x16xbf16>
    %454 = arith.truncf %452 : vector<16x1024xf32> to vector<16x1024xbf16>
    %cst_159 = arith.constant dense<0.000000e+00> : vector<64x1024xf32>
    %455 = tpu.matmul %453, %454, %cst_159 {dimension_numbers = #tpu.dot_dimension_numbers<[1], [0], [0], [1], [0, 0, 1, 1], [], []>} : vector<64x16xbf16>, vector<16x1024xbf16>, vector<64x1024xf32> -> vector<64x1024xf32>
    %c0_160 = arith.constant 0 : index
    %c0_161 = arith.constant 0 : index
    %c0_162 = arith.constant 0 : index
    %456 = vector.load %arg5[%c0_160, %c0_161, %c0_162] : memref<1x64x1024xf32, #tpu.memory_space<vmem>>, vector<1x64x1024xf32>
    %457 = vector.shape_cast %456 : vector<1x64x1024xf32> to vector<64x1024xf32>
    %458 = vector.shape_cast %455 : vector<64x1024xf32> to vector<1x64x1024xf32>
    tpu.vector_store %arg5[%c0_160, %c0_161, %c0_162], %458 {strides = array<i32>} : memref<1x64x1024xf32, #tpu.memory_space<vmem>>, vector<1x64x1024xf32>,
    return
  }
  func.func @transform_0(%arg0: i32, %arg1: memref<26xf32, #tpu.memory_space<smem>>) -> (i32, i32, i32, i32) {
    %c0_i32 = arith.constant 0 : i32
    %c0_i32_0 = arith.constant 0 : i32
    %c0_i32_1 = arith.constant 0 : i32
    %c0_i32_2 = arith.constant 0 : i32
    return %arg0, %c0_i32, %c0_i32_0, %c0_i32_1 : i32, i32, i32, i32
  }
  func.func @transform_1(%arg0: i32, %arg1: memref<26xf32, #tpu.memory_space<smem>>) -> (i32, i32) {
    %c0_i32 = arith.constant 0 : i32
    %c0_i32_0 = arith.constant 0 : i32
    %c0_i32_1 = arith.constant 0 : i32
    return %c0_i32, %c0_i32_0 : i32, i32
  }
  func.func @transform_2(%arg0: i32, %arg1: memref<26xf32, #tpu.memory_space<smem>>) -> (i32, i32) {
    %c0_i32 = arith.constant 0 : i32
    %c0_i32_0 = arith.constant 0 : i32
    %c0_i32_1 = arith.constant 0 : i32
    return %c0_i32, %c0_i32_0 : i32, i32
  }
  func.func @transform_3(%arg0: i32, %arg1: memref<26xf32, #tpu.memory_space<smem>>) -> (i32, i32, i32) {
    %c0_i32 = arith.constant 0 : i32
    %c0_i32_0 = arith.constant 0 : i32
    %c0_i32_1 = arith.constant 0 : i32
    return %arg0, %c0_i32, %c0_i32_0 : i32, i32, i32
  }
}

</mosaic_0001>

<bundles_post_ra>
// kernel: tpu_custom_call.1
= control target key start
LH: loop header
LB: loop body
LE: loop exit
PB: predicated region body
PF: predicated region fallthrough
CT: control target
= control target key end

     0   :  { %s3537_s18 = smov [#allocation3]   ;;  %s5451_s0 = inlined_call_operand.vmem [shape: f32[26], index: 0, kind: input, shape index: {}]   ;;  %s5452_s1 = inlined_call_operand.vmem [shape: f32[1,1,16,256], index: 1, kind: input, shape index: {}]   ;;  %s5453_s2 = inlined_call_operand.hbm [shape: bf16[256,1024], index: 2, kind: input, shape index: {}]   ;;  %s5454_s3 = inlined_call_operand.vmem [shape: bf16[64,16], index: 3, kind: input, shape index: {}]   ;;  %s5455_s4 = inlined_call_operand.hbm [shape: f32[1,64,1024], index: 4, kind: output, shape index: {}]  }
   0x1   :  { %s10_s17 = sshll.u32 %s5451_s0, 4  ;;  %s11_s17 = int_to_ptr.vmem [resolvable:$true] %s10_s17 }
   0x2   :  { %13 = dma.vmem_to_smem %s11_s17, 16, %s3537_s18, [#allocation2] }
   0x3   :  { %3531 = dma.done.wait [#allocation2], 16 }
   0x4   :  { %3532 = vsyncadd [#allocation2], 4294967280 }
   0x5   :  { %16 = sfence }
   0x6   :  { %17 = vsyncpa [#allocation5], 0 }
   0x7   :  { %18 = vsyncpa [#allocation6], 0  ;;  %s25_s21 = sshll.u32 %s5453_s2, 4  ;;  %s3538_s22 = smov [#allocation4]   ;;  %s26_s21 = int_to_ptr.hbm [resolvable:$true] %s25_s21 }
   0x8   :  { %s27_s23 = sshll.u32 %s3538_s22, 4  ;;  %s3539_s24 = smov 512   ;;  %s28_s23 = int_to_ptr.vmem [resolvable:$true] %s27_s23 }
   0x9   :  { %s3540_s25 = smov 32  }
   0xa   :  { %33 = dma.hbm_to_vmem [thread:$0]  %s26_s21, 16384, %s28_s23, [#allocation5], %s3539_s24, %s3539_s24, %s3540_s25  }
   0xb   :  { %3533 = dma.done.wait [#allocation5], 16384  }
   0xc   :  { %3534 = vsyncadd [#allocation5], 4294950912  ;;  %v41_v0 = vlaneseq  ;;  %v3583_v2 = vld [vmem:[%s5452_s1 + $0x8] sm:$0xff]  ;;  %v3588_v3 = vld [vmem:[%s5452_s1 + $0x18] sm:$0xff]  ;;  %s3541_s6 = smov 1   ;;  %s2745_s7 = sld [smem:[#allocation3 + $0x1]] }
   0xd   :  { %v3594_v4 = vld [vmem:[%s5452_s1] sm:$0xff]  ;;  %v97_v5 = vrot.slane %v3583_v2, 7  ;;  %v99_v6 = vrot.slane %v3588_v3, 7  ;;  %v3601_v7 = vld [vmem:[%s5452_s1 + $0x10] sm:$0xff]  ;;  %s3542_s1 = smov 127   ;;  %v84_v21 = vrot.slane %v3583_v2, 1 }
   0xe   :  { %v3578_v1 = vshrl.u32 %v41_v0, 7  ;;  %v96_v8 = vrot.slane %v3594_v4, 7  ;;  %v98_v9 = vrot.slane %v3601_v7, 7  ;;  %v83_v16 = vrot.slane %v3594_v4, 1  ;;  %s207_s8 = sld [smem:[#allocation3]] }
   0xf   :  { %v85_v17 = vrot.slane %v3601_v7, 1  ;;  %v86_v22 = vrot.slane %v3588_v3, 1  ;;  %v3704_v34 = vand.u32 127, %v41_v0  ;;  %s2746_s9 = sld [smem:[#allocation3 + $0x2]]  ;;  %vm2417_vm10 = vcmask 130048  }
  0x10   :  { %vm100_vm0 = vcmp.lt.s32.totalorder %v3578_v1, 1  ;;  %vm73_vm1 = vcmp.ge.s32.totalorder %v3578_v1, 1  ;;  %vm87_vm2 = vcmp.lt.s32.totalorder %v3578_v1, 7  ;;  %v3660_v18 = vadd.s32 8, %v3578_v1  ;;  %s3725_s10 = sld [smem:[#allocation3 + $0x3]] }
  0x11   :  { %v3607_v10 = vsel %vm100_vm0, %v97_v5, %v99_v6  ;;  %v3613_v11 = vsel %vm100_vm0, %v96_v8, %v98_v9  ;;  %v104_v12 = vsel %vm100_vm0, %v99_v6, %v97_v5  ;;  %v103_v13 = vsel %vm100_vm0, %v98_v9, %v96_v8  ;;  %s3728_s11 = sld [smem:[#allocation3 + $0x4]] }
  0x12   :  { %132 = vrot.lane.b32.xlu1 %v3607_v10, %s3541_s6  ;;  %128 = vrot.lane.b32.xlu0 %v3613_v11, %s3541_s6  ;;  %v3626_v14 = vsel %vm73_vm1, %v104_v12, 0.0  ;;  %v3630_v15 = vsel %vm73_vm1, %v103_v13, 0.0  ;;  %v3664_v19 = vsel %vm87_vm2, %v83_v16, %v85_v17  ;;  %v90_v20 = vsel %vm87_vm2, %v85_v17, %v83_v16  ;;  %s3754_s12 = sld [smem:[#allocation3 + $0x7]] }
  0x13   :  { %111 = vrot.lane.b32.xlu2 %v3613_v11, %s3542_s1  ;;  %vm72_vm3 = vcmp.lt.s32.totalorder %v3660_v18, 15  ;;  %v91_v24 = vsel %vm87_vm2, %v86_v22, %v84_v21  ;;  %v3689_v26 = vsel %vm87_vm2, %v84_v21, %v86_v22  ;;  %v46_v38 = vadd.s32 128, %v3704_v34  ;;  %s3806_s13 = sld [smem:[#allocation3 + $0x5]]  ;;  %v2996_v18 = vld [vmem:[#allocation4 + $0x1c0] sm:$0xf] }
  0x14   :  { %v3675_v23 = vsel %vm72_vm3, %v90_v20, 0.0  ;;  %v3685_v25 = vsel %vm72_vm3, %v91_v24, 0.0  ;;  %v51_v39 = vand.u32 15, %v3704_v34  ;;  %vm134_vm4 = vcmp.lt.s32.totalorder %v3704_v34, 1  ;;  %s3821_s14 = sld [smem:[#allocation3 + $0x6]] }
  0x15   :  { %v58_v40 = vand.u32 15, %v46_v38  ;;  %v3709_v42 = vstv %s2745_s7  ;;  %vm117_vm7 = vcmp.lt.s32.totalorder %v3704_v34, 127  ;;  %v3740_v52 = vstv %s207_s8  ;;  %s2752_s15 = sld [smem:[#allocation3 + $0x8]] }
  0x16   :  { %vm3713_vm5 = vcmp.ge.s32.totalorder %v51_v39, 1  ;;  %vm3730_vm8 = vcmp.lt.s32.totalorder %v51_v39, 15  ;;  %v218_v51 = vmul.f32 %v3709_v42, %v3607_v10  ;;  %v217_v57 = vmul.f32 %v3709_v42, %v3613_v11  ;;  %s2753_s16 = sld [smem:[#allocation3 + $0x9]] }
  0x17   :  { %vm3717_vm6 = vcmp.ge.s32.totalorder %v58_v40, 1  ;;  %vm3734_vm9 = vcmp.lt.s32.totalorder %v58_v40, 15  ;;  %v216_v58 = vmul.f32 %v3709_v42, %v3626_v14  ;;  %v215_v61 = vmul.f32 %v3709_v42, %v3630_v15  ;;  %s2755_s17 = sld [smem:[#allocation3 + $0xb]] }
  0x18   :  { %v3762_v62 = vstv %s2746_s9  ;;  %v3815_v39 = vstv %s3754_s12  ;;  %s2754_s18 = sld [smem:[#allocation3 + $0xa]] }
  0x19   :  { %s2756_s19 = sld [smem:[#allocation3 + $0xc]] }
  0x1a   :  { %130 = vrot.lane.b32.xlu1 %v3626_v14, %s3541_s6  ;;  %126 = vrot.lane.b32.xlu0 %v3630_v15, %s3541_s6  ;;  %s2758_s20 = sld [smem:[#allocation3 + $0xe]] }
  0x1b   :  { %109 = vrot.lane.b32.xlu2 %v3630_v15, %s3542_s1  ;;  %s2757_s21 = sld [smem:[#allocation3 + $0xd]] }
  0x1c   :  { %s2761_s22 = sld [smem:[#allocation3 + $0x11]] }
  0x1d   :  { %s2759_s23 = sld [smem:[#allocation3 + $0xf]] }
  0x1e   :  { %s4117_s24 = sld [smem:[#allocation3 + $0x10]] }
  0x1f   :  { %s2762_s25 = sld [smem:[#allocation3 + $0x12]] }
  0x20   :  { %s2763_s0 = sld [smem:[#allocation3 + $0x13]] }
  0x21   :  { %s2764_s26 = sld [smem:[#allocation3 + $0x14]] }
  0x22   :  { %115 = vrot.lane.b32.xlu1 %v3607_v10, %s3542_s1  ;;  %113 = vrot.lane.b32.xlu0 %v3626_v14, %s3542_s1  ;;  %s2765_s27 = sld [smem:[#allocation3 + $0x15]] }
  0x23   :  { %159 = vrot.lane.b32.xlu2 %v3594_v4, %s3541_s6  ;;  %s2766_s2 = sld [smem:[#allocation3 + $0x16]] }
  0x24   :  { %s2767_s28 = sld [smem:[#allocation3 + $0x17]] }
  0x25   :  { %s2768_s29 = sld [smem:[#allocation3 + $0x18]] }
  0x26   :  { %s2769_s30 = sld [smem:[#allocation3 + $0x19]] }
  0x2a   :  { %163 = vrot.lane.b32.xlu1 %v3583_v2, %s3541_s6  ;;  %161 = vrot.lane.b32.xlu0 %v3601_v7, %s3541_s6 }
  0x2b   :  { %165 = vrot.lane.b32.xlu2 %v3588_v3, %s3541_s6 }
  0x32   :  { %145 = vrot.lane.b32.xlu1 %v3601_v7, %s3542_s1  ;;  %143 = vrot.lane.b32.xlu0 %v3594_v4, %s3542_s1 }
  0x33   :  { %147 = vrot.lane.b32.xlu2 %v3583_v2, %s3542_s1 }
  0x3a   :  { %191 = vrot.lane.b32.xlu1 %v3664_v19, %s3541_s6  ;;  %149 = vrot.lane.b32.xlu0 %v3588_v3, %s3542_s1 }
  0x3b   :  { %193 = vrot.lane.b32.xlu2 %v3675_v23, %s3541_s6 }
  0x42   :  { %197 = vrot.lane.b32.xlu1 %v3685_v25, %s3541_s6  ;;  %195 = vrot.lane.b32.xlu0 %v3689_v26, %s3541_s6 }
  0x43   :  { %175 = vrot.lane.b32.xlu2 %v3664_v19, %s3542_s1 }
  0x4a   :  { %179 = vrot.lane.b32.xlu1 %v3689_v26, %s3542_s1  ;;  %177 = vrot.lane.b32.xlu0 %v3675_v23, %s3542_s1 }
  0x4b   :  { %181 = vrot.lane.b32.xlu2 %v3685_v25, %s3542_s1 }
  0x6d   :  { %v112_v27 = vpop.permute.xlu2 %111 }
  0x75   :  { %v110_v28 = vpop.permute.xlu2 %109 }
  0x7d   :  { %v160_v31 = vpop.permute.xlu2 %159 }
  0x84   :  { %v133_v29 = vpop.permute.xlu1 %132  ;;  %v129_v30 = vpop.permute.xlu0 %128 }
  0x85   :  { %v166_v35 = vpop.permute.xlu2 %165  ;;  %v136_v47 = vsel %vm134_vm4, %v129_v30, %v133_v29  ;;  %v138_v48 = vsel %vm134_vm4, %v133_v29, %v129_v30 }
  0x86   :  { %v141_v53 = vsel %vm3713_vm5, %v138_v48, 0.0  ;;  %v142_v54 = vsel %vm3717_vm6, %v136_v47, 0.0 }
  0x87   :  { %v211_v5 = vmul.f32 %v3740_v52, %v141_v53  ;;  %v212_v6 = vmul.f32 %v3740_v52, %v142_v54 }
  0x89   :  { %v221_v40 = vadd.f32 %v217_v57, %v211_v5 }
  0x8c   :  { %v131_v32 = vpop.permute.xlu1 %130  ;;  %v127_v33 = vpop.permute.xlu0 %126 }
  0x8d   :  { %v3711_v44 = vpop.permute.xlu2 %147  ;;  %v135_v55 = vsel %vm134_vm4, %v127_v33, %v131_v32  ;;  %v137_v56 = vsel %vm134_vm4, %v131_v32, %v127_v33 }
  0x8e   :  { %v139_v8 = vsel %vm3713_vm5, %v137_v56, 0.0  ;;  %v140_v9 = vsel %vm3717_vm6, %v135_v55, 0.0 }
  0x8f   :  { %v209_v22 = vmul.f32 %v3740_v52, %v139_v8  ;;  %v210_v24 = vmul.f32 %v3740_v52, %v140_v9 }
  0x91   :  { %v219_v47 = vadd.f32 %v215_v61, %v209_v22  ;;  %v220_v48 = vadd.f32 %v216_v58, %v210_v24  ;;  %v276_v22 = vmul.f32 %v3815_v39, %v3689_v26  ;;  %v277_v24 = vmul.f32 %v3815_v39, %v3675_v23 }
  0x94   :  { %v116_v36 = vpop.permute.xlu1 %115  ;;  %v114_v37 = vpop.permute.xlu0 %113 }
  0x95   :  { %v119_v59 = vsel %vm117_vm7, %v112_v27, %v116_v36  ;;  %v121_v60 = vsel %vm117_vm7, %v116_v36, %v112_v27  ;;  %v118_v63 = vsel %vm117_vm7, %v110_v28, %v114_v37  ;;  %v120_v0 = vsel %vm117_vm7, %v114_v37, %v110_v28  ;;  %v3798_v29 = vpop.permute.xlu2 %193 }
  0x96   :  { %v124_v11 = vsel %vm3730_vm8, %v119_v59, 0.0  ;;  %v125_v12 = vsel %vm3734_vm9, %v121_v60, 0.0  ;;  %v122_v16 = vsel %vm3730_vm8, %v118_v63, 0.0  ;;  %v123_v17 = vsel %vm3734_vm9, %v120_v0, 0.0 }
  0x97   :  { %v3793_v27 = vstv %s3725_s10  ;;  %v3796_v28 = vstv %s3728_s11  ;;  %v227_v30 = vmul.f32 %v3762_v62, %v124_v11  ;;  %v228_v32 = vmul.f32 %v3762_v62, %v125_v12 }
  0x98   :  { %v226_v36 = vmul.f32 %v3762_v62, %v123_v17  ;;  %v247_v59 = vmul.f32 %v3796_v28, %v3601_v7 }
  0x9a   :  { %v230_v61 = vadd.f32 %v226_v36, %v220_v48 }
  0x9c   :  { %v164_v41 = vpop.permute.xlu1 %163  ;;  %v162_v43 = vpop.permute.xlu0 %161 }
  0x9d   :  { %v168_v13 = vsel %vm134_vm4, %v162_v43, %v166_v35  ;;  %v170_v14 = vsel %vm134_vm4, %v166_v35, %v162_v43  ;;  %v167_v20 = vsel %vm134_vm4, %v160_v31, %v164_v41  ;;  %v169_v21 = vsel %vm134_vm4, %v164_v41, %v160_v31 }
  0x9e   :  { %v173_v33 = vsel %vm3713_vm5, %v170_v14, 0.0  ;;  %v174_v31 = vsel %vm3717_vm6, %v168_v13, 0.0  ;;  %v225_v35 = vmul.f32 %v3762_v62, %v122_v16  ;;  %v171_v37 = vsel %vm3713_vm5, %v169_v21, 0.0 }
  0x9f   :  { %v172_v38 = vsel %vm3717_vm6, %v167_v20, 0.0  ;;  %v222_v41 = vadd.f32 %v218_v51, %v212_v6  ;;  %v245_v43 = vmul.f32 %v3796_v28, %v3594_v4  ;;  %v237_v53 = vmul.f32 %v3793_v27, %v173_v33  ;;  %v176_v20 = vpop.permute.xlu2 %175 }
  0xa0   :  { %v238_v54 = vmul.f32 %v3793_v27, %v174_v31  ;;  %v235_v55 = vmul.f32 %v3793_v27, %v171_v37  ;;  %v236_v56 = vmul.f32 %v3793_v27, %v172_v38  ;;  %v248_v51 = vmul.f32 %v3796_v28, %v3588_v3 }
  0xa1   :  { %v231_v4 = vadd.f32 %v227_v30, %v221_v40  ;;  %v232_v58 = vadd.f32 %v228_v32, %v222_v41  ;;  %v229_v60 = vadd.f32 %v225_v35, %v219_v47  ;;  %v3846_v14 = vstv %s3806_s13 }
  0xa2   :  { %v240_v13 = vadd.f32 %v236_v56, %v230_v61  ;;  %5480 = vst [vmem:[#allocation11_spill] sm:$0xff] %v3846_v14  ;;  %v275_v21 = vmul.f32 %v3815_v39, %v3664_v19  ;;  %v3863_v33 = vstv %s3821_s14 }
  0xa3   :  { %v241_v6 = vadd.f32 %v237_v53, %v231_v4  ;;  %v242_v8 = vadd.f32 %v238_v54, %v232_v58  ;;  %v239_v12 = vadd.f32 %v235_v55, %v229_v60  ;;  %5481 = vst [vmem:[#allocation12_spill] sm:$0xff] %v3863_v33 }
  0xa4   :  { %v146_v10 = vpop.permute.xlu1 %145  ;;  %v144_v15 = vpop.permute.xlu0 %143 }
  0xa5   :  { %v151_v0 = vsel %vm117_vm7, %v144_v15, %v3711_v44  ;;  %v153_v5 = vsel %vm117_vm7, %v3711_v44, %v144_v15  ;;  %v246_v44 = vmul.f32 %v3796_v28, %v3583_v2  ;;  %v278_v2 = vmul.f32 %v3815_v39, %v3685_v25 }
  0xa6   :  { %v155_v15 = vsel %vm3730_vm8, %v151_v0, 0.0  ;;  %v252_v30 = vadd.f32 %v248_v51, %v242_v8  ;;  %v251_v32 = vadd.f32 %v247_v59, %v241_v6  ;;  %v249_v31 = vadd.f32 %v245_v43, %v239_v12 }
  0xa7   :  { %v250_v35 = vadd.f32 %v246_v44, %v240_v13  ;;  %v255_v36 = vmul.f32 %v3846_v14, %v155_v15 }
  0xa9   :  { %v259_v56 = vadd.f32 %v255_v36, %v249_v31 }
  0xac   :  { %v192_v57 = vpop.permute.xlu1 %191  ;;  %v150_v63 = vpop.permute.xlu0 %149 }
  0xad   :  { %v152_v7 = vsel %vm117_vm7, %v146_v10, %v150_v63  ;;  %v154_v3 = vsel %vm117_vm7, %v150_v63, %v146_v10  ;;  %v156_v10 = vsel %vm3734_vm9, %v153_v5, 0.0  ;;  %v182_v63 = vpop.permute.xlu2 %181 }
  0xae   :  { %v157_v9 = vsel %vm3730_vm8, %v152_v7, 0.0  ;;  %v158_v11 = vsel %vm3734_vm9, %v154_v3, 0.0  ;;  %v256_v37 = vmul.f32 %v3846_v14, %v156_v10  ;;  %v3889_v7 = vstv %s2752_s15  ;;  %s2732_s15 = sshll.u32 %s5455_s4, 4  ;;  %s2733_s15 = int_to_ptr.hbm [resolvable:$true] %s2732_s15 }
  0xaf   :  { %v257_v16 = vmul.f32 %v3846_v14, %v157_v9  ;;  %v258_v17 = vmul.f32 %v3846_v14, %v158_v11  ;;  %5482 = vst [vmem:[#allocation13_spill] sm:$0xff] %v3889_v7 }
  0xb0   :  { %v260_v59 = vadd.f32 %v256_v37, %v250_v35 }
  0xb1   :  { %v261_v38 = vadd.f32 %v257_v16, %v251_v32  ;;  %v262_v26 = vadd.f32 %v258_v17, %v252_v30 }
  0xb4   :  { %v198_v19 = vpop.permute.xlu1 %197  ;;  %v196_v40 = vpop.permute.xlu0 %195 }
  0xb5   :  { %v200_v25 = vsel %vm134_vm4, %v3798_v29, %v198_v19  ;;  %v202_v23 = vsel %vm134_vm4, %v198_v19, %v3798_v29  ;;  %v199_v41 = vsel %vm134_vm4, %v192_v57, %v196_v40  ;;  %v201_v43 = vsel %vm134_vm4, %v196_v40, %v192_v57 }
  0xb6   :  { %v205_v47 = vsel %vm3713_vm5, %v202_v23, 0.0  ;;  %v206_v48 = vsel %vm3717_vm6, %v200_v25, 0.0  ;;  %v203_v53 = vsel %vm3713_vm5, %v201_v43, 0.0  ;;  %v204_v54 = vsel %vm3717_vm6, %v199_v41, 0.0 }
  0xb7   :  { %v267_v29 = vmul.f32 %v3863_v33, %v205_v47  ;;  %v268_v55 = vmul.f32 %v3863_v33, %v206_v48  ;;  %v265_v51 = vmul.f32 %v3863_v33, %v203_v53  ;;  %v266_v57 = vmul.f32 %v3863_v33, %v204_v54 }
  0xb9   :  { %v271_v4 = vadd.f32 %v267_v29, %v261_v38  ;;  %v272_v58 = vadd.f32 %v268_v55, %v262_v26  ;;  %v269_v60 = vadd.f32 %v265_v51, %v259_v56  ;;  %v270_v61 = vadd.f32 %v266_v57, %v260_v59 }
  0xbb   :  { %v281_v0 = vadd.f32 %v277_v24, %v271_v4  ;;  %v282_v5 = vadd.f32 %v278_v2, %v272_v58  ;;  %v280_v3 = vadd.f32 %v276_v22, %v270_v61  ;;  %v279_v8 = vadd.f32 %v275_v21, %v269_v60 }
  0xbc   :  { %v180_v6 = vpop.permute.xlu1 %179  ;;  %v178_v9 = vpop.permute.xlu0 %177  ;;  %v3909_v22 = vstv %s2753_s16  ;;  %s3544_s16 = smov 1024  }
  0xbd   :  { %v183_v11 = vsel %vm117_vm7, %v176_v20, %v180_v6  ;;  %v185_v12 = vsel %vm117_vm7, %v180_v6, %v176_v20  ;;  %v184_v13 = vsel %vm117_vm7, %v178_v9, %v182_v63  ;;  %v186_v44 = vsel %vm117_vm7, %v182_v63, %v178_v9  ;;  %5483 = vst [vmem:[#allocation14_spill] sm:$0xff] %v3909_v22 }
  0xbe   :  { %v187_v15 = vsel %vm3730_vm8, %v183_v11, 0.0  ;;  %v188_v10 = vsel %vm3734_vm9, %v185_v12, 0.0  ;;  %v189_v16 = vsel %vm3730_vm8, %v184_v13, 0.0  ;;  %v190_v17 = vsel %vm3734_vm9, %v186_v44, 0.0 }
  0xbf   :  { %v285_v20 = vmul.f32 %v3889_v7, %v187_v15  ;;  %v286_v21 = vmul.f32 %v3889_v7, %v188_v10  ;;  %v287_v2 = vmul.f32 %v3889_v7, %v189_v16  ;;  %v288_v24 = vmul.f32 %v3889_v7, %v190_v17 }
  0xc1   :  { %v289_v30 = vadd.f32 %v285_v20, %v279_v8  ;;  %v290_v32 = vadd.f32 %v286_v21, %v280_v3  ;;  %v291_v31 = vadd.f32 %v287_v2, %v281_v0  ;;  %v292_v35 = vadd.f32 %v288_v24, %v282_v5 }
  0xc2   :  { %v4031_v24 = vstv %s2755_s17  ;;  %s3545_s17 = smov 64  }
  0xc3   :  { %v295_v36 = vadd.f32 %v3909_v22, %v289_v30  ;;  %v296_v37 = vadd.f32 %v3909_v22, %v290_v32  ;;  %v297_v19 = vadd.f32 %v3909_v22, %v291_v31  ;;  %v298_v38 = vadd.f32 %v3909_v22, %v292_v35 }
  0xc4   :  { %v4037_v31 = vstv %s2754_s18 }
  0xc5   :  { %v299_v26 = vmul.f32 0.2, %v295_v36  ;;  %v300_v40 = vmul.f32 0.2, %v296_v37  ;;  %v301_v25 = vmul.f32 0.2, %v297_v19 }
  0xc6   :  { %v302_v23 = vmul.f32 0.2, %v298_v38 }
  0xc7   :  { %v3917_v41 = vmax.f32 %v295_v36, %v299_v26  ;;  %v3919_v43 = vmax.f32 %v296_v37, %v300_v40  ;;  %v3921_v47 = vmax.f32 %v297_v19, %v301_v25  ;;  %v4039_v36 = vstv %s2756_s19 }
  0xc8   :  { %v3923_v48 = vmax.f32 %v298_v38, %v302_v23 }
  0xc9   :  { %v319_v53 = vrot.slane %v3917_v41, 7  ;;  %v320_v54 = vrot.slane %v3919_v43, 7  ;;  %v307_v29 = vrot.slane %v3917_v41, 1  ;;  %v308_v55 = vrot.slane %v3919_v43, 1  ;;  %365 = vrot.lane.b32.xlu1 %v3921_v47, %s3542_s1  ;;  %381 = vrot.lane.b32.xlu0 %v3921_v47, %s3541_s6 }
  0xca   :  { %v321_v56 = vrot.slane %v3921_v47, 7  ;;  %v322_v59 = vrot.slane %v3923_v48, 7  ;;  %v309_v51 = vrot.slane %v3921_v47, 1  ;;  %v310_v57 = vrot.slane %v3923_v48, 1  ;;  %385 = vrot.lane.b32.xlu2 %v3923_v48, %s3541_s6 }
  0xcc   :  { %v3941_v4 = vsel %vm100_vm0, %v319_v53, %v321_v56  ;;  %v3945_v58 = vsel %vm100_vm0, %v320_v54, %v322_v59  ;;  %v325_v60 = vsel %vm100_vm0, %v321_v56, %v319_v53  ;;  %v326_v61 = vsel %vm100_vm0, %v322_v59, %v320_v54 }
  0xcd   :  { %v3953_v63 = vsel %vm87_vm2, %v307_v29, %v309_v51  ;;  %v3957_v0 = vsel %vm87_vm2, %v308_v55, %v310_v57  ;;  %v313_v5 = vsel %vm87_vm2, %v309_v51, %v307_v29  ;;  %v314_v3 = vsel %vm87_vm2, %v310_v57, %v308_v55 }
  0xce   :  { %v3983_v6 = vsel %vm73_vm1, %v325_v60, 0.0  ;;  %v3989_v8 = vsel %vm73_vm1, %v326_v61, 0.0  ;;  %v4003_v9 = vsel %vm72_vm3, %v314_v3, 0.0  ;;  %v4009_v11 = vsel %vm72_vm3, %v313_v5, 0.0 }
  0xcf   :  { %v437_v55 = vmul.f32 %v4031_v24, %v3941_v4  ;;  %v438_v56 = vmul.f32 %v4031_v24, %v3945_v58  ;;  %v4063_v57 = vstv %s2757_s21  ;;  %v4069_v5 = vstv %s2758_s20 }
  0xd1   :  { %369 = vrot.lane.b32.xlu0 %v3923_v48, %s3542_s1  ;;  %383 = vrot.lane.b32.xlu1 %v3919_v43, %s3541_s6 }
  0xd2   :  { %379 = vrot.lane.b32.xlu2 %v3917_v41, %s3541_s6 }
  0xd9   :  { %363 = vrot.lane.b32.xlu0 %v3917_v41, %s3542_s1  ;;  %349 = vrot.lane.b32.xlu1 %v3941_v4, %s3541_s6 }
  0xda   :  { %367 = vrot.lane.b32.xlu2 %v3919_v43, %s3542_s1 }
  0xe1   :  { %353 = vrot.lane.b32.xlu0 %v3945_v58, %s3541_s6  ;;  %337 = vrot.lane.b32.xlu1 %v3945_v58, %s3542_s1 }
  0xe2   :  { %333 = vrot.lane.b32.xlu2 %v3941_v4, %s3542_s1 }
  0xe9   :  { %347 = vrot.lane.b32.xlu0 %v3983_v6, %s3541_s6  ;;  %411 = vrot.lane.b32.xlu1 %v3953_v63, %s3541_s6 }
  0xea   :  { %351 = vrot.lane.b32.xlu2 %v3989_v8, %s3541_s6 }
  0xf1   :  { %335 = vrot.lane.b32.xlu0 %v3989_v8, %s3542_s1  ;;  %331 = vrot.lane.b32.xlu1 %v3983_v6, %s3542_s1 }
  0xf2   :  { %395 = vrot.lane.b32.xlu2 %v3953_v63, %s3542_s1 }
  0xf9   :  { %415 = vrot.lane.b32.xlu0 %v3957_v0, %s3541_s6  ;;  %417 = vrot.lane.b32.xlu1 %v4003_v9, %s3541_s6 }
  0xfa   :  { %413 = vrot.lane.b32.xlu2 %v4009_v11, %s3541_s6 }
 0x101   :  { %397 = vrot.lane.b32.xlu0 %v4009_v11, %s3542_s1  ;;  %399 = vrot.lane.b32.xlu1 %v3957_v0, %s3542_s1 }
 0x102   :  { %401 = vrot.lane.b32.xlu2 %v4003_v9, %s3542_s1 }
 0x124   :  { %v386_v12 = vpop.permute.xlu2 %385 }
 0x12c   :  { %v4021_v13 = vpop.permute.xlu2 %379 }
 0x134   :  { %v4025_v10 = vpop.permute.xlu2 %367 }
 0x13b   :  { %v382_v44 = vpop.permute.xlu0 %381  ;;  %v4023_v15 = vpop.permute.xlu1 %365 }
 0x13c   :  { %v334_v20 = vpop.permute.xlu2 %333  ;;  %v388_v30 = vsel %vm134_vm4, %v382_v44, %v386_v12  ;;  %v390_v32 = vsel %vm134_vm4, %v386_v12, %v382_v44 }
 0x13d   :  { %v393_v60 = vsel %vm3713_vm5, %v390_v32, 0.0  ;;  %v394_v61 = vsel %vm3717_vm6, %v388_v30, 0.0  ;;  %v467_v30 = vmul.f32 %v4069_v5, %v3921_v47 }
 0x13e   :  { %v457_v44 = vmul.f32 %v4063_v57, %v393_v60 }
 0x143   :  { %v4027_v16 = vpop.permute.xlu0 %369  ;;  %v384_v17 = vpop.permute.xlu1 %383 }
 0x144   :  { %v352_v19 = vpop.permute.xlu2 %351 }
 0x14b   :  { %v4029_v21 = vpop.permute.xlu0 %363  ;;  %v350_v2 = vpop.permute.xlu1 %349 }
 0x153   :  { %v354_v35 = vpop.permute.xlu0 %353  ;;  %v338_v37 = vpop.permute.xlu1 %337 }
 0x154   :  { %v356_v38 = vsel %vm134_vm4, %v350_v2, %v354_v35  ;;  %v358_v26 = vsel %vm134_vm4, %v354_v35, %v350_v2  ;;  %v340_v40 = vsel %vm117_vm7, %v334_v20, %v338_v37  ;;  %v342_v25 = vsel %vm117_vm7, %v338_v37, %v334_v20 }
 0x155   :  { %v361_v23 = vsel %vm3713_vm5, %v358_v26, 0.0  ;;  %v362_v53 = vsel %vm3717_vm6, %v356_v38, 0.0  ;;  %v345_v54 = vsel %vm3730_vm8, %v340_v40, 0.0  ;;  %v346_v29 = vsel %vm3734_vm9, %v342_v25, 0.0 }
 0x156   :  { %v431_v59 = vmul.f32 %v4037_v31, %v361_v23  ;;  %v432_v51 = vmul.f32 %v4037_v31, %v362_v53  ;;  %v447_v4 = vmul.f32 %v4039_v36, %v345_v54  ;;  %v448_v58 = vmul.f32 %v4039_v36, %v346_v29  ;;  %v4083_v53 = vpop.permute.xlu2 %395 }
 0x157   :  { %v458_v20 = vmul.f32 %v4063_v57, %v394_v61  ;;  %v468_v38 = vmul.f32 %v4069_v5, %v3923_v48  ;;  %v436_v61 = vmul.f32 %v4031_v24, %v3989_v8 }
 0x158   :  { %v441_v3 = vadd.f32 %v437_v55, %v431_v59  ;;  %v442_v12 = vadd.f32 %v438_v56, %v432_v51  ;;  %v387_v55 = vsel %vm134_vm4, %v4021_v13, %v384_v17  ;;  %v435_v56 = vmul.f32 %v4031_v24, %v3983_v6 }
 0x159   :  { %v4101_v59 = vstv %s2761_s22  ;;  %v374_v6 = vsel %vm117_vm7, %v4027_v16, %v4023_v15  ;;  %v392_v8 = vsel %vm3717_vm6, %v387_v55, 0.0 }
 0x15a   :  { %v451_v2 = vadd.f32 %v447_v4, %v441_v3  ;;  %v452_v35 = vadd.f32 %v448_v58, %v442_v12  ;;  %v4107_v3 = vstv %s2759_s23  ;;  %v372_v12 = vsel %vm117_vm7, %v4023_v15, %v4027_v16 }
 0x15b   :  { %v348_v32 = vpop.permute.xlu0 %347  ;;  %v412_v37 = vpop.permute.xlu1 %411  ;;  %v371_v15 = vsel %vm117_vm7, %v4029_v21, %v4025_v10  ;;  %v373_v16 = vsel %vm117_vm7, %v4025_v10, %v4029_v21  ;;  %v456_v21 = vmul.f32 %v4063_v57, %v392_v8 }
 0x15c   :  { %v461_v26 = vadd.f32 %v457_v44, %v451_v2  ;;  %v462_v40 = vadd.f32 %v458_v20, %v452_v35  ;;  %v355_v25 = vsel %vm134_vm4, %v348_v32, %v352_v19  ;;  %v357_v23 = vsel %vm134_vm4, %v352_v19, %v348_v32 }
 0x15d   :  { %v359_v47 = vsel %vm3713_vm5, %v357_v23, 0.0  ;;  %v360_v48 = vsel %vm3717_vm6, %v355_v25, 0.0  ;;  %v389_v19 = vsel %vm134_vm4, %v384_v17, %v4021_v13  ;;  %v375_v25 = vsel %vm3730_vm8, %v371_v15, 0.0 }
 0x15e   :  { %v4085_v54 = vadd.f32 %v467_v30, %v461_v26  ;;  %v4087_v29 = vadd.f32 %v468_v38, %v462_v40  ;;  %v429_v51 = vmul.f32 %v4037_v31, %v359_v47  ;;  %v430_v60 = vmul.f32 %v4037_v31, %v360_v48  ;;  %v414_v47 = vpop.permute.xlu2 %413 }
 0x15f   :  { %v391_v4 = vsel %vm3713_vm5, %v389_v19, 0.0  ;;  %v377_v26 = vsel %vm3730_vm8, %v372_v12, 0.0  ;;  %v378_v40 = vsel %vm3734_vm9, %v374_v6, 0.0  ;;  %v376_v23 = vsel %vm3734_vm9, %v373_v16, 0.0 }
 0x160   :  { %v439_v35 = vadd.f32 %v435_v56, %v429_v51  ;;  %v440_v32 = vadd.f32 %v436_v61, %v430_v60  ;;  %v455_v10 = vmul.f32 %v4063_v57, %v391_v4  ;;  %v495_v19 = vmul.f32 %v4101_v59, %v3953_v63 }
 0x161   :  { %v465_v56 = vmul.f32 %v4069_v5, %v3917_v41  ;;  %v466_v51 = vmul.f32 %v4069_v5, %v3919_v43  ;;  %v496_v60 = vmul.f32 %v4101_v59, %v3957_v0  ;;  %v477_v61 = vmul.f32 %v4107_v3, %v377_v26 }
 0x162   :  { %v476_v4 = vmul.f32 %v4107_v3, %v376_v23  ;;  %v4164_v63 = vstv %s4117_s24 }
 0x163   :  { %v336_v13 = vpop.permute.xlu0 %335  ;;  %v332_v17 = vpop.permute.xlu1 %331 }
 0x164   :  { %v339_v58 = vsel %vm117_vm7, %v332_v17, %v336_v13  ;;  %v341_v44 = vsel %vm117_vm7, %v336_v13, %v332_v17  ;;  %v478_v13 = vmul.f32 %v4107_v3, %v378_v40  ;;  %v475_v17 = vmul.f32 %v4107_v3, %v375_v25 }
 0x165   :  { %v343_v20 = vsel %vm3730_vm8, %v339_v58, 0.0  ;;  %v344_v2 = vsel %vm3734_vm9, %v341_v44, 0.0 }
 0x166   :  { %v445_v30 = vmul.f32 %v4039_v36, %v343_v20  ;;  %v446_v38 = vmul.f32 %v4039_v36, %v344_v2  ;;  %v482_v26 = vadd.f32 %v478_v13, %v4087_v29  ;;  %v402_v29 = vpop.permute.xlu2 %401 }
 0x168   :  { %v449_v48 = vadd.f32 %v445_v30, %v439_v35  ;;  %v450_v55 = vadd.f32 %v446_v38, %v440_v32  ;;  %v481_v38 = vadd.f32 %v477_v61, %v4085_v54  ;;  %v498_v54 = vmul.f32 %v4101_v59, %v4003_v9 }
 0x16a   :  { %v459_v12 = vadd.f32 %v455_v10, %v449_v48  ;;  %v460_v6 = vadd.f32 %v456_v21, %v450_v55  ;;  %v497_v48 = vmul.f32 %v4101_v59, %v4009_v11 }
 0x16b   :  { %v416_v8 = vpop.permute.xlu0 %415  ;;  %v418_v41 = vpop.permute.xlu1 %417 }
 0x16c   :  { %v419_v43 = vsel %vm134_vm4, %v412_v37, %v416_v8  ;;  %v421_v0 = vsel %vm134_vm4, %v416_v8, %v412_v37  ;;  %v469_v58 = vadd.f32 %v465_v56, %v459_v12  ;;  %v470_v44 = vadd.f32 %v466_v51, %v460_v6 }
 0x16d   :  { %v423_v15 = vsel %vm3713_vm5, %v421_v0, 0.0  ;;  %v424_v16 = vsel %vm3717_vm6, %v419_v43, 0.0  ;;  %v420_v20 = vsel %vm134_vm4, %v414_v47, %v418_v41  ;;  %v422_v2 = vsel %vm134_vm4, %v418_v41, %v414_v47 }
 0x16e   :  { %v479_v35 = vadd.f32 %v475_v17, %v469_v58  ;;  %v480_v32 = vadd.f32 %v476_v4, %v470_v44  ;;  %v485_v30 = vmul.f32 %v4164_v63, %v423_v15  ;;  %v486_v37 = vmul.f32 %v4164_v63, %v424_v16 }
 0x16f   :  { %v425_v40 = vsel %vm3713_vm5, %v422_v2, 0.0  ;;  %v426_v10 = vsel %vm3717_vm6, %v420_v20, 0.0  ;;  %v4192_v12 = vstv %s2762_s25  ;;  %v4214_v15 = vstv %s2763_s0 }
 0x170   :  { %v489_v21 = vadd.f32 %v485_v30, %v479_v35  ;;  %v490_v25 = vadd.f32 %v486_v37, %v480_v32  ;;  %v487_v23 = vmul.f32 %v4164_v63, %v425_v40  ;;  %v488_v47 = vmul.f32 %v4164_v63, %v426_v10  ;;  %5484 = vst [vmem:[#allocation15_spill] sm:$0xff] %v4214_v15 }
 0x172   :  { %v491_v55 = vadd.f32 %v487_v23, %v481_v38  ;;  %v492_v56 = vadd.f32 %v488_v47, %v482_v26  ;;  %v500_v51 = vadd.f32 %v496_v60, %v490_v25  ;;  %v499_v61 = vadd.f32 %v495_v19, %v489_v21 }
 0x173   :  { %v398_v6 = vpop.permute.xlu0 %397  ;;  %v400_v13 = vpop.permute.xlu1 %399  ;;  %v4222_v21 = vstv %s2764_s26 }
 0x174   :  { %v404_v17 = vsel %vm117_vm7, %v398_v6, %v402_v29  ;;  %v406_v4 = vsel %vm117_vm7, %v402_v29, %v398_v6  ;;  %v501_v8 = vadd.f32 %v497_v48, %v491_v55  ;;  %v502_v11 = vadd.f32 %v498_v54, %v492_v56  ;;  %5485 = vst [vmem:[#allocation16_spill] sm:$0xff] %v4222_v21 }
 0x175   :  { %v409_v9 = vsel %vm3730_vm8, %v404_v17, 0.0  ;;  %v410_v60 = vsel %vm3734_vm9, %v406_v4, 0.0  ;;  %v403_v19 = vsel %vm117_vm7, %v4083_v53, %v400_v13  ;;  %v405_v41 = vsel %vm117_vm7, %v400_v13, %v4083_v53 }
 0x176   :  { %v507_v43 = vmul.f32 %v4192_v12, %v409_v9  ;;  %v508_v0 = vmul.f32 %v4192_v12, %v410_v60  ;;  %v407_v58 = vsel %vm3730_vm8, %v403_v19, 0.0  ;;  %v408_v44 = vsel %vm3734_vm9, %v405_v41, 0.0 }
 0x177   :  { %v505_v16 = vmul.f32 %v4192_v12, %v407_v58  ;;  %v506_v20 = vmul.f32 %v4192_v12, %v408_v44  ;;  %v4224_v54 = vstv %s2765_s27 }
 0x178   :  { %v511_v2 = vadd.f32 %v507_v43, %v501_v8  ;;  %v512_v35 = vadd.f32 %v508_v0, %v502_v11  ;;  %5486 = vst [vmem:[#allocation17_spill] sm:$0xff] %v4224_v54 }
 0x179   :  { %v509_v53 = vadd.f32 %v505_v16, %v499_v61  ;;  %v510_v32 = vadd.f32 %v506_v20, %v500_v51 }
 0x17a   :  { %v517_v30 = vadd.f32 %v4214_v15, %v511_v2  ;;  %v518_v37 = vadd.f32 %v4214_v15, %v512_v35 }
 0x17b   :  { %v515_v38 = vadd.f32 %v4214_v15, %v509_v53  ;;  %v516_v26 = vadd.f32 %v4214_v15, %v510_v32 }
 0x17c   :  { %v521_v40 = vmul.f32 0.2, %v517_v30  ;;  %v522_v10 = vmul.f32 0.2, %v518_v37 }
 0x17d   :  { %v519_v25 = vmul.f32 0.2, %v515_v38  ;;  %v520_v23 = vmul.f32 0.2, %v516_v26 }
 0x17e   :  { %v525_v47 = vmax.f32 %v517_v30, %v521_v40  ;;  %v526_v48 = vmax.f32 %v518_v37, %v522_v10 }
 0x17f   :  { %v523_v29 = vmax.f32 %v515_v38, %v519_v25  ;;  %v524_v55 = vmax.f32 %v516_v26, %v520_v23 }
 0x180   :  { %v531_v56 = vmul.f32 %v4222_v21, %v525_v47  ;;  %v532_v51 = vmul.f32 %v4222_v21, %v526_v48 }
 0x181   :  { %v529_v61 = vmul.f32 %v4222_v21, %v523_v29  ;;  %v530_v6 = vmul.f32 %v4222_v21, %v524_v55 }
 0x182   :  { %v4231_v13 = vadd.f32 %v4224_v54, %v531_v56  ;;  %v4234_v17 = vadd.f32 %v4224_v54, %v532_v51 }
 0x183   :  { %v4237_v4 = vadd.f32 %v4224_v54, %v529_v61  ;;  %v4240_v8 = vadd.f32 %v4224_v54, %v530_v6 }
 0x184   :  { %603 = vrot.lane.b32.xlu1 %v4231_v13, %s3542_s1  ;;  %619 = vrot.lane.b32.xlu0 %v4231_v13, %s3541_s6  ;;  %v559_v11 = vrot.slane %v4231_v13, 7  ;;  %v560_v9 = vrot.slane %v4234_v17, 7  ;;  %v547_v60 = vrot.slane %v4231_v13, 1  ;;  %v548_v19 = vrot.slane %v4234_v17, 1 }
 0x185   :  { %623 = vrot.lane.b32.xlu2 %v4234_v17, %s3541_s6  ;;  %v557_v41 = vrot.slane %v4237_v4, 7  ;;  %v558_v43 = vrot.slane %v4240_v8, 7  ;;  %v545_v0 = vrot.slane %v4237_v4, 1  ;;  %v546_v58 = vrot.slane %v4240_v8, 1 }
 0x187   :  { %v561_v44 = vsel %vm100_vm0, %v557_v41, %v559_v11  ;;  %v562_v16 = vsel %vm100_vm0, %v558_v43, %v560_v9  ;;  %v563_v20 = vsel %vm100_vm0, %v559_v11, %v557_v41  ;;  %v564_v2 = vsel %vm100_vm0, %v560_v9, %v558_v43 }
 0x188   :  { %v4266_v35 = vsel %vm87_vm2, %v545_v0, %v547_v60  ;;  %v4270_v53 = vsel %vm87_vm2, %v546_v58, %v548_v19  ;;  %v551_v32 = vsel %vm87_vm2, %v547_v60, %v545_v0  ;;  %v552_v30 = vsel %vm87_vm2, %v548_v19, %v546_v58 }
 0x189   :  { %v4292_v37 = vsel %vm73_vm1, %v563_v20, 0.0  ;;  %v4298_v38 = vsel %vm73_vm1, %v564_v2, 0.0  ;;  %v4312_v26 = vsel %vm72_vm3, %v552_v30, 0.0  ;;  %v4318_v40 = vsel %vm72_vm3, %v551_v32, 0.0 }
 0x18c   :  { %607 = vrot.lane.b32.xlu0 %v4234_v17, %s3542_s1  ;;  %621 = vrot.lane.b32.xlu1 %v4240_v8, %s3541_s6 }
 0x18d   :  { %617 = vrot.lane.b32.xlu2 %v4237_v4, %s3541_s6 }
 0x194   :  { %601 = vrot.lane.b32.xlu0 %v4237_v4, %s3542_s1  ;;  %587 = vrot.lane.b32.xlu1 %v561_v44, %s3541_s6 }
 0x195   :  { %605 = vrot.lane.b32.xlu2 %v4240_v8, %s3542_s1 }
 0x19c   :  { %591 = vrot.lane.b32.xlu0 %v562_v16, %s3541_s6  ;;  %575 = vrot.lane.b32.xlu1 %v562_v16, %s3542_s1 }
 0x19d   :  { %571 = vrot.lane.b32.xlu2 %v561_v44, %s3542_s1 }
 0x1a4   :  { %585 = vrot.lane.b32.xlu0 %v4292_v37, %s3541_s6  ;;  %649 = vrot.lane.b32.xlu1 %v4266_v35, %s3541_s6 }
 0x1a5   :  { %589 = vrot.lane.b32.xlu2 %v4298_v38, %s3541_s6 }
 0x1ac   :  { %573 = vrot.lane.b32.xlu0 %v4298_v38, %s3542_s1  ;;  %569 = vrot.lane.b32.xlu1 %v4292_v37, %s3542_s1 }
 0x1ad   :  { %633 = vrot.lane.b32.xlu2 %v4266_v35, %s3542_s1 }
 0x1b4   :  { %653 = vrot.lane.b32.xlu0 %v4270_v53, %s3541_s6  ;;  %655 = vrot.lane.b32.xlu1 %v4312_v26, %s3541_s6 }
 0x1b5   :  { %651 = vrot.lane.b32.xlu2 %v4318_v40, %s3541_s6 }
 0x1bc   :  { %635 = vrot.lane.b32.xlu0 %v4318_v40, %s3542_s1  ;;  %637 = vrot.lane.b32.xlu1 %v4270_v53, %s3542_s1 }
 0x1bd   :  { %639 = vrot.lane.b32.xlu2 %v4312_v26, %s3542_s1 }
 0x1df   :  { %v624_v10 = vpop.permute.xlu2 %623 }
 0x1e7   :  { %v618_v25 = vpop.permute.xlu2 %617 }
 0x1ef   :  { %v606_v48 = vpop.permute.xlu2 %605 }
 0x1f6   :  { %v620_v23 = vpop.permute.xlu0 %619  ;;  %v604_v47 = vpop.permute.xlu1 %603 }
 0x1f7   :  { %v572_v56 = vpop.permute.xlu2 %571  ;;  %v626_v6 = vsel %vm134_vm4, %v620_v23, %v624_v10  ;;  %v628_v11 = vsel %vm134_vm4, %v624_v10, %v620_v23  ;;  %v671_v10 = vmul.f32 %v561_v44, %v3709_v42  ;;  %v672_v23 = vmul.f32 %v562_v16, %v3709_v42 }
 0x1fe   :  { %v608_v29 = vpop.permute.xlu0 %607  ;;  %v622_v55 = vpop.permute.xlu1 %621 }
 0x1ff   :  { %v590_v19 = vpop.permute.xlu2 %589 }
 0x206   :  { %v602_v51 = vpop.permute.xlu0 %601  ;;  %v588_v61 = vpop.permute.xlu1 %587 }
 0x20e   :  { %v592_v9 = vpop.permute.xlu0 %591  ;;  %v576_v60 = vpop.permute.xlu1 %575 }
 0x20f   :  { %v594_v41 = vsel %vm134_vm4, %v588_v61, %v592_v9  ;;  %v596_v43 = vsel %vm134_vm4, %v592_v9, %v588_v61  ;;  %v578_v0 = vsel %vm117_vm7, %v572_v56, %v576_v60  ;;  %v580_v58 = vsel %vm117_vm7, %v576_v60, %v572_v56 }
 0x210   :  { %v599_v20 = vsel %vm3713_vm5, %v596_v43, 0.0  ;;  %v600_v2 = vsel %vm3717_vm6, %v594_v41, 0.0  ;;  %v583_v32 = vsel %vm3730_vm8, %v578_v0, 0.0  ;;  %v584_v30 = vsel %vm3734_vm9, %v580_v58, 0.0 }
 0x211   :  { %v667_v61 = vmul.f32 %v599_v20, %v3740_v52  ;;  %v668_v56 = vmul.f32 %v600_v2, %v3740_v52  ;;  %v631_v9 = vsel %vm3713_vm5, %v628_v11, 0.0  ;;  %v632_v60 = vsel %vm3717_vm6, %v626_v6, 0.0 }
 0x212   :  { %v679_v0 = vmul.f32 %v583_v32, %v3762_v62  ;;  %v680_v58 = vmul.f32 %v584_v30, %v3762_v62  ;;  %v687_v44 = vmul.f32 %v631_v9, %v3793_v27  ;;  %v688_v16 = vmul.f32 %v632_v60, %v3793_v27 }
 0x213   :  { %v675_v41 = vadd.f32 %v671_v10, %v667_v61  ;;  %v676_v43 = vadd.f32 %v672_v23, %v668_v56  ;;  %v695_v11 = vmul.f32 %v4231_v13, %v3796_v28  ;;  %v696_v6 = vmul.f32 %v4234_v17, %v3796_v28  ;;  %v4370_v61 = vpop.permute.xlu2 %633 }
 0x215   :  { %v683_v54 = vadd.f32 %v679_v0, %v675_v41  ;;  %v684_v20 = vadd.f32 %v680_v58, %v676_v43  ;;  %v627_v43 = vsel %vm134_vm4, %v622_v55, %v618_v25  ;;  %v670_v58 = vmul.f32 %v4298_v38, %v3709_v42 }
 0x216   :  { %v586_v21 = vpop.permute.xlu0 %585  ;;  %v650_v2 = vpop.permute.xlu1 %649 }
 0x217   :  { %v691_v10 = vadd.f32 %v687_v44, %v683_v54  ;;  %v692_v23 = vadd.f32 %v688_v16, %v684_v20  ;;  %v593_v32 = vsel %vm134_vm4, %v586_v21, %v590_v19  ;;  %v595_v30 = vsel %vm134_vm4, %v590_v19, %v586_v21 }
 0x218   :  { %v597_v60 = vsel %vm3713_vm5, %v595_v30, 0.0  ;;  %v598_v41 = vsel %vm3717_vm6, %v593_v32, 0.0  ;;  %v625_v54 = vsel %vm134_vm4, %v618_v25, %v622_v55  ;;  %v669_v19 = vmul.f32 %v4292_v37, %v3709_v42 }
 0x219   :  { %v699_v56 = vadd.f32 %v695_v11, %v691_v10  ;;  %v700_v9 = vadd.f32 %v696_v6, %v692_v23  ;;  %v665_v0 = vmul.f32 %v597_v60, %v3740_v52  ;;  %v666_v21 = vmul.f32 %v598_v41, %v3740_v52 }
 0x21a   :  { %v610_v44 = vsel %vm117_vm7, %v604_v47, %v608_v29  ;;  %v612_v16 = vsel %vm117_vm7, %v608_v29, %v604_v47  ;;  %v629_v25 = vsel %vm3713_vm5, %v627_v43, 0.0  ;;  %v630_v55 = vsel %vm3717_vm6, %v625_v54, 0.0 }
 0x21b   :  { %v609_v6 = vsel %vm117_vm7, %v602_v51, %v606_v48  ;;  %v611_v47 = vsel %vm117_vm7, %v606_v48, %v602_v51  ;;  %v673_v23 = vadd.f32 %v669_v19, %v665_v0  ;;  %v674_v32 = vadd.f32 %v670_v58, %v666_v21  ;;  %v652_v21 = vpop.permute.xlu2 %651 }
 0x21c   :  { %v615_v41 = vsel %vm3730_vm8, %v610_v44, 0.0  ;;  %v616_v54 = vsel %vm3734_vm9, %v612_v16, 0.0  ;;  %v685_v48 = vmul.f32 %v629_v25, %v3793_v27  ;;  %v686_v51 = vmul.f32 %v630_v55, %v3793_v27 }
 0x21d   :  { %v613_v43 = vsel %vm3730_vm8, %v609_v6, 0.0  ;;  %v614_v0 = vsel %vm3734_vm9, %v611_v47, 0.0  ;;  %v694_v44 = vmul.f32 %v4240_v8, %v3796_v28  ;;  %v717_v16 = vmul.f32 %v4266_v35, %v3815_v39 }
 0x21e   :  { %v574_v20 = vpop.permute.xlu0 %573  ;;  %v570_v11 = vpop.permute.xlu1 %569  ;;  %v701_v6 = vmul.f32 %v613_v43, %v3846_v14  ;;  %v702_v47 = vmul.f32 %v614_v0, %v3846_v14 }
 0x21f   :  { %v577_v37 = vsel %vm117_vm7, %v570_v11, %v574_v20  ;;  %v579_v38 = vsel %vm117_vm7, %v574_v20, %v570_v11  ;;  %v693_v20 = vmul.f32 %v4237_v4, %v3796_v28  ;;  %v718_v11 = vmul.f32 %v4270_v53, %v3815_v39 }
 0x220   :  { %v581_v29 = vsel %vm3730_vm8, %v577_v37, 0.0  ;;  %v582_v10 = vsel %vm3734_vm9, %v579_v38, 0.0  ;;  %v703_v37 = vmul.f32 %v615_v41, %v3846_v14  ;;  %v704_v38 = vmul.f32 %v616_v54, %v3846_v14 }
 0x221   :  { %v677_v30 = vmul.f32 %v581_v29, %v3762_v62  ;;  %v678_v60 = vmul.f32 %v582_v10, %v3762_v62 }
 0x222   :  { %v707_v0 = vadd.f32 %v703_v37, %v699_v56 }
 0x223   :  { %v681_v19 = vadd.f32 %v677_v30, %v673_v23  ;;  %v682_v58 = vadd.f32 %v678_v60, %v674_v32  ;;  %v640_v56 = vpop.permute.xlu2 %639 }
 0x225   :  { %v689_v25 = vadd.f32 %v685_v48, %v681_v19  ;;  %v690_v55 = vadd.f32 %v686_v51, %v682_v58  ;;  %v708_v19 = vadd.f32 %v704_v38, %v700_v9 }
 0x226   :  { %v654_v29 = vpop.permute.xlu0 %653  ;;  %v656_v10 = vpop.permute.xlu1 %655 }
 0x227   :  { %v657_v23 = vsel %vm134_vm4, %v650_v2, %v654_v29  ;;  %v659_v35 = vsel %vm134_vm4, %v654_v29, %v650_v2  ;;  %v697_v32 = vadd.f32 %v693_v20, %v689_v25  ;;  %v698_v53 = vadd.f32 %v694_v44, %v690_v55 }
 0x228   :  { %v661_v30 = vsel %vm3713_vm5, %v659_v35, 0.0  ;;  %v662_v60 = vsel %vm3717_vm6, %v657_v23, 0.0  ;;  %v658_v41 = vsel %vm134_vm4, %v652_v21, %v656_v10  ;;  %v660_v54 = vsel %vm134_vm4, %v656_v10, %v652_v21 }
 0x229   :  { %v705_v48 = vadd.f32 %v701_v6, %v697_v32  ;;  %v706_v51 = vadd.f32 %v702_v47, %v698_v53  ;;  %v709_v43 = vmul.f32 %v661_v30, %v3863_v33  ;;  %v710_v2 = vmul.f32 %v662_v60, %v3863_v33 }
 0x22a   :  { %v663_v58 = vsel %vm3713_vm5, %v660_v54, 0.0  ;;  %v664_v20 = vsel %vm3717_vm6, %v658_v41, 0.0  ;;  %v719_v6 = vmul.f32 %v4318_v40, %v3815_v39  ;;  %v720_v47 = vmul.f32 %v4312_v26, %v3815_v39 }
 0x22b   :  { %v713_v44 = vadd.f32 %v709_v43, %v705_v48  ;;  %v714_v25 = vadd.f32 %v710_v2, %v706_v51  ;;  %v711_v55 = vmul.f32 %v663_v58, %v3863_v33  ;;  %v712_v21 = vmul.f32 %v664_v20, %v3863_v33 }
 0x22d   :  { %v715_v9 = vadd.f32 %v711_v55, %v707_v0  ;;  %v716_v37 = vadd.f32 %v712_v21, %v708_v19  ;;  %v722_v38 = vadd.f32 %v718_v11, %v714_v25  ;;  %v721_v29 = vadd.f32 %v717_v16, %v713_v44 }
 0x22e   :  { %v636_v10 = vpop.permute.xlu0 %635  ;;  %v638_v23 = vpop.permute.xlu1 %637 }
 0x22f   :  { %v642_v35 = vsel %vm117_vm7, %v636_v10, %v640_v56  ;;  %v644_v32 = vsel %vm117_vm7, %v640_v56, %v636_v10  ;;  %v723_v53 = vadd.f32 %v719_v6, %v715_v9  ;;  %v724_v30 = vadd.f32 %v720_v47, %v716_v37 }
 0x230   :  { %v647_v40 = vsel %vm3730_vm8, %v642_v35, 0.0  ;;  %v648_v26 = vsel %vm3734_vm9, %v644_v32, 0.0  ;;  %v641_v16 = vsel %vm117_vm7, %v4370_v61, %v638_v23  ;;  %v643_v11 = vsel %vm117_vm7, %v638_v23, %v4370_v61 }
 0x231   :  { %v727_v60 = vmul.f32 %v647_v40, %v3889_v7  ;;  %v728_v41 = vmul.f32 %v648_v26, %v3889_v7  ;;  %v645_v54 = vsel %vm3730_vm8, %v641_v16, 0.0  ;;  %v646_v48 = vsel %vm3734_vm9, %v643_v11, 0.0 }
 0x232   :  { %v725_v51 = vmul.f32 %v645_v54, %v3889_v7  ;;  %v726_v43 = vmul.f32 %v646_v48, %v3889_v7 }
 0x233   :  { %v731_v2 = vadd.f32 %v727_v60, %v723_v53  ;;  %v732_v0 = vadd.f32 %v728_v41, %v724_v30 }
 0x234   :  { %v729_v19 = vadd.f32 %v725_v51, %v721_v29  ;;  %v730_v58 = vadd.f32 %v726_v43, %v722_v38 }
 0x235   :  { %v735_v61 = vadd.f32 %v731_v2, %v3909_v22  ;;  %v736_v20 = vadd.f32 %v732_v0, %v3909_v22 }
 0x236   :  { %v733_v44 = vadd.f32 %v729_v19, %v3909_v22  ;;  %v734_v25 = vadd.f32 %v730_v58, %v3909_v22 }
 0x237   :  { %v739_v55 = vmul.f32 0.2, %v735_v61  ;;  %v740_v21 = vmul.f32 0.2, %v736_v20 }
 0x238   :  { %v737_v6 = vmul.f32 0.2, %v733_v44  ;;  %v738_v47 = vmul.f32 0.2, %v734_v25 }
 0x239   :  { %v4480_v56 = vmax.f32 %v735_v61, %v739_v55  ;;  %v4482_v9 = vmax.f32 %v736_v20, %v740_v21 }
 0x23a   :  { %v4484_v37 = vmax.f32 %v733_v44, %v737_v6  ;;  %v4486_v29 = vmax.f32 %v734_v25, %v738_v47 }
 0x23b   :  { %803 = vrot.lane.b32.xlu1 %v4480_v56, %s3542_s1  ;;  %819 = vrot.lane.b32.xlu0 %v4480_v56, %s3541_s6  ;;  %v759_v38 = vrot.slane %v4480_v56, 7  ;;  %v760_v10 = vrot.slane %v4482_v9, 7  ;;  %v747_v23 = vrot.slane %v4480_v56, 1  ;;  %v748_v35 = vrot.slane %v4482_v9, 1 }
 0x23c   :  { %823 = vrot.lane.b32.xlu2 %v4482_v9, %s3541_s6  ;;  %v757_v32 = vrot.slane %v4484_v37, 7  ;;  %v758_v53 = vrot.slane %v4486_v29, 7  ;;  %v745_v30 = vrot.slane %v4484_v37, 1  ;;  %v746_v40 = vrot.slane %v4486_v29, 1 }
 0x23e   :  { %v761_v26 = vsel %vm100_vm0, %v757_v32, %v759_v38  ;;  %v762_v16 = vsel %vm100_vm0, %v758_v53, %v760_v10  ;;  %v763_v11 = vsel %vm100_vm0, %v759_v38, %v757_v32  ;;  %v764_v60 = vsel %vm100_vm0, %v760_v10, %v758_v53 }
 0x23f   :  { %v4512_v41 = vsel %vm87_vm2, %v745_v30, %v747_v23  ;;  %v4516_v54 = vsel %vm87_vm2, %v746_v40, %v748_v35  ;;  %v751_v48 = vsel %vm87_vm2, %v747_v23, %v745_v30  ;;  %v752_v51 = vsel %vm87_vm2, %v748_v35, %v746_v40 }
 0x240   :  { %v4538_v43 = vsel %vm73_vm1, %v763_v11, 0.0  ;;  %v4544_v2 = vsel %vm73_vm1, %v764_v60, 0.0  ;;  %v4558_v0 = vsel %vm72_vm3, %v752_v51, 0.0  ;;  %v4564_v19 = vsel %vm72_vm3, %v751_v48, 0.0 }
 0x243   :  { %807 = vrot.lane.b32.xlu0 %v4482_v9, %s3542_s1  ;;  %821 = vrot.lane.b32.xlu1 %v4486_v29, %s3541_s6 }
 0x244   :  { %817 = vrot.lane.b32.xlu2 %v4484_v37, %s3541_s6 }
 0x24b   :  { %801 = vrot.lane.b32.xlu0 %v4484_v37, %s3542_s1  ;;  %787 = vrot.lane.b32.xlu1 %v761_v26, %s3541_s6 }
 0x24c   :  { %805 = vrot.lane.b32.xlu2 %v4486_v29, %s3542_s1 }
 0x253   :  { %791 = vrot.lane.b32.xlu0 %v762_v16, %s3541_s6  ;;  %775 = vrot.lane.b32.xlu1 %v762_v16, %s3542_s1 }
 0x254   :  { %771 = vrot.lane.b32.xlu2 %v761_v26, %s3542_s1 }
 0x25b   :  { %785 = vrot.lane.b32.xlu0 %v4538_v43, %s3541_s6  ;;  %849 = vrot.lane.b32.xlu1 %v4512_v41, %s3541_s6 }
 0x25c   :  { %789 = vrot.lane.b32.xlu2 %v4544_v2, %s3541_s6 }
 0x263   :  { %773 = vrot.lane.b32.xlu0 %v4544_v2, %s3542_s1  ;;  %769 = vrot.lane.b32.xlu1 %v4538_v43, %s3542_s1 }
 0x264   :  { %833 = vrot.lane.b32.xlu2 %v4512_v41, %s3542_s1 }
 0x26b   :  { %853 = vrot.lane.b32.xlu0 %v4516_v54, %s3541_s6  ;;  %855 = vrot.lane.b32.xlu1 %v4558_v0, %s3541_s6 }
 0x26c   :  { %851 = vrot.lane.b32.xlu2 %v4564_v19, %s3541_s6 }
 0x273   :  { %835 = vrot.lane.b32.xlu0 %v4564_v19, %s3542_s1  ;;  %837 = vrot.lane.b32.xlu1 %v4516_v54, %s3542_s1 }
 0x274   :  { %839 = vrot.lane.b32.xlu2 %v4558_v0, %s3542_s1 }
 0x296   :  { %v824_v58 = vpop.permute.xlu2 %823 }
 0x29e   :  { %v818_v61 = vpop.permute.xlu2 %817 }
 0x2a6   :  { %v806_v25 = vpop.permute.xlu2 %805 }
 0x2ad   :  { %v820_v20 = vpop.permute.xlu0 %819  ;;  %v804_v44 = vpop.permute.xlu1 %803 }
 0x2ae   :  { %v772_v6 = vpop.permute.xlu2 %771  ;;  %v826_v10 = vsel %vm134_vm4, %v820_v20, %v824_v58  ;;  %v828_v23 = vsel %vm134_vm4, %v824_v58, %v820_v20 }
 0x2b5   :  { %v808_v55 = vpop.permute.xlu0 %807  ;;  %v822_v21 = vpop.permute.xlu1 %821 }
 0x2b6   :  { %v790_v53 = vpop.permute.xlu2 %789 }
 0x2bd   :  { %v802_v47 = vpop.permute.xlu0 %801  ;;  %v788_v38 = vpop.permute.xlu1 %787 }
 0x2c5   :  { %v792_v35 = vpop.permute.xlu0 %791  ;;  %v776_v32 = vpop.permute.xlu1 %775 }
 0x2c6   :  { %v794_v30 = vsel %vm134_vm4, %v788_v38, %v792_v35  ;;  %v796_v40 = vsel %vm134_vm4, %v792_v35, %v788_v38  ;;  %v778_v11 = vsel %vm117_vm7, %v772_v6, %v776_v32  ;;  %v780_v60 = vsel %vm117_vm7, %v776_v32, %v772_v6 }
 0x2c7   :  { %v799_v48 = vsel %vm3713_vm5, %v796_v40, 0.0  ;;  %v800_v51 = vsel %vm3717_vm6, %v794_v30, 0.0  ;;  %v783_v58 = vsel %vm3730_vm8, %v778_v11, 0.0  ;;  %v784_v20 = vsel %vm3734_vm9, %v780_v60, 0.0 }
 0x2c8   :  { %v871_v38 = vmul.f32 %v761_v26, %v4031_v24  ;;  %v872_v35 = vmul.f32 %v762_v16, %v4031_v24  ;;  %v867_v22 = vmul.f32 %v799_v48, %v4037_v31  ;;  %v868_v6 = vmul.f32 %v800_v51, %v4037_v31 }
 0x2c9   :  { %v831_v32 = vsel %vm3713_vm5, %v828_v23, 0.0  ;;  %v832_v30 = vsel %vm3717_vm6, %v826_v10, 0.0  ;;  %v879_v11 = vmul.f32 %v783_v58, %v4039_v36  ;;  %v880_v60 = vmul.f32 %v784_v20, %v4039_v36 }
 0x2ca   :  { %v875_v40 = vadd.f32 %v871_v38, %v867_v22  ;;  %v876_v7 = vadd.f32 %v872_v35, %v868_v6  ;;  %v887_v26 = vmul.f32 %v831_v32, %v4063_v57  ;;  %v888_v16 = vmul.f32 %v832_v30, %v4063_v57  ;;  %v4616_v35 = vpop.permute.xlu2 %833 }
 0x2cb   :  { %v895_v23 = vmul.f32 %v4480_v56, %v4069_v5  ;;  %v896_v10 = vmul.f32 %v4482_v9, %v4069_v5  ;;  %v827_v9 = vsel %vm134_vm4, %v822_v21, %v818_v61 }
 0x2cc   :  { %v883_v33 = vadd.f32 %v879_v11, %v875_v40  ;;  %v884_v48 = vadd.f32 %v880_v60, %v876_v7  ;;  %v870_v40 = vmul.f32 %v4544_v2, %v4031_v24  ;;  %v810_v11 = vsel %vm117_vm7, %v804_v44, %v808_v55 }
 0x2cd   :  { %v786_v14 = vpop.permute.xlu0 %785  ;;  %v850_v51 = vpop.permute.xlu1 %849  ;;  %v812_v60 = vsel %vm117_vm7, %v808_v55, %v804_v44  ;;  %v811_v44 = vsel %vm117_vm7, %v806_v25, %v802_v47 }
 0x2ce   :  { %v891_v22 = vadd.f32 %v887_v26, %v883_v33  ;;  %v892_v38 = vadd.f32 %v888_v16, %v884_v48  ;;  %v793_v58 = vsel %vm134_vm4, %v786_v14, %v790_v53  ;;  %v795_v20 = vsel %vm134_vm4, %v790_v53, %v786_v14 }
 0x2cf   :  { %v797_v32 = vsel %vm3713_vm5, %v795_v20, 0.0  ;;  %v798_v56 = vsel %vm3717_vm6, %v793_v58, 0.0  ;;  %v825_v33 = vsel %vm134_vm4, %v818_v61, %v822_v21  ;;  %v869_v53 = vmul.f32 %v4538_v43, %v4031_v24 }
 0x2d0   :  { %v899_v6 = vadd.f32 %v895_v23, %v891_v22  ;;  %v900_v7 = vadd.f32 %v896_v10, %v892_v38  ;;  %v865_v30 = vmul.f32 %v797_v32, %v4037_v31  ;;  %v866_v14 = vmul.f32 %v798_v56, %v4037_v31 }
 0x2d1   :  { %v829_v61 = vsel %vm3713_vm5, %v827_v9, 0.0  ;;  %v830_v21 = vsel %vm3717_vm6, %v825_v33, 0.0  ;;  %v809_v48 = vsel %vm117_vm7, %v802_v47, %v806_v25  ;;  %v815_v20 = vsel %vm3730_vm8, %v810_v11, 0.0 }
 0x2d2   :  { %v873_v10 = vadd.f32 %v869_v53, %v865_v30  ;;  %v874_v22 = vadd.f32 %v870_v40, %v866_v14  ;;  %v816_v32 = vsel %vm3734_vm9, %v812_v60, 0.0  ;;  %v885_v25 = vmul.f32 %v829_v61, %v4063_v57  ;;  %v852_v9 = vpop.permute.xlu2 %851 }
 0x2d3   :  { %v886_v47 = vmul.f32 %v830_v21, %v4063_v57  ;;  %v813_v56 = vsel %vm3730_vm8, %v809_v48, 0.0  ;;  %v814_v33 = vsel %vm3734_vm9, %v811_v44, 0.0  ;;  %v893_v53 = vmul.f32 %v4484_v37, %v4069_v5 }
 0x2d4   :  { %v894_v40 = vmul.f32 %v4486_v29, %v4069_v5  ;;  %v917_v11 = vmul.f32 %v4512_v41, %v4101_v59  ;;  %v918_v60 = vmul.f32 %v4516_v54, %v4101_v59  ;;  %v903_v61 = vmul.f32 %v815_v20, %v4107_v3 }
 0x2d5   :  { %v774_v26 = vpop.permute.xlu0 %773  ;;  %v770_v16 = vpop.permute.xlu1 %769  ;;  %v904_v21 = vmul.f32 %v816_v32, %v4107_v3 }
 0x2d6   :  { %v777_v43 = vsel %vm117_vm7, %v770_v16, %v774_v26  ;;  %v779_v2 = vsel %vm117_vm7, %v774_v26, %v770_v16  ;;  %v907_v32 = vadd.f32 %v903_v61, %v899_v6 }
 0x2d7   :  { %v781_v55 = vsel %vm3730_vm8, %v777_v43, 0.0  ;;  %v782_v23 = vsel %vm3734_vm9, %v779_v2, 0.0  ;;  %v901_v43 = vmul.f32 %v813_v56, %v4107_v3  ;;  %v902_v2 = vmul.f32 %v814_v33, %v4107_v3 }
 0x2d8   :  { %v877_v38 = vmul.f32 %v781_v55, %v4039_v36  ;;  %v878_v58 = vmul.f32 %v782_v23, %v4039_v36 }
 0x2da   :  { %v881_v30 = vadd.f32 %v877_v38, %v873_v10  ;;  %v882_v14 = vadd.f32 %v878_v58, %v874_v22  ;;  %v840_v6 = vpop.permute.xlu2 %839 }
 0x2dc   :  { %v889_v26 = vadd.f32 %v885_v25, %v881_v30  ;;  %v890_v16 = vadd.f32 %v886_v47, %v882_v14  ;;  %v908_v25 = vadd.f32 %v904_v21, %v900_v7 }
 0x2dd   :  { %v854_v37 = vpop.permute.xlu0 %853  ;;  %v856_v48 = vpop.permute.xlu1 %855 }
 0x2de   :  { %v857_v29 = vsel %vm134_vm4, %v850_v51, %v854_v37  ;;  %v859_v41 = vsel %vm134_vm4, %v854_v37, %v850_v51  ;;  %v897_v44 = vadd.f32 %v893_v53, %v889_v26  ;;  %v898_v54 = vadd.f32 %v894_v40, %v890_v16 }
 0x2df   :  { %v861_v55 = vsel %vm3713_vm5, %v859_v41, 0.0  ;;  %v862_v23 = vsel %vm3717_vm6, %v857_v29, 0.0  ;;  %v858_v10 = vsel %vm134_vm4, %v852_v9, %v856_v48  ;;  %v860_v22 = vsel %vm134_vm4, %v856_v48, %v852_v9 }
 0x2e0   :  { %v905_v38 = vadd.f32 %v901_v43, %v897_v44  ;;  %v906_v58 = vadd.f32 %v902_v2, %v898_v54  ;;  %v909_v20 = vmul.f32 %v861_v55, %v4164_v63  ;;  %v910_v51 = vmul.f32 %v862_v23, %v4164_v63 }
 0x2e1   :  { %v863_v47 = vsel %vm3713_vm5, %v860_v22, 0.0  ;;  %v864_v56 = vsel %vm3717_vm6, %v858_v10, 0.0  ;;  %v919_v53 = vmul.f32 %v4564_v19, %v4101_v59  ;;  %v920_v40 = vmul.f32 %v4558_v0, %v4101_v59 }
 0x2e2   :  { %v913_v33 = vadd.f32 %v909_v20, %v905_v38  ;;  %v914_v30 = vadd.f32 %v910_v51, %v906_v58  ;;  %v911_v14 = vmul.f32 %v863_v47, %v4164_v63  ;;  %v912_v9 = vmul.f32 %v864_v56, %v4164_v63 }
 0x2e4   :  { %v915_v7 = vadd.f32 %v911_v14, %v907_v32  ;;  %v916_v26 = vadd.f32 %v912_v9, %v908_v25  ;;  %v922_v16 = vadd.f32 %v918_v60, %v914_v30  ;;  %v921_v61 = vadd.f32 %v917_v11, %v913_v33 }
 0x2e5   :  { %v836_v21 = vpop.permute.xlu0 %835  ;;  %v838_v43 = vpop.permute.xlu1 %837 }
 0x2e6   :  { %v842_v2 = vsel %vm117_vm7, %v836_v21, %v840_v6  ;;  %v844_v37 = vsel %vm117_vm7, %v840_v6, %v836_v21  ;;  %v923_v48 = vadd.f32 %v919_v53, %v915_v7  ;;  %v924_v29 = vadd.f32 %v920_v40, %v916_v26  ;;  %v5487_v6 = vld [vmem:[#allocation16_spill] sm:$0xff]  ;;  %v5488_v21 = vld [vmem:[#allocation17_spill] sm:$0xff] }
 0x2e7   :  { %v847_v19 = vsel %vm3730_vm8, %v842_v2, 0.0  ;;  %v848_v0 = vsel %vm3734_vm9, %v844_v37, 0.0  ;;  %v841_v11 = vsel %vm117_vm7, %v4616_v35, %v838_v43  ;;  %v843_v60 = vsel %vm117_vm7, %v838_v43, %v4616_v35 }
 0x2e8   :  { %v927_v41 = vmul.f32 %v847_v19, %v4192_v12  ;;  %v928_v44 = vmul.f32 %v848_v0, %v4192_v12  ;;  %v845_v54 = vsel %vm3730_vm8, %v841_v11, 0.0  ;;  %v846_v55 = vsel %vm3734_vm9, %v843_v60, 0.0 }
 0x2e9   :  { %v925_v23 = vmul.f32 %v845_v54, %v4192_v12  ;;  %v926_v10 = vmul.f32 %v846_v55, %v4192_v12 }
 0x2ea   :  { %v931_v22 = vadd.f32 %v927_v41, %v923_v48  ;;  %v932_v38 = vadd.f32 %v928_v44, %v924_v29 }
 0x2eb   :  { %v929_v58 = vadd.f32 %v925_v23, %v921_v61  ;;  %v930_v20 = vadd.f32 %v926_v10, %v922_v16 }
 0x2ec   :  { %v935_v35 = vadd.f32 %v931_v22, %v4214_v15  ;;  %v936_v51 = vadd.f32 %v932_v38, %v4214_v15  ;;  %v540_v38 = vstv %s2766_s2 }
 0x2ed   :  { %v933_v32 = vadd.f32 %v929_v58, %v4214_v15  ;;  %v934_v25 = vadd.f32 %v930_v20, %v4214_v15  ;;  %v954_v58 = vstv %s2767_s28 }
 0x2ee   :  { %v939_v47 = vmul.f32 0.2, %v935_v35  ;;  %v940_v56 = vmul.f32 0.2, %v936_v51 }
 0x2ef   :  { %v937_v33 = vmul.f32 0.2, %v933_v32  ;;  %v938_v30 = vmul.f32 0.2, %v934_v25 }
 0x2f0   :  { %v943_v14 = vmax.f32 %v935_v35, %v939_v47  ;;  %v944_v9 = vmax.f32 %v936_v51, %v940_v56  ;;  %v544_v47 = vmul.f32 %v540_v38, %v4234_v17 }
 0x2f1   :  { %v941_v53 = vmax.f32 %v933_v32, %v937_v33  ;;  %v942_v40 = vmax.f32 %v934_v25, %v938_v30  ;;  %v543_v25 = vmul.f32 %v540_v38, %v4231_v13  ;;  %v542_v30 = vmul.f32 %v540_v38, %v4240_v8 }
 0x2f2   :  { %v947_v7 = vmul.f32 %v943_v14, %v5487_v6  ;;  %v948_v26 = vmul.f32 %v944_v9, %v5487_v6  ;;  %v541_v9 = vmul.f32 %v540_v38, %v4237_v4 }
 0x2f3   :  { %v945_v16 = vmul.f32 %v941_v53, %v5487_v6  ;;  %v946_v61 = vmul.f32 %v942_v40, %v5487_v6 }
 0x2f4   :  { %v4731_v43 = vadd.f32 %v947_v7, %v5488_v21  ;;  %v4734_v2 = vadd.f32 %v948_v26, %v5488_v21 }
 0x2f5   :  { %v4737_v37 = vadd.f32 %v945_v16, %v5488_v21  ;;  %v4740_v48 = vadd.f32 %v946_v61, %v5488_v21 }
 0x2f6   :  { %1021 = vrot.lane.b32.xlu1 %v4731_v43, %s3542_s1  ;;  %1037 = vrot.lane.b32.xlu0 %v4731_v43, %s3541_s6  ;;  %v977_v29 = vrot.slane %v4731_v43, 7  ;;  %v978_v19 = vrot.slane %v4734_v2, 7  ;;  %v965_v0 = vrot.slane %v4731_v43, 1  ;;  %v966_v11 = vrot.slane %v4734_v2, 1 }
 0x2f7   :  { %1041 = vrot.lane.b32.xlu2 %v4734_v2, %s3541_s6  ;;  %v975_v60 = vrot.slane %v4737_v37, 7  ;;  %v976_v41 = vrot.slane %v4740_v48, 7  ;;  %v963_v44 = vrot.slane %v4737_v37, 1  ;;  %v964_v54 = vrot.slane %v4740_v48, 1 }
 0x2f8   :  { %v957_v56 = vmul.f32 %v954_v58, %v4731_v43  ;;  %v958_v33 = vmul.f32 %v954_v58, %v4734_v2  ;;  %v956_v14 = vmul.f32 %v954_v58, %v4740_v48  ;;  %v955_v53 = vmul.f32 %v954_v58, %v4737_v37 }
 0x2f9   :  { %v4758_v55 = vsel %vm100_vm0, %v975_v60, %v977_v29  ;;  %v4762_v23 = vsel %vm100_vm0, %v976_v41, %v978_v19  ;;  %v981_v10 = vsel %vm100_vm0, %v977_v29, %v975_v60  ;;  %v982_v22 = vsel %vm100_vm0, %v978_v19, %v976_v41 }
 0x2fa   :  { %v4770_v20 = vsel %vm87_vm2, %v963_v44, %v965_v0  ;;  %v4774_v35 = vsel %vm87_vm2, %v964_v54, %v966_v11  ;;  %v969_v51 = vsel %vm87_vm2, %v965_v0, %v963_v44  ;;  %v970_v32 = vsel %vm87_vm2, %v966_v11, %v964_v54 }
 0x2fb   :  { %v4792_v13 = vadd.f32 %v957_v56, %v543_v25  ;;  %v4794_v17 = vadd.f32 %v958_v33, %v544_v47  ;;  %v4798_v40 = vadd.f32 %v956_v14, %v542_v30  ;;  %v4800_v7 = vadd.f32 %v955_v53, %v541_v9 }
 0x2fc   :  { %v4816_v4 = vsel %vm73_vm1, %v981_v10, 0.0  ;;  %v4822_v8 = vsel %vm73_vm1, %v982_v22, 0.0  ;;  %v4836_v26 = vsel %vm72_vm3, %v970_v32, 0.0  ;;  %v4842_v16 = vsel %vm72_vm3, %v969_v51, 0.0 }
 0x2fd   :  { %5489 = vst [vmem:[#allocation18_spill] sm:$0xff] %v4792_v13 }
 0x2fe   :  { %1025 = vrot.lane.b32.xlu0 %v4734_v2, %s3542_s1  ;;  %1039 = vrot.lane.b32.xlu1 %v4740_v48, %s3541_s6  ;;  %5490 = vst [vmem:[#allocation19_spill] sm:$0xff] %v4794_v17  ;;  %v3230_v17 = vld [vmem:[#allocation4 + $0x3a8] sm:$0xf0] }
 0x2ff   :  { %1035 = vrot.lane.b32.xlu2 %v4737_v37, %s3541_s6  ;;  %5491 = vst [vmem:[#allocation20_spill] sm:$0xff] %v4798_v40 }
 0x300   :  { %5492 = vst [vmem:[#allocation21_spill] sm:$0xff] %v4800_v7 }
 0x306   :  { %1019 = vrot.lane.b32.xlu0 %v4737_v37, %s3542_s1  ;;  %1005 = vrot.lane.b32.xlu1 %v4758_v55, %s3541_s6 }
 0x307   :  { %1023 = vrot.lane.b32.xlu2 %v4740_v48, %s3542_s1 }
 0x30e   :  { %1009 = vrot.lane.b32.xlu0 %v4762_v23, %s3541_s6  ;;  %993 = vrot.lane.b32.xlu1 %v4762_v23, %s3542_s1 }
 0x30f   :  { %989 = vrot.lane.b32.xlu2 %v4758_v55, %s3542_s1 }
 0x316   :  { %1003 = vrot.lane.b32.xlu0 %v4816_v4, %s3541_s6  ;;  %1067 = vrot.lane.b32.xlu1 %v4770_v20, %s3541_s6 }
 0x317   :  { %1007 = vrot.lane.b32.xlu2 %v4822_v8, %s3541_s6 }
 0x31e   :  { %991 = vrot.lane.b32.xlu0 %v4822_v8, %s3542_s1  ;;  %987 = vrot.lane.b32.xlu1 %v4816_v4, %s3542_s1 }
 0x31f   :  { %1051 = vrot.lane.b32.xlu2 %v4770_v20, %s3542_s1 }
 0x326   :  { %1071 = vrot.lane.b32.xlu0 %v4774_v35, %s3541_s6  ;;  %1073 = vrot.lane.b32.xlu1 %v4836_v26, %s3541_s6 }
 0x327   :  { %1069 = vrot.lane.b32.xlu2 %v4842_v16, %s3541_s6 }
 0x32e   :  { %1053 = vrot.lane.b32.xlu0 %v4842_v16, %s3542_s1  ;;  %1055 = vrot.lane.b32.xlu1 %v4774_v35, %s3542_s1 }
 0x32f   :  { %1057 = vrot.lane.b32.xlu2 %v4836_v26, %s3542_s1 }
 0x351   :  { %v1042_v61 = vpop.permute.xlu2 %1041 }
 0x359   :  { %v1036_v29 = vpop.permute.xlu2 %1035 }
 0x361   :  { %v1024_v11 = vpop.permute.xlu2 %1023 }
 0x368   :  { %v1038_v19 = vpop.permute.xlu0 %1037  ;;  %v1022_v0 = vpop.permute.xlu1 %1021 }
 0x369   :  { %v990_v44 = vpop.permute.xlu2 %989  ;;  %v1044_v22 = vsel %vm134_vm4, %v1038_v19, %v1042_v61  ;;  %v1046_v38 = vsel %vm134_vm4, %v1042_v61, %v1038_v19  ;;  %v1089_v61 = vmul.f32 %v4758_v55, %v3709_v42  ;;  %v1090_v19 = vmul.f32 %v4762_v23, %v3709_v42 }
 0x370   :  { %v1026_v60 = vpop.permute.xlu0 %1025  ;;  %v1040_v41 = vpop.permute.xlu1 %1039 }
 0x371   :  { %v1008_v32 = vpop.permute.xlu2 %1007 }
 0x378   :  { %v1020_v54 = vpop.permute.xlu0 %1019  ;;  %v1006_v10 = vpop.permute.xlu1 %1005 }
 0x380   :  { %v1010_v58 = vpop.permute.xlu0 %1009  ;;  %v994_v51 = vpop.permute.xlu1 %993 }
 0x381   :  { %v1012_v25 = vsel %vm134_vm4, %v1006_v10, %v1010_v58  ;;  %v1014_v47 = vsel %vm134_vm4, %v1010_v58, %v1006_v10  ;;  %v996_v56 = vsel %vm117_vm7, %v990_v44, %v994_v51  ;;  %v998_v33 = vsel %vm117_vm7, %v994_v51, %v990_v44 }
 0x382   :  { %v1017_v30 = vsel %vm3713_vm5, %v1014_v47, 0.0  ;;  %v1018_v14 = vsel %vm3717_vm6, %v1012_v25, 0.0  ;;  %v1001_v9 = vsel %vm3730_vm8, %v996_v56, 0.0  ;;  %v1002_v53 = vsel %vm3734_vm9, %v998_v33, 0.0 }
 0x383   :  { %v1085_v44 = vmul.f32 %v1017_v30, %v3740_v52  ;;  %v1086_v10 = vmul.f32 %v1018_v14, %v3740_v52  ;;  %v1049_v58 = vsel %vm3713_vm5, %v1046_v38, 0.0  ;;  %v1050_v51 = vsel %vm3717_vm6, %v1044_v22, 0.0 }
 0x384   :  { %v1097_v56 = vmul.f32 %v1001_v9, %v3762_v62  ;;  %v1098_v33 = vmul.f32 %v1002_v53, %v3762_v62  ;;  %v1105_v55 = vmul.f32 %v1049_v58, %v3793_v27  ;;  %v1106_v23 = vmul.f32 %v1050_v51, %v3793_v27 }
 0x385   :  { %v1093_v25 = vadd.f32 %v1089_v61, %v1085_v44  ;;  %v1094_v47 = vadd.f32 %v1090_v19, %v1086_v10  ;;  %v1113_v38 = vmul.f32 %v4731_v43, %v3796_v28  ;;  %v1114_v22 = vmul.f32 %v4734_v2, %v3796_v28  ;;  %v4896_v44 = vpop.permute.xlu2 %1051 }
 0x386   :  { %v1043_v2 = vsel %vm134_vm4, %v1036_v29, %v1040_v41 }
 0x387   :  { %v1101_v40 = vadd.f32 %v1097_v56, %v1093_v25  ;;  %v1102_v30 = vadd.f32 %v1098_v33, %v1094_v47  ;;  %v1088_v47 = vmul.f32 %v4822_v8, %v3709_v42  ;;  %v1028_v56 = vsel %vm117_vm7, %v1022_v0, %v1026_v60 }
 0x388   :  { %v1004_v7 = vpop.permute.xlu0 %1003  ;;  %v1068_v14 = vpop.permute.xlu1 %1067  ;;  %v1030_v33 = vsel %vm117_vm7, %v1026_v60, %v1022_v0  ;;  %v1027_v8 = vsel %vm117_vm7, %v1020_v54, %v1024_v11  ;;  %v1029_v0 = vsel %vm117_vm7, %v1024_v11, %v1020_v54 }
 0x389   :  { %v1109_v61 = vadd.f32 %v1105_v55, %v1101_v40  ;;  %v1110_v19 = vadd.f32 %v1106_v23, %v1102_v30  ;;  %v1011_v9 = vsel %vm134_vm4, %v1004_v7, %v1008_v32  ;;  %v1013_v53 = vsel %vm134_vm4, %v1008_v32, %v1004_v7 }
 0x38a   :  { %v1015_v51 = vsel %vm3713_vm5, %v1013_v53, 0.0  ;;  %v1016_v43 = vsel %vm3717_vm6, %v1011_v9, 0.0  ;;  %v1045_v40 = vsel %vm134_vm4, %v1040_v41, %v1036_v29  ;;  %v1087_v32 = vmul.f32 %v4816_v4, %v3709_v42 }
 0x38b   :  { %v1117_v10 = vadd.f32 %v1113_v38, %v1109_v61  ;;  %v1118_v58 = vadd.f32 %v1114_v22, %v1110_v19  ;;  %v1083_v25 = vmul.f32 %v1015_v51, %v3740_v52  ;;  %v1084_v7 = vmul.f32 %v1016_v43, %v3740_v52 }
 0x38c   :  { %v1047_v29 = vsel %vm3713_vm5, %v1045_v40, 0.0  ;;  %v1048_v52 = vsel %vm3717_vm6, %v1043_v2, 0.0  ;;  %v1033_v19 = vsel %vm3730_vm8, %v1028_v56, 0.0  ;;  %v1034_v9 = vsel %vm3734_vm9, %v1030_v33, 0.0  ;;  %v5493_v56 = vld [vmem:[#allocation11_spill] sm:$0xff] }
 0x38d   :  { %v1091_v30 = vadd.f32 %v1087_v32, %v1083_v25  ;;  %v1092_v38 = vadd.f32 %v1088_v47, %v1084_v7  ;;  %v1103_v11 = vmul.f32 %v1047_v29, %v3793_v27  ;;  %v1104_v54 = vmul.f32 %v1048_v52, %v3793_v27  ;;  %v1070_v43 = vpop.permute.xlu2 %1069 }
 0x38e   :  { %v1031_v53 = vsel %vm3730_vm8, %v1027_v8, 0.0  ;;  %v1032_v51 = vsel %vm3734_vm9, %v1029_v0, 0.0  ;;  %v1112_v25 = vmul.f32 %v4740_v48, %v3796_v28  ;;  %v1135_v7 = vmul.f32 %v4770_v20, %v3815_v39 }
 0x38f   :  { %v1136_v27 = vmul.f32 %v4774_v35, %v3815_v39  ;;  %v1121_v33 = vmul.f32 %v1033_v19, %v5493_v56  ;;  %v1120_v29 = vmul.f32 %v1032_v51, %v5493_v56 }
 0x390   :  { %v992_v55 = vpop.permute.xlu0 %991  ;;  %v988_v23 = vpop.permute.xlu1 %987 }
 0x391   :  { %v995_v4 = vsel %vm117_vm7, %v988_v23, %v992_v55  ;;  %v997_v42 = vsel %vm117_vm7, %v992_v55, %v988_v23  ;;  %v1122_v55 = vmul.f32 %v1034_v9, %v5493_v56  ;;  %v1119_v23 = vmul.f32 %v1031_v53, %v5493_v56 }
 0x392   :  { %v999_v60 = vsel %vm3730_vm8, %v995_v4, 0.0  ;;  %v1000_v41 = vsel %vm3734_vm9, %v997_v42, 0.0 }
 0x393   :  { %v1095_v22 = vmul.f32 %v999_v60, %v3762_v62  ;;  %v1096_v61 = vmul.f32 %v1000_v41, %v3762_v62  ;;  %v1111_v62 = vmul.f32 %v4737_v37, %v3796_v28 }
 0x395   :  { %v1099_v2 = vadd.f32 %v1095_v22, %v1091_v30  ;;  %v1100_v40 = vadd.f32 %v1096_v61, %v1092_v38  ;;  %v5494_v30 = vld [vmem:[#allocation12_spill] sm:$0xff]  ;;  %v1125_v22 = vadd.f32 %v1121_v33, %v1117_v10  ;;  %v1126_v61 = vadd.f32 %v1122_v55, %v1118_v58  ;;  %v1058_v10 = vpop.permute.xlu2 %1057 }
 0x397   :  { %v1107_v32 = vadd.f32 %v1103_v11, %v1099_v2  ;;  %v1108_v47 = vadd.f32 %v1104_v54, %v1100_v40  ;;  %v1138_v2 = vmul.f32 %v4836_v26, %v3815_v39 }
 0x398   :  { %v1072_v37 = vpop.permute.xlu0 %1071  ;;  %v1074_v52 = vpop.permute.xlu1 %1073 }
 0x399   :  { %v1075_v28 = vsel %vm134_vm4, %v1068_v14, %v1072_v37  ;;  %v1077_v48 = vsel %vm134_vm4, %v1072_v37, %v1068_v14  ;;  %v1115_v20 = vadd.f32 %v1111_v62, %v1107_v32  ;;  %v1116_v35 = vadd.f32 %v1112_v25, %v1108_v47 }
 0x39a   :  { %v1079_v4 = vsel %vm3713_vm5, %v1077_v48, 0.0  ;;  %v1080_v42 = vsel %vm3717_vm6, %v1075_v28, 0.0  ;;  %v1076_v8 = vsel %vm134_vm4, %v1070_v43, %v1074_v52  ;;  %v1078_v0 = vsel %vm134_vm4, %v1074_v52, %v1070_v43 }
 0x39b   :  { %v1123_v60 = vadd.f32 %v1119_v23, %v1115_v20  ;;  %v1124_v41 = vadd.f32 %v1120_v29, %v1116_v35  ;;  %v1127_v38 = vmul.f32 %v1079_v4, %v5494_v30  ;;  %v1128_v14 = vmul.f32 %v1080_v42, %v5494_v30 }
 0x39c   :  { %v1081_v19 = vsel %vm3713_vm5, %v1078_v0, 0.0  ;;  %v1082_v9 = vsel %vm3717_vm6, %v1076_v8, 0.0  ;;  %v1137_v43 = vmul.f32 %v4842_v16, %v3815_v39  ;;  %v5496_v0 = vld [vmem:[#allocation14_spill] sm:$0xff] }
 0x39d   :  { %v1131_v11 = vadd.f32 %v1127_v38, %v1123_v60  ;;  %v1132_v54 = vadd.f32 %v1128_v14, %v1124_v41  ;;  %v1129_v53 = vmul.f32 %v1081_v19, %v5494_v30  ;;  %v1130_v51 = vmul.f32 %v1082_v9, %v5494_v30 }
 0x39f   :  { %v1133_v58 = vadd.f32 %v1129_v53, %v1125_v22  ;;  %v1134_v40 = vadd.f32 %v1130_v51, %v1126_v61  ;;  %v1140_v62 = vadd.f32 %v1136_v27, %v1132_v54  ;;  %v1139_v25 = vadd.f32 %v1135_v7, %v1131_v11  ;;  %v5495_v27 = vld [vmem:[#allocation13_spill] sm:$0xff] }
 0x3a0   :  { %v1054_v32 = vpop.permute.xlu0 %1053  ;;  %v1056_v47 = vpop.permute.xlu1 %1055 }
 0x3a1   :  { %v1060_v56 = vsel %vm117_vm7, %v1054_v32, %v1058_v10  ;;  %v1062_v33 = vsel %vm117_vm7, %v1058_v10, %v1054_v32  ;;  %v1141_v55 = vadd.f32 %v1137_v43, %v1133_v58  ;;  %v1142_v23 = vadd.f32 %v1138_v2, %v1134_v40 }
 0x3a2   :  { %v1065_v16 = vsel %vm3730_vm8, %v1060_v56, 0.0  ;;  %v1066_v39 = vsel %vm3734_vm9, %v1062_v33, 0.0  ;;  %v1059_v26 = vsel %vm117_vm7, %v4896_v44, %v1056_v47  ;;  %v1061_v7 = vsel %vm117_vm7, %v1056_v47, %v4896_v44 }
 0x3a3   :  { %v1145_v29 = vmul.f32 %v1065_v16, %v5495_v27  ;;  %v1146_v37 = vmul.f32 %v1066_v39, %v5495_v27  ;;  %v1063_v52 = vsel %vm3730_vm8, %v1059_v26, 0.0  ;;  %v1064_v28 = vsel %vm3734_vm9, %v1061_v7, 0.0 }
 0x3a4   :  { %v1143_v48 = vmul.f32 %v1063_v52, %v5495_v27  ;;  %v1144_v20 = vmul.f32 %v1064_v28, %v5495_v27  ;;  %v3454_v28 = vld [vmem:[#allocation4 + $0x3dc] sm:$0xf0] }
 0x3a5   :  { %v1149_v35 = vadd.f32 %v1145_v29, %v1141_v55  ;;  %v1150_v4 = vadd.f32 %v1146_v37, %v1142_v23  ;;  %v3390_v29 = vld [vmem:[#allocation4 + $0x1dc] sm:$0xf0] }
 0x3a6   :  { %v1147_v42 = vadd.f32 %v1143_v48, %v1139_v25  ;;  %v1148_v8 = vadd.f32 %v1144_v20, %v1140_v62  ;;  %v3252_v37 = vld [vmem:[#allocation4 + $0x3c0] sm:$0xf]  ;;  %v2997_v52 = vor.u32 %v3390_v29, %v2996_v18  ;;  %v3386_v48 = vld [vmem:[#allocation4 + $0x1c4] sm:$0xf] }
 0x3a7   :  { %v1153_v44 = vadd.f32 %v1149_v35, %v5496_v0  ;;  %v1154_v60 = vadd.f32 %v1150_v4, %v5496_v0  ;;  %v2998_v20 = vld [vmem:[#allocation4 + $0x1e0] sm:$0xf0]  ;;  %v3253_v35 = vor.u32 %v3454_v28, %v3252_v37 }
 0x3a8   :  { %v1151_v41 = vadd.f32 %v1147_v42, %v5496_v0  ;;  %v1152_v30 = vadd.f32 %v1148_v8, %v5496_v0  ;;  %v3001_v4 = vor.u32 %v3386_v48, %v2998_v20  ;;  %v3450_v42 = vld [vmem:[#allocation4 + $0x3c4] sm:$0xf]  ;;  %2157 = vmatpush.bf16.msra.mxu0 %v2997_v52 }
 0x3a9   :  { %v1157_v38 = vmul.f32 0.2, %v1153_v44  ;;  %v1158_v14 = vmul.f32 0.2, %v1154_v60  ;;  %v3254_v8 = vld [vmem:[#allocation4 + $0x3e0] sm:$0xf0]  ;;  %2171 = vmatpush.bf16.msra.mxu1 %v3253_v35 }
 0x3aa   :  { %v1155_v22 = vmul.f32 0.2, %v1151_v41  ;;  %v1156_v61 = vmul.f32 0.2, %v1152_v30  ;;  %v3257_v0 = vor.u32 %v3450_v42, %v3254_v8  ;;  %2185 = vmatpush.bf16.msra.mxu2 %v3001_v4  ;;  %v3370_v18 = vld [vmem:[#allocation4 + $0x144] sm:$0xf] }
 0x3ab   :  { %v5006_v19 = vmax.f32 %v1153_v44, %v1157_v38  ;;  %v5008_v9 = vmax.f32 %v1154_v60, %v1158_v14  ;;  %v2964_v60 = vld [vmem:[#allocation4 + $0x180] sm:$0xf]  ;;  %v2934_v29 = vld [vmem:[#allocation4 + $0x160] sm:$0xf0] }
 0x3ac   :  { %v5010_v11 = vmax.f32 %v1151_v41, %v1155_v22  ;;  %v5012_v54 = vmax.f32 %v1152_v30, %v1156_v61  ;;  %2199 = vmatpush.bf16.msra.mxu3 %v3257_v0  ;;  %v3382_v41 = vld [vmem:[#allocation4 + $0x19c] sm:$0xf0]  ;;  %v3378_v22 = vld [vmem:[#allocation4 + $0x184] sm:$0xf]  ;;  %v2937_v52 = vor.u32 %v3370_v18, %v2934_v29 }
 0x3ad   :  { %1221 = vrot.lane.b32.xlu1 %v5006_v19, %s3542_s1  ;;  %1237 = vrot.lane.b32.xlu0 %v5006_v19, %s3541_s6  ;;  %v1177_v53 = vrot.slane %v5006_v19, 7  ;;  %v1178_v51 = vrot.slane %v5008_v9, 7  ;;  %v1165_v43 = vrot.slane %v5006_v19, 1  ;;  %v1166_v2 = vrot.slane %v5008_v9, 1  ;;  %v3220_v30 = vld [vmem:[#allocation4 + $0x380] sm:$0xf] }
 0x3ae   :  { %1241 = vrot.lane.b32.xlu2 %v5008_v9, %s3541_s6  ;;  %v1175_v10 = vrot.slane %v5010_v11, 7  ;;  %v1176_v58 = vrot.slane %v5012_v54, 7  ;;  %v1163_v40 = vrot.slane %v5010_v11, 1  ;;  %v1164_v62 = vrot.slane %v5012_v54, 1  ;;  %v3446_v14 = vld [vmem:[#allocation4 + $0x39c] sm:$0xf0] }
 0x3af   :  { %v2965_v38 = vor.u32 %v3382_v41, %v2964_v60  ;;  %v2966_v61 = vld [vmem:[#allocation4 + $0x1a0] sm:$0xf0]  ;;  %v2900_v35 = vld [vmem:[#allocation4 + $0x100] sm:$0xf] }
 0x3b0   :  { %v5030_v25 = vsel %vm100_vm0, %v1175_v10, %v1177_v53  ;;  %v5034_v32 = vsel %vm100_vm0, %v1176_v58, %v1178_v51  ;;  %v1181_v47 = vsel %vm100_vm0, %v1177_v53, %v1175_v10  ;;  %v1182_v56 = vsel %vm100_vm0, %v1178_v51, %v1176_v58  ;;  %v3434_v28 = vld [vmem:[#allocation4 + $0x344] sm:$0xf]  ;;  %v3366_v4 = vld [vmem:[#allocation4 + $0x11c] sm:$0xf0] }
 0x3b1   :  { %v5042_v33 = vsel %vm87_vm2, %v1163_v40, %v1165_v43  ;;  %v5046_v55 = vsel %vm87_vm2, %v1164_v62, %v1166_v2  ;;  %v1169_v23 = vsel %vm87_vm2, %v1165_v43, %v1163_v40  ;;  %v1170_v16 = vsel %vm87_vm2, %v1166_v2, %v1164_v62  ;;  %v3442_v43 = vld [vmem:[#allocation4 + $0x384] sm:$0xf]  ;;  %2158 = vmatpush.bf16.msra.mxu0 %v2965_v38  ;;  %v2932_v62 = vld [vmem:[#allocation4 + $0x140] sm:$0xf] }
 0x3b2   :  { %v5072_v39 = vsel %vm73_vm1, %v1181_v47, 0.0  ;;  %v5078_v26 = vsel %vm73_vm1, %v1182_v56, 0.0  ;;  %v5092_v1 = vsel %vm72_vm3, %v1170_v16, 0.0  ;;  %v5098_v7 = vsel %vm72_vm3, %v1169_v23, 0.0  ;;  %v3222_v2 = vld [vmem:[#allocation4 + $0x3a0] sm:$0xf0] }
 0x3b3   :  { %v3221_v53 = vor.u32 %v3446_v14, %v3220_v30  ;;  %v2969_v51 = vor.u32 %v3378_v22, %v2966_v61  ;;  %v3225_v10 = vor.u32 %v3442_v43, %v3222_v2  ;;  %v3374_v47 = vld [vmem:[#allocation4 + $0x15c] sm:$0xf0]  ;;  %v3190_v48 = vld [vmem:[#allocation4 + $0x360] sm:$0xf0]  ;;  %v2901_v0 = vor.u32 %v3366_v4, %v2900_v35 }
 0x3b4   :  { %v3188_v56 = vld [vmem:[#allocation4 + $0x340] sm:$0xf]  ;;  %v2933_v23 = vor.u32 %v3374_v47, %v2932_v62  ;;  %v3193_v20 = vor.u32 %v3434_v28, %v3190_v48  ;;  %v3362_v41 = vld [vmem:[#allocation4 + $0x104] sm:$0xf] }
 0x3b5   :  { %1225 = vrot.lane.b32.xlu0 %v5008_v9, %s3542_s1  ;;  %1239 = vrot.lane.b32.xlu1 %v5012_v54, %s3541_s6  ;;  %v3438_v16 = vld [vmem:[#allocation4 + $0x35c] sm:$0xf0]  ;;  %v2902_v30 = vld [vmem:[#allocation4 + $0x120] sm:$0xf0] }
 0x3b6   :  { %1235 = vrot.lane.b32.xlu2 %v5010_v11, %s3541_s6  ;;  %2172 = vmatpush.bf16.msra.mxu1 %v3221_v53  ;;  %v3189_v37 = vor.u32 %v3438_v16, %v3188_v56  ;;  %v3156_v42 = vld [vmem:[#allocation4 + $0x300] sm:$0xf]  ;;  %v2905_v14 = vor.u32 %v3362_v41, %v2902_v30  ;;  %v3426_v22 = vld [vmem:[#allocation4 + $0x304] sm:$0xf] }
 0x3b7   :  { %2186 = vmatpush.bf16.msra.mxu2 %v2969_v51  ;;  %2200 = vmatpush.bf16.msra.mxu3 %v3225_v10  ;;  %v3430_v60 = vld [vmem:[#allocation4 + $0x31c] sm:$0xf0]  ;;  %v3158_v61 = vld [vmem:[#allocation4 + $0x320] sm:$0xf0] }
 0x3b8   :  { %2159 = vmatpush.bf16.msra.mxu0 %v2933_v23  ;;  %v3157_v38 = vor.u32 %v3430_v60, %v3156_v42  ;;  %v2868_v53 = vld [vmem:[#allocation4 + $0xc0] sm:$0xf]  ;;  %v3161_v51 = vor.u32 %v3426_v22, %v3158_v61  ;;  %v3354_v16 = vld [vmem:[#allocation4 + $0xc4] sm:$0xf] }
 0x3b9   :  { %v3358_v43 = vld [vmem:[#allocation4 + $0xdc] sm:$0xf0]  ;;  %v2870_v18 = vld [vmem:[#allocation4 + $0xe0] sm:$0xf0] }
 0x3ba   :  { %2173 = vmatpush.bf16.msra.mxu1 %v3189_v37  ;;  %v3124_v2 = vld [vmem:[#allocation4 + $0x2c0] sm:$0xf]  ;;  %v2869_v56 = vor.u32 %v3358_v43, %v2868_v53  ;;  %v3418_v29 = vld [vmem:[#allocation4 + $0x2c4] sm:$0xf] }
 0x3bb   :  { %2187 = vmatpush.bf16.msra.mxu2 %v2937_v52  ;;  %2201 = vmatpush.bf16.msra.mxu3 %v3193_v20  ;;  %v3422_v10 = vld [vmem:[#allocation4 + $0x2dc] sm:$0xf0]  ;;  %v3126_v37 = vld [vmem:[#allocation4 + $0x2e0] sm:$0xf0]  ;;  %v2873_v52 = vor.u32 %v3354_v16, %v2870_v18 }
 0x3bc   :  { %2160 = vmatpush.bf16.msra.mxu0 %v2901_v0  ;;  %v3125_v23 = vor.u32 %v3422_v10, %v3124_v2  ;;  %v3129_v28 = vor.u32 %v3418_v29, %v3126_v37  ;;  %v2836_v48 = vld [vmem:[#allocation4 + $0x80] sm:$0xf]  ;;  %v3346_v0 = vld [vmem:[#allocation4 + $0x84] sm:$0xf] }
 0x3bd   :  { %1219 = vrot.lane.b32.xlu0 %v5010_v11, %s3542_s1  ;;  %1205 = vrot.lane.b32.xlu1 %v5030_v25, %s3541_s6  ;;  %v3350_v20 = vld [vmem:[#allocation4 + $0x9c] sm:$0xf0]  ;;  %v2838_v60 = vld [vmem:[#allocation4 + $0xa0] sm:$0xf0] }
 0x3be   :  { %1223 = vrot.lane.b32.xlu2 %v5012_v54, %s3542_s1  ;;  %2174 = vmatpush.bf16.msra.mxu1 %v3157_v38  ;;  %v3092_v35 = vld [vmem:[#allocation4 + $0x280] sm:$0xf]  ;;  %v2837_v4 = vor.u32 %v3350_v20, %v2836_v48  ;;  %v2841_v30 = vor.u32 %v3346_v0, %v2838_v60  ;;  %v3410_v38 = vld [vmem:[#allocation4 + $0x284] sm:$0xf] }
 0x3bf   :  { %2188 = vmatpush.bf16.msra.mxu2 %v2905_v14  ;;  %2202 = vmatpush.bf16.msra.mxu3 %v3161_v51  ;;  %v3414_v42 = vld [vmem:[#allocation4 + $0x29c] sm:$0xf0]  ;;  %v3094_v14 = vld [vmem:[#allocation4 + $0x2a0] sm:$0xf0] }
 0x3c0   :  { %2161 = vmatpush.bf16.msra.mxu0 %v2869_v56  ;;  %v3093_v41 = vor.u32 %v3414_v42, %v3092_v35  ;;  %v3097_v61 = vor.u32 %v3410_v38, %v3094_v14  ;;  %v2804_v53 = vld [vmem:[#allocation4 + $0x40] sm:$0xf]  ;;  %v3338_v29 = vld [vmem:[#allocation4 + $0x44] sm:$0xf] }
 0x3c1   :  { %v3342_v51 = vld [vmem:[#allocation4 + $0x5c] sm:$0xf0]  ;;  %v2806_v37 = vld [vmem:[#allocation4 + $0x60] sm:$0xf0] }
 0x3c2   :  { %2175 = vmatpush.bf16.msra.mxu1 %v3125_v23  ;;  %v3060_v43 = vld [vmem:[#allocation4 + $0x240] sm:$0xf]  ;;  %v2805_v16 = vor.u32 %v3342_v51, %v2804_v53  ;;  %v3062_v48 = vld [vmem:[#allocation4 + $0x260] sm:$0xf0]  ;;  %v2809_v20 = vor.u32 %v3338_v29, %v2806_v37  ;;  %v3391_v29 = vld [vmem:[#allocation4 + $0x1e4] sm:$0xf0] }
 0x3c3   :  { %2189 = vmatpush.bf16.msra.mxu2 %v2873_v52  ;;  %2203 = vmatpush.bf16.msra.mxu3 %v3129_v28  ;;  %v3406_v18 = vld [vmem:[#allocation4 + $0x25c] sm:$0xf0]  ;;  %v3402_v28 = vld [vmem:[#allocation4 + $0x244] sm:$0xf]  ;;  %v3260_v37 = vld [vmem:[#allocation4 + $0x3c8] sm:$0xf] }
 0x3c4   :  { %2162 = vmatpush.bf16.msra.mxu0 %v2837_v4  ;;  %v3061_v52 = vor.u32 %v3406_v18, %v3060_v43  ;;  %v3065_v35 = vor.u32 %v3402_v28, %v3062_v48  ;;  %v2772_v4 = vld [vmem:[#allocation4] sm:$0xf]  ;;  %v3330_v38 = vld [vmem:[#allocation4 + $0x4] sm:$0xf]  ;;  %v3004_v43 = vld [vmem:[#allocation4 + $0x1c8] sm:$0xf] }
 0x3c5   :  { %1209 = vrot.lane.b32.xlu0 %v5034_v32, %s3541_s6  ;;  %1193 = vrot.lane.b32.xlu1 %v5034_v32, %s3542_s1  ;;  %v3334_v42 = vld [vmem:[#allocation4 + $0x1c] sm:$0xf0]  ;;  %v3394_v53 = vld [vmem:[#allocation4 + $0x204] sm:$0xf] }
 0x3c6   :  { %1189 = vrot.lane.b32.xlu2 %v5030_v25, %s3542_s1  ;;  %2176 = vmatpush.bf16.msra.mxu1 %v3093_v41  ;;  %v3028_v0 = vld [vmem:[#allocation4 + $0x200] sm:$0xf]  ;;  %v2773_v60 = vor.u32 %v3334_v42, %v2772_v4  ;;  %v3030_v51 = vld [vmem:[#allocation4 + $0x220] sm:$0xf0]  ;;  %v5148_v4 = vmul.f32 %v5010_v11, %v4069_v5  ;;  %v3387_v42 = vld [vmem:[#allocation4 + $0x1cc] sm:$0xf] }
 0x3c7   :  { %2190 = vmatpush.bf16.msra.mxu2 %v2841_v30  ;;  %2204 = vmatpush.bf16.msra.mxu3 %v3097_v61  ;;  %v3398_v41 = vld [vmem:[#allocation4 + $0x21c] sm:$0xf0]  ;;  %v2774_v30 = vld [vmem:[#allocation4 + $0x20] sm:$0xf0]  ;;  %v3033_v18 = vor.u32 %v3394_v53, %v3030_v51  ;;  %v3262_v53 = vld [vmem:[#allocation4 + $0x3e8] sm:$0xf0] }
 0x3c8   :  { %2163 = vmatpush.bf16.msra.mxu0 %v2805_v16  ;;  %v3029_v14 = vor.u32 %v3398_v41, %v3028_v0  ;;  %v2777_v61 = vor.u32 %v3330_v38, %v2774_v30  ;;  %v3455_v16 = vld [vmem:[#allocation4 + $0x3e4] sm:$0xf0]  ;;  %v3006_v0 = vld [vmem:[#allocation4 + $0x1e8] sm:$0xf0] }
 0x3c9   :  { %v3451_v41 = vld [vmem:[#allocation4 + $0x3cc] sm:$0xf]  ;;  %v3383_v51 = vld [vmem:[#allocation4 + $0x1a4] sm:$0xf0] }
 0x3ca   :  { %2177 = vmatpush.bf16.msra.mxu1 %v3061_v52  ;;  %v1289_v52 = vmul.f32 %v5030_v25, %v4031_v24 }
 0x3cb   :  { %2191 = vmatpush.bf16.msra.mxu2 %v2809_v20  ;;  %2205 = vmatpush.bf16.msra.mxu3 %v3065_v35  ;;  %v3005_v20 = vor.u32 %v3391_v29, %v3004_v43  ;;  %v3261_v35 = vor.u32 %v3455_v16, %v3260_v37  ;;  %v3228_v16 = vld [vmem:[#allocation4 + $0x388] sm:$0xf] }
 0x3cc   :  { %2164 = vmatpush.bf16.msra.mxu0 %v2773_v60 }
 0x3cd   :  { %1203 = vrot.lane.b32.xlu0 %v5072_v39, %s3541_s6  ;;  %1267 = vrot.lane.b32.xlu1 %v5042_v33, %s3541_s6 }
 0x3ce   :  { %1207 = vrot.lane.b32.xlu2 %v5078_v26, %s3541_s6  ;;  %2178 = vmatpush.bf16.msra.mxu1 %v3029_v14  ;;  %v2972_v14 = vld [vmem:[#allocation4 + $0x188] sm:$0xf] }
 0x3cf   :  { %2192 = vmatpush.bf16.msra.mxu2 %v2777_v61  ;;  %2206 = vmatpush.bf16.msra.mxu3 %v3033_v18  ;;  %v3009_v61 = vor.u32 %v3387_v42, %v3006_v0  ;;  %v3265_v18 = vor.u32 %v3451_v41, %v3262_v53 }
 0x3d0   :  { %2213 = vmatpush.bf16.msrb.mxu0 %v3005_v20 }
 0x3d2   :  { %2227 = vmatpush.bf16.msrb.mxu1 %v3261_v35 }
 0x3d3   :  { %2241 = vmatpush.bf16.msrb.mxu2 %v3009_v61  ;;  %2255 = vmatpush.bf16.msrb.mxu3 %v3265_v18 }
 0x3d5   :  { %1191 = vrot.lane.b32.xlu0 %v5078_v26, %s3542_s1  ;;  %1187 = vrot.lane.b32.xlu1 %v5072_v39, %s3542_s1 }
 0x3d6   :  { %1251 = vrot.lane.b32.xlu2 %v5042_v33, %s3542_s1 }
 0x3dd   :  { %1271 = vrot.lane.b32.xlu0 %v5046_v55, %s3541_s6  ;;  %1273 = vrot.lane.b32.xlu1 %v5092_v1, %s3541_s6 }
 0x3de   :  { %1269 = vrot.lane.b32.xlu2 %v5098_v7, %s3541_s6 }
 0x3e5   :  { %1253 = vrot.lane.b32.xlu0 %v5098_v7, %s3542_s1  ;;  %1255 = vrot.lane.b32.xlu1 %v5046_v55, %s3542_s1 }
 0x3e6   :  { %1257 = vrot.lane.b32.xlu2 %v5092_v1, %s3542_s1 }
 0x408   :  { %v5110_v27 = vpop.permute.xlu2 %1241 }
 0x410   :  { %v5112_v44 = vpop.permute.xlu2 %1235 }
 0x418   :  { %v5118_v8 = vpop.permute.xlu2 %1223 }
 0x41f   :  { %v5114_v58 = vpop.permute.xlu0 %1237  ;;  %v5116_v40 = vpop.permute.xlu1 %1221 }
 0x420   :  { %v1190_v22 = vpop.permute.xlu2 %1189  ;;  %v5128_v2 = vsel %vm134_vm4, %v5114_v58, %v5110_v27  ;;  %v5134_v10 = vsel %vm134_vm4, %v5110_v27, %v5114_v58  ;;  %v2973_v58 = vor.u32 %v3383_v51, %v2972_v14 }
 0x421   :  { %v5497_v42 = vsel %vm3713_vm5, %v5134_v10, 0.0 }
 0x422   :  { %v1305_v0 = vmul.f32 %v5497_v42, %v4063_v57  ;;  %2214 = vmatpush.bf16.msrb.mxu0 %v2973_v58  ;;  %v3375_v58 = vld [vmem:[#allocation4 + $0x164] sm:$0xf0] }
 0x423   :  { %v3367_v42 = vld [vmem:[#allocation4 + $0x124] sm:$0xf0] }
 0x427   :  { %v5120_v62 = vpop.permute.xlu0 %1225  ;;  %v5122_v47 = vpop.permute.xlu1 %1239 }
 0x428   :  { %v1208_v60 = vpop.permute.xlu2 %1207 }
 0x42f   :  { %v5136_v56 = vpop.permute.xlu0 %1219  ;;  %v1206_v23 = vpop.permute.xlu1 %1205 }
 0x437   :  { %v1210_v28 = vpop.permute.xlu0 %1209  ;;  %v1194_v48 = vpop.permute.xlu1 %1193 }
 0x438   :  { %v1212_v38 = vsel %vm134_vm4, %v1206_v23, %v1210_v28  ;;  %v1214_v30 = vsel %vm134_vm4, %v1210_v28, %v1206_v23  ;;  %v1196_v25 = vsel %vm117_vm7, %v1190_v22, %v1194_v48  ;;  %v1198_v11 = vsel %vm117_vm7, %v1194_v48, %v1190_v22 }
 0x439   :  { %v1217_v43 = vsel %vm3713_vm5, %v1214_v30, 0.0  ;;  %v1218_v29 = vsel %vm3717_vm6, %v1212_v38, 0.0  ;;  %v1201_v37 = vsel %vm3730_vm8, %v1196_v25, 0.0  ;;  %v1202_v23 = vsel %vm3734_vm9, %v1198_v11, 0.0  ;;  %v3447_v30 = vld [vmem:[#allocation4 + $0x3a4] sm:$0xf0] }
 0x43a   :  { %v1290_v22 = vmul.f32 %v5034_v32, %v4031_v24  ;;  %v5172_v28 = vsel %vm117_vm7, %v5116_v40, %v5120_v62  ;;  %v1285_v48 = vmul.f32 %v1217_v43, %v4037_v31  ;;  %v1286_v38 = vmul.f32 %v1218_v29, %v4037_v31  ;;  %v3379_v25 = vld [vmem:[#allocation4 + $0x18c] sm:$0xf] }
 0x43b   :  { %v2974_v11 = vld [vmem:[#allocation4 + $0x1a8] sm:$0xf0]  ;;  %v3229_v27 = vor.u32 %v3447_v30, %v3228_v16  ;;  %v1297_v6 = vmul.f32 %v1201_v37, %v4039_v36  ;;  %v1298_v15 = vmul.f32 %v1202_v23, %v4039_v36  ;;  %v5180_v43 = vmul.f32 %v5012_v54, %v4069_v5  ;;  %v3196_v16 = vld [vmem:[#allocation4 + $0x348] sm:$0xf] }
 0x43c   :  { %v3443_v32 = vld [vmem:[#allocation4 + $0x38c] sm:$0xf]  ;;  %v1293_v13 = vadd.f32 %v1289_v52, %v1285_v48  ;;  %v1294_v21 = vadd.f32 %v1290_v22, %v1286_v38  ;;  %v2977_v20 = vor.u32 %v3379_v25, %v2974_v11  ;;  %v5498_v52 = vsel %vm3717_vm6, %v5128_v2, 0.0  ;;  %v3439_v22 = vld [vmem:[#allocation4 + $0x364] sm:$0xf0] }
 0x43d   :  { %v3233_v35 = vor.u32 %v3443_v32, %v3230_v17  ;;  %v1306_v41 = vmul.f32 %v5498_v52, %v4063_v57  ;;  %v5194_v54 = vmul.f32 %v5072_v39, %v4031_v24  ;;  %v1233_v17 = vsel %vm3730_vm8, %v5172_v28, 0.0  ;;  %2228 = vmatpush.bf16.msrb.mxu1 %v3229_v27  ;;  %v2940_v27 = vld [vmem:[#allocation4 + $0x148] sm:$0xf]  ;;  %v3371_v48 = vld [vmem:[#allocation4 + $0x14c] sm:$0xf] }
 0x43e   :  { %v1301_v53 = vadd.f32 %v1297_v6, %v1293_v13  ;;  %v1302_v14 = vadd.f32 %v1298_v15, %v1294_v21  ;;  %v1313_v29 = vmul.f32 %v5006_v19, %v4069_v5  ;;  %v1314_v2 = vmul.f32 %v5008_v9, %v4069_v5  ;;  %2242 = vmatpush.bf16.msrb.mxu2 %v2977_v20  ;;  %v2942_v30 = vld [vmem:[#allocation4 + $0x168] sm:$0xf0]  ;;  %v3132_v28 = vld [vmem:[#allocation4 + $0x2c8] sm:$0xf] }
 0x43f   :  { %v1204_v51 = vpop.permute.xlu0 %1203  ;;  %v5199_v10 = vpop.permute.xlu1 %1267  ;;  %v5213_v39 = vsel %vm117_vm7, %v5120_v62, %v5116_v40  ;;  %v5219_v5 = vsel %vm134_vm4, %v5122_v47, %v5112_v44  ;;  %2256 = vmatpush.bf16.msrb.mxu3 %v3233_v35  ;;  %v1288_v40 = vmul.f32 %v5078_v26, %v4031_v24  ;;  %v5229_v62 = vmul.f32 %v5042_v33, %v4101_v59  ;;  %v3435_v25 = vld [vmem:[#allocation4 + $0x34c] sm:$0xf]  ;;  %v2908_v35 = vld [vmem:[#allocation4 + $0x108] sm:$0xf] }
 0x440   :  { %v1309_v15 = vadd.f32 %v1305_v0, %v1301_v53  ;;  %v1310_v6 = vadd.f32 %v1306_v41, %v1302_v14  ;;  %v1211_v21 = vsel %vm134_vm4, %v1204_v51, %v1208_v60  ;;  %v1213_v13 = vsel %vm134_vm4, %v1208_v60, %v1204_v51  ;;  %v5231_v60 = vpop.permute.xlu2 %1251  ;;  %v3198_v11 = vld [vmem:[#allocation4 + $0x368] sm:$0xf0]  ;;  %v3164_v0 = vld [vmem:[#allocation4 + $0x308] sm:$0xf] }
 0x441   :  { %v1215_v19 = vsel %vm3713_vm5, %v1213_v13, 0.0  ;;  %v1216_v9 = vsel %vm3717_vm6, %v1211_v21, 0.0  ;;  %v5239_v38 = vmul.f32 %v5046_v55, %v4101_v59  ;;  %v1243_v24 = vsel %vm134_vm4, %v5112_v44, %v5122_v47  ;;  %v3363_v14 = vld [vmem:[#allocation4 + $0x10c] sm:$0xf] }
 0x442   :  { %v5233_v37 = vadd.f32 %v1313_v29, %v1309_v15  ;;  %v5235_v23 = vadd.f32 %v1314_v2, %v1310_v6  ;;  %v2941_v33 = vor.u32 %v3375_v58, %v2940_v27  ;;  %v3197_v26 = vor.u32 %v3439_v22, %v3196_v16  ;;  %v2910_v51 = vld [vmem:[#allocation4 + $0x128] sm:$0xf0]  ;;  %v2876_v16 = vld [vmem:[#allocation4 + $0xc8] sm:$0xf] }
 0x443   :  { %v1234_v61 = vsel %vm3734_vm9, %v5213_v39, 0.0  ;;  %v1247_v18 = vsel %vm3713_vm5, %v5219_v5, 0.0  ;;  %v1227_v55 = vsel %vm117_vm7, %v5136_v56, %v5118_v8  ;;  %v1229_v44 = vsel %vm117_vm7, %v5118_v8, %v5136_v56  ;;  %v3431_v56 = vld [vmem:[#allocation4 + $0x324] sm:$0xf0] }
 0x444   :  { %v1283_v47 = vmul.f32 %v1215_v19, %v4037_v31  ;;  %2215 = vmatpush.bf16.msrb.mxu0 %v2941_v33  ;;  %2229 = vmatpush.bf16.msrb.mxu1 %v3197_v26  ;;  %v2945_v32 = vor.u32 %v3371_v48, %v2942_v30  ;;  %v3201_v20 = vor.u32 %v3435_v25, %v3198_v11  ;;  %v1248_v29 = vsel %vm3717_vm6, %v1243_v24, 0.0  ;;  %v3359_v22 = vld [vmem:[#allocation4 + $0xe4] sm:$0xf0]  ;;  %v3355_v30 = vld [vmem:[#allocation4 + $0xcc] sm:$0xf] }
 0x445   :  { %v5262_v52 = vmul.f32 %v5098_v7, %v4101_v59  ;;  %v5266_v41 = vmul.f32 %v5092_v1, %v4101_v59  ;;  %v1284_v53 = vmul.f32 %v1216_v9, %v4037_v31  ;;  %v2909_v8 = vor.u32 %v3367_v42, %v2908_v35  ;;  %v3427_v59 = vld [vmem:[#allocation4 + $0x30c] sm:$0xf] }
 0x446   :  { %v1231_v2 = vsel %vm3730_vm8, %v1227_v55, 0.0  ;;  %2243 = vmatpush.bf16.msrb.mxu2 %v2945_v32  ;;  %2257 = vmatpush.bf16.msrb.mxu3 %v3201_v20  ;;  %v3165_v7 = vor.u32 %v3431_v56, %v3164_v0  ;;  %v2913_v21 = vor.u32 %v3363_v14, %v2910_v51  ;;  %v3166_v1 = vld [vmem:[#allocation4 + $0x328] sm:$0xf0]  ;;  %v1232_v31 = vsel %vm3734_vm9, %v1229_v44, 0.0 }
 0x447   :  { %v1192_v15 = vpop.permute.xlu0 %1191  ;;  %v1188_v6 = vpop.permute.xlu1 %1187  ;;  %v3169_v5 = vor.u32 %v3427_v59, %v3166_v1  ;;  %v1321_v19 = vmul.f32 %v1233_v17, %v4107_v3  ;;  %v1291_v9 = vadd.f32 %v5194_v54, %v1283_v47  ;;  %v1292_v48 = vadd.f32 %v1288_v40, %v1284_v53  ;;  %v3423_v17 = vld [vmem:[#allocation4 + $0x2e4] sm:$0xf0]  ;;  %v2878_v55 = vld [vmem:[#allocation4 + $0xe8] sm:$0xf0] }
 0x448   :  { %v1195_v13 = vsel %vm117_vm7, %v1188_v6, %v1192_v15  ;;  %v1197_v39 = vsel %vm117_vm7, %v1192_v15, %v1188_v6  ;;  %2216 = vmatpush.bf16.msrb.mxu0 %v2909_v8  ;;  %2230 = vmatpush.bf16.msrb.mxu1 %v3165_v7  ;;  %v2877_v26 = vor.u32 %v3359_v22, %v2876_v16  ;;  %v3419_v44 = vld [vmem:[#allocation4 + $0x2cc] sm:$0xf]  ;;  %v1270_v32 = vpop.permute.xlu2 %1269  ;;  %v3100_v8 = vld [vmem:[#allocation4 + $0x288] sm:$0xf] }
 0x449   :  { %v1199_v27 = vsel %vm3730_vm8, %v1195_v13, 0.0  ;;  %v1200_v58 = vsel %vm3734_vm9, %v1197_v39, 0.0  ;;  %v1303_v54 = vmul.f32 %v1247_v18, %v4063_v57  ;;  %v1304_v25 = vmul.f32 %v1248_v29, %v4063_v57  ;;  %v3134_v47 = vld [vmem:[#allocation4 + $0x2e8] sm:$0xf0]  ;;  %v2844_v57 = vld [vmem:[#allocation4 + $0x88] sm:$0xf] }
 0x44a   :  { %v1295_v24 = vmul.f32 %v1199_v27, %v4039_v36  ;;  %v1296_v33 = vmul.f32 %v1200_v58, %v4039_v36  ;;  %2244 = vmatpush.bf16.msrb.mxu2 %v2913_v21  ;;  %2258 = vmatpush.bf16.msrb.mxu3 %v3169_v5  ;;  %v3133_v11 = vor.u32 %v3423_v17, %v3132_v28  ;;  %v3351_v18 = vld [vmem:[#allocation4 + $0xa4] sm:$0xf0]  ;;  %v3347_v6 = vld [vmem:[#allocation4 + $0x8c] sm:$0xf] }
 0x44b   :  { %v2881_v35 = vor.u32 %v3355_v30, %v2878_v55  ;;  %v3137_v42 = vor.u32 %v3419_v44, %v3134_v47  ;;  %v1322_v36 = vmul.f32 %v1234_v61, %v4107_v3  ;;  %v1319_v0 = vmul.f32 %v1231_v2, %v4107_v3  ;;  %v3415_v15 = vld [vmem:[#allocation4 + $0x2a4] sm:$0xf0]  ;;  %v2846_v7 = vld [vmem:[#allocation4 + $0xa8] sm:$0xf0] }
 0x44c   :  { %v1299_v40 = vadd.f32 %v1295_v24, %v1291_v9  ;;  %v1300_v20 = vadd.f32 %v1296_v33, %v1292_v48  ;;  %v1320_v53 = vmul.f32 %v1232_v31, %v4107_v3  ;;  %2217 = vmatpush.bf16.msrb.mxu0 %v2877_v26  ;;  %2231 = vmatpush.bf16.msrb.mxu1 %v3133_v11  ;;  %v3411_v1 = vld [vmem:[#allocation4 + $0x28c] sm:$0xf]  ;;  %v2812_v13 = vld [vmem:[#allocation4 + $0x48] sm:$0xf] }
 0x44d   :  { %v1325_v51 = vadd.f32 %v1321_v19, %v5233_v37  ;;  %v2845_v29 = vor.u32 %v3351_v18, %v2844_v57  ;;  %v1326_v61 = vadd.f32 %v1322_v36, %v5235_v23  ;;  %v3101_v3 = vor.u32 %v3415_v15, %v3100_v8  ;;  %v3102_v31 = vld [vmem:[#allocation4 + $0x2a8] sm:$0xf0]  ;;  %v3343_v19 = vld [vmem:[#allocation4 + $0x64] sm:$0xf0] }
 0x44e   :  { %v1307_v56 = vadd.f32 %v1303_v54, %v1299_v40  ;;  %v1308_v14 = vadd.f32 %v1304_v25, %v1300_v20  ;;  %2245 = vmatpush.bf16.msrb.mxu2 %v2881_v35  ;;  %2259 = vmatpush.bf16.msrb.mxu3 %v3137_v42  ;;  %v2849_v2 = vor.u32 %v3347_v6, %v2846_v7  ;;  %v3068_v9 = vld [vmem:[#allocation4 + $0x248] sm:$0xf]  ;;  %v3403_v28 = vld [vmem:[#allocation4 + $0x24c] sm:$0xf] }
 0x44f   :  { %v1272_v21 = vpop.permute.xlu0 %1271  ;;  %v1274_v59 = vpop.permute.xlu1 %1273  ;;  %v3407_v27 = vld [vmem:[#allocation4 + $0x264] sm:$0xf0]  ;;  %v3070_v17 = vld [vmem:[#allocation4 + $0x268] sm:$0xf0]  ;;  %v3105_v11 = vor.u32 %v3411_v1, %v3102_v31  ;;  %v2813_v55 = vor.u32 %v3343_v19, %v2812_v13 }
 0x450   :  { %v1275_v39 = vsel %vm134_vm4, %v5199_v10, %v1272_v21  ;;  %v1277_v37 = vsel %vm134_vm4, %v1272_v21, %v5199_v10  ;;  %v1315_v5 = vadd.f32 %v5148_v4, %v1307_v56  ;;  %v1316_v23 = vadd.f32 %v5180_v43, %v1308_v14  ;;  %2218 = vmatpush.bf16.msrb.mxu0 %v2845_v29  ;;  %v3339_v4 = vld [vmem:[#allocation4 + $0x4c] sm:$0xf]  ;;  %v2780_v30 = vld [vmem:[#allocation4 + $0x8] sm:$0xf]  ;;  %v1258_v57 = vpop.permute.xlu2 %1257 }
 0x451   :  { %v1279_v58 = vsel %vm3713_vm5, %v1277_v37, 0.0  ;;  %v1280_v16 = vsel %vm3717_vm6, %v1275_v39, 0.0  ;;  %v1276_v22 = vsel %vm134_vm4, %v1270_v32, %v1274_v59  ;;  %v1278_v48 = vsel %vm134_vm4, %v1274_v59, %v1270_v32  ;;  %2232 = vmatpush.bf16.msrb.mxu1 %v3101_v3  ;;  %v2814_v10 = vld [vmem:[#allocation4 + $0x68] sm:$0xf0]  ;;  %v3335_v44 = vld [vmem:[#allocation4 + $0x24] sm:$0xf0] }
 0x452   :  { %v1323_v43 = vadd.f32 %v1319_v0, %v1315_v5  ;;  %v1324_v24 = vadd.f32 %v1320_v53, %v1316_v23  ;;  %v1327_v33 = vmul.f32 %v1279_v58, %v4164_v63  ;;  %v1328_v26 = vmul.f32 %v1280_v16, %v4164_v63  ;;  %2246 = vmatpush.bf16.msrb.mxu2 %v2849_v2  ;;  %v3036_v47 = vld [vmem:[#allocation4 + $0x208] sm:$0xf]  ;;  %v3331_v36 = vld [vmem:[#allocation4 + $0xc] sm:$0xf] }
 0x453   :  { %v1281_v54 = vsel %vm3713_vm5, %v1278_v48, 0.0  ;;  %v1282_v25 = vsel %vm3717_vm6, %v1276_v22, 0.0  ;;  %v3399_v42 = vld [vmem:[#allocation4 + $0x224] sm:$0xf0]  ;;  %v2782_v0 = vld [vmem:[#allocation4 + $0x28] sm:$0xf0]  ;;  %2260 = vmatpush.bf16.msrb.mxu3 %v3105_v11  ;;  %v3069_v45 = vor.u32 %v3407_v27, %v3068_v9  ;;  %v2817_v53 = vor.u32 %v3339_v4, %v2814_v10 }
 0x454   :  { %v1331_v32 = vadd.f32 %v1327_v33, %v1323_v43  ;;  %v1332_v40 = vadd.f32 %v1328_v26, %v1324_v24  ;;  %v1329_v20 = vmul.f32 %v1281_v54, %v4164_v63  ;;  %v1330_v35 = vmul.f32 %v1282_v25, %v4164_v63  ;;  %2219 = vmatpush.bf16.msrb.mxu0 %v2813_v55  ;;  %v3038_v3 = vld [vmem:[#allocation4 + $0x228] sm:$0xf0]  ;;  %v5499_v27 = vld [vmem:[#allocation15_spill] sm:$0xff]  ;;  %v5501_v11 = vld [vmem:[#allocation17_spill] sm:$0xff] }
 0x455   :  { %v3073_v46 = vor.u32 %v3403_v28, %v3070_v17  ;;  %2233 = vmatpush.bf16.msrb.mxu1 %v3069_v45  ;;  %v2781_v63 = vor.u32 %v3335_v44, %v2780_v30  ;;  %v3037_v6 = vor.u32 %v3399_v42, %v3036_v47  ;;  %v2785_v7 = vor.u32 %v3331_v36, %v2782_v0  ;;  %v5500_v26 = vld [vmem:[#allocation16_spill] sm:$0xff]  ;;  %v5502_v0 = vld [vmem:[#allocation18_spill] sm:$0xff] }
 0x456   :  { %v1333_v18 = vadd.f32 %v1329_v20, %v1325_v51  ;;  %v1334_v8 = vadd.f32 %v1330_v35, %v1326_v61  ;;  %v1340_v56 = vadd.f32 %v5239_v38, %v1332_v40  ;;  %v1339_v14 = vadd.f32 %v5229_v62, %v1331_v32  ;;  %2247 = vmatpush.bf16.msrb.mxu2 %v2817_v53  ;;  %v3395_v38 = vld [vmem:[#allocation4 + $0x20c] sm:$0xf]  ;;  %v5503_v53 = vld [vmem:[#allocation19_spill] sm:$0xff] }
 0x457   :  { %v1254_v29 = vpop.permute.xlu0 %1253  ;;  %v1256_v15 = vpop.permute.xlu1 %1255  ;;  %2261 = vmatpush.bf16.msrb.mxu3 %v3073_v46  ;;  %v3041_v34 = vor.u32 %v3395_v38, %v3038_v3  ;;  %v1372_v30 = vstv %s2768_s29  ;;  %v1382_v35 = vstv %s2769_s30  ;;  %v3452_v38 = vld [vmem:[#allocation4 + $0x3d4] sm:$0xf] }
 0x458   :  { %v1260_v21 = vsel %vm117_vm7, %v1254_v29, %v1258_v57  ;;  %v1262_v59 = vsel %vm117_vm7, %v1258_v57, %v1254_v29  ;;  %v1341_v51 = vadd.f32 %v5262_v52, %v1333_v18  ;;  %v1342_v61 = vadd.f32 %v5266_v41, %v1334_v8  ;;  %2220 = vmatpush.bf16.msrb.mxu0 %v2781_v63  ;;  %v5504_v57 = vld [vmem:[#allocation21_spill] sm:$0xff]  ;;  %v5505_v8 = vld [vmem:[#allocation20_spill] sm:$0xff] }
 0x459   :  { %v1265_v62 = vsel %vm3730_vm8, %v1260_v21, 0.0  ;;  %v1266_v2 = vsel %vm3734_vm9, %v1262_v59, 0.0  ;;  %v1259_v1 = vsel %vm117_vm7, %v5231_v60, %v1256_v15  ;;  %v1261_v31 = vsel %vm117_vm7, %v1256_v15, %v5231_v60  ;;  %2234 = vmatpush.bf16.msrb.mxu1 %v3037_v6  ;;  %v3392_v29 = vld [vmem:[#allocation4 + $0x1ec] sm:$0xf0]  ;;  %v3388_v21 = vld [vmem:[#allocation4 + $0x1d4] sm:$0xf] }
 0x45a   :  { %v1345_v52 = vmul.f32 %v1265_v62, %v4192_v12  ;;  %v1346_v41 = vmul.f32 %v1266_v2, %v4192_v12  ;;  %v1263_v13 = vsel %vm3730_vm8, %v1259_v1, 0.0  ;;  %v1264_v39 = vsel %vm3734_vm9, %v1261_v31, 0.0  ;;  %2248 = vmatpush.bf16.msrb.mxu2 %v2785_v7  ;;  %v3268_v6 = vld [vmem:[#allocation4 + $0x3d0] sm:$0xf]  ;;  %v3270_v3 = vld [vmem:[#allocation4 + $0x3f0] sm:$0xf0] }
 0x45b   :  { %v1343_v37 = vmul.f32 %v1263_v13, %v4192_v12  ;;  %v1344_v5 = vmul.f32 %v1264_v39, %v4192_v12  ;;  %2262 = vmatpush.bf16.msrb.mxu3 %v3041_v34  ;;  %v3456_v7 = vld [vmem:[#allocation4 + $0x3ec] sm:$0xf0]  ;;  %v3273_v39 = vor.u32 %v3452_v38, %v3270_v3  ;;  %v3380_v34 = vld [vmem:[#allocation4 + $0x194] sm:$0xf] }
 0x45c   :  { %v1349_v60 = vadd.f32 %v1345_v52, %v1341_v51  ;;  %v1350_v23 = vadd.f32 %v1346_v41, %v1342_v61  ;;  %v3014_v61 = vld [vmem:[#allocation4 + $0x1f0] sm:$0xf0]  ;;  %v3269_v31 = vor.u32 %v3456_v7, %v3268_v6  ;;  %v2980_v52 = vld [vmem:[#allocation4 + $0x190] sm:$0xf] }
 0x45d   :  { %v1347_v19 = vadd.f32 %v1343_v37, %v1339_v14  ;;  %v1348_v9 = vadd.f32 %v1344_v5, %v1340_v56  ;;  %v3012_v14 = vld [vmem:[#allocation4 + $0x1d0] sm:$0xf]  ;;  %v3017_v13 = vor.u32 %v3388_v21, %v3014_v61  ;;  %v3348_v21 = vld [vmem:[#allocation4 + $0x94] sm:$0xf] }
 0x45e   :  { %v1353_v58 = vadd.f32 %v1349_v60, %v5499_v27  ;;  %v1354_v49 = vadd.f32 %v1350_v23, %v5499_v27  ;;  %v3013_v1 = vor.u32 %v3392_v29, %v3012_v14  ;;  %v3384_v41 = vld [vmem:[#allocation4 + $0x1ac] sm:$0xf0]  ;;  %v2982_v60 = vld [vmem:[#allocation4 + $0x1b0] sm:$0xf0] }
 0x45f   :  { %v1351_v50 = vadd.f32 %v1347_v19, %v5499_v27  ;;  %v1352_v16 = vadd.f32 %v1348_v9, %v5499_v27  ;;  %v3236_v37 = vld [vmem:[#allocation4 + $0x390] sm:$0xf]  ;;  %v3444_v23 = vld [vmem:[#allocation4 + $0x394] sm:$0xf]  ;;  %v2981_v9 = vor.u32 %v3384_v41, %v2980_v52 }
 0x460   :  { %v1357_v22 = vmul.f32 0.2, %v1353_v58  ;;  %v1358_v48 = vmul.f32 0.2, %v1354_v49  ;;  %v3448_v5 = vld [vmem:[#allocation4 + $0x3ac] sm:$0xf0] }
 0x461   :  { %v1355_v12 = vmul.f32 0.2, %v1351_v50  ;;  %v1356_v4 = vmul.f32 0.2, %v1352_v16  ;;  %v3238_v19 = vld [vmem:[#allocation4 + $0x3b0] sm:$0xf0]  ;;  %v3237_v27 = vor.u32 %v3448_v5, %v3236_v37 }
 0x462   :  { %v1361_v10 = vmax.f32 %v1353_v58, %v1357_v22  ;;  %v1362_v43 = vmax.f32 %v1354_v49, %v1358_v48  ;;  %v2948_v58 = vld [vmem:[#allocation4 + $0x150] sm:$0xf]  ;;  %v3110_v61 = vld [vmem:[#allocation4 + $0x2b0] sm:$0xf0] }
 0x463   :  { %v1359_v24 = vmax.f32 %v1351_v50, %v1355_v12  ;;  %v1360_v33 = vmax.f32 %v1352_v16, %v1356_v4  ;;  %v3376_v49 = vld [vmem:[#allocation4 + $0x16c] sm:$0xf0]  ;;  %v2985_v50 = vor.u32 %v3380_v34, %v2982_v60  ;;  %v3241_v16 = vor.u32 %v3444_v23, %v3238_v19  ;;  %v3372_v12 = vld [vmem:[#allocation4 + $0x154] sm:$0xf] }
 0x464   :  { %v1365_v28 = vmul.f32 %v1361_v10, %v5500_v26  ;;  %v1366_v17 = vmul.f32 %v1362_v43, %v5500_v26  ;;  %v3204_v22 = vld [vmem:[#allocation4 + $0x350] sm:$0xf]  ;;  %v2950_v4 = vld [vmem:[#allocation4 + $0x170] sm:$0xf0] }
 0x465   :  { %v1363_v54 = vmul.f32 %v1359_v24, %v5500_v26  ;;  %v1364_v25 = vmul.f32 %v1360_v33, %v5500_v26  ;;  %v3440_v48 = vld [vmem:[#allocation4 + $0x36c] sm:$0xf0]  ;;  %v3436_v10 = vld [vmem:[#allocation4 + $0x354] sm:$0xf]  ;;  %v2949_v24 = vor.u32 %v3376_v49, %v2948_v58 }
 0x466   :  { %v1369_v55 = vadd.f32 %v1365_v28, %v5501_v11  ;;  %v1370_v44 = vadd.f32 %v1366_v17, %v5501_v11  ;;  %v3206_v43 = vld [vmem:[#allocation4 + $0x370] sm:$0xf0]  ;;  %v3205_v33 = vor.u32 %v3440_v48, %v3204_v22  ;;  %v2916_v26 = vld [vmem:[#allocation4 + $0x110] sm:$0xf]  ;;  %v2953_v17 = vor.u32 %v3372_v12, %v2950_v4 }
 0x467   :  { %v1367_v47 = vadd.f32 %v1363_v54, %v5501_v11  ;;  %v1368_v32 = vadd.f32 %v1364_v25, %v5501_v11  ;;  %v3368_v28 = vld [vmem:[#allocation4 + $0x12c] sm:$0xf0]  ;;  %v3364_v11 = vld [vmem:[#allocation4 + $0x114] sm:$0xf] }
 0x468   :  { %v1375_v40 = vmul.f32 %v1372_v30, %v1369_v55  ;;  %v1376_v20 = vmul.f32 %v1372_v30, %v1370_v44  ;;  %v3172_v54 = vld [vmem:[#allocation4 + $0x310] sm:$0xf]  ;;  %v2918_v55 = vld [vmem:[#allocation4 + $0x130] sm:$0xf0] }
 0x469   :  { %v1373_v42 = vmul.f32 %v1372_v30, %v1367_v47  ;;  %v1374_v36 = vmul.f32 %v1372_v30, %v1368_v32  ;;  %v3209_v30 = vor.u32 %v3436_v10, %v3206_v43  ;;  %v3432_v25 = vld [vmem:[#allocation4 + $0x32c] sm:$0xf0]  ;;  %v3428_v44 = vld [vmem:[#allocation4 + $0x314] sm:$0xf]  ;;  %v2917_v32 = vor.u32 %v3368_v28, %v2916_v26  ;;  %v3020_v10 = vld [vmem:[#allocation4 + $0x1d8] sm:$0xf] }
 0x46a   :  { %v1379_v45 = vadd.f32 %v1375_v40, %v5502_v0  ;;  %v1380_v46 = vadd.f32 %v1376_v20, %v5503_v53  ;;  %v3174_v47 = vld [vmem:[#allocation4 + $0x330] sm:$0xf0]  ;;  %v3173_v40 = vor.u32 %v3432_v25, %v3172_v54  ;;  %v2884_v20 = vld [vmem:[#allocation4 + $0xd0] sm:$0xf]  ;;  %v3393_v43 = vld [vmem:[#allocation4 + $0x1f4] sm:$0xf0] }
 0x46b   :  { %v1377_v18 = vadd.f32 %v1373_v42, %v5504_v57  ;;  %v1378_v56 = vadd.f32 %v1374_v36, %v5505_v8  ;;  %v2921_v42 = vor.u32 %v3364_v11, %v2918_v55  ;;  %v3177_v36 = vor.u32 %v3428_v44, %v3174_v47  ;;  %v3140_v0 = vld [vmem:[#allocation4 + $0x2d0] sm:$0xf]  ;;  %v3356_v53 = vld [vmem:[#allocation4 + $0xd4] sm:$0xf]  ;;  %v3389_v26 = vld [vmem:[#allocation4 + $0x1dc] sm:$0xf] }
 0x46c   :  { %v1385_v15 = vadd.f32 %v1382_v35, %v1379_v45  ;;  %v1386_v63 = vadd.f32 %v1382_v35, %v1380_v46  ;;  %v3424_v45 = vld [vmem:[#allocation4 + $0x2ec] sm:$0xf0]  ;;  %v2886_v46 = vld [vmem:[#allocation4 + $0xf0] sm:$0xf0]  ;;  %v3453_v54 = vld [vmem:[#allocation4 + $0x3dc] sm:$0xf]  ;;  %v3021_v44 = vor.u32 %v3393_v43, %v3020_v10 }
 0x46d   :  { %v1383_v59 = vadd.f32 %v1382_v35, %v1377_v18  ;;  %v1384_v51 = vadd.f32 %v1382_v35, %v1378_v56  ;;  %v3360_v35 = vld [vmem:[#allocation4 + $0xec] sm:$0xf0]  ;;  %v3420_v57 = vld [vmem:[#allocation4 + $0x2d4] sm:$0xf]  ;;  %v3141_v56 = vor.u32 %v3424_v45, %v3140_v0  ;;  %v3278_v25 = vld [vmem:[#allocation4 + $0x3f8] sm:$0xf0] }
 0x46e   :  { %v3142_v18 = vld [vmem:[#allocation4 + $0x2f0] sm:$0xf0]  ;;  %v2885_v8 = vor.u32 %v3360_v35, %v2884_v20  ;;  %v2852_v14 = vld [vmem:[#allocation4 + $0x90] sm:$0xf]  ;;  %v3281_v35 = vor.u32 %v3453_v54, %v3278_v25  ;;  %v3381_v0 = vld [vmem:[#allocation4 + $0x19c] sm:$0xf] }
 0x46f   :  { %v5364_v62 = vpack.c.bf16 %v1385_v15, %v1383_v59  ;;  %v5366_v2 = vpack.c.bf16 %v1386_v63, %v1384_v51  ;;  %v3352_v29 = vld [vmem:[#allocation4 + $0xac] sm:$0xf0]  ;;  %v2889_v15 = vor.u32 %v3356_v53, %v2886_v46  ;;  %v3145_v63 = vor.u32 %v3420_v57, %v3142_v18  ;;  %v2854_v59 = vld [vmem:[#allocation4 + $0xb0] sm:$0xf0]  ;;  %v2990_v45 = vld [vmem:[#allocation4 + $0x1b8] sm:$0xf0] }
 0x470   :  { %v3108_v6 = vld [vmem:[#allocation4 + $0x290] sm:$0xf]  ;;  %v3412_v51 = vld [vmem:[#allocation4 + $0x294] sm:$0xf]  ;;  %v2853_v38 = vor.u32 %v3352_v29, %v2852_v14  ;;  %v2857_v52 = vor.u32 %v3348_v21, %v2854_v59  ;;  %v3445_v53 = vld [vmem:[#allocation4 + $0x39c] sm:$0xf]  ;;  %v2993_v14 = vor.u32 %v3381_v0, %v2990_v45 }
 0x471   :  { %2165 = vmatmul.bf16.vlgmr.msra.gmra.mxu0 %v5364_v62  ;;  %2179 = vmatmul.bf16.vlgmr.msra.gmra.mxu1 %v5366_v2  ;;  %v3416_v7 = vld [vmem:[#allocation4 + $0x2ac] sm:$0xf0]  ;;  %v3113_v41 = vor.u32 %v3412_v51, %v3110_v61  ;;  %v3340_v37 = vld [vmem:[#allocation4 + $0x54] sm:$0xf]  ;;  %v3246_v46 = vld [vmem:[#allocation4 + $0x3b8] sm:$0xf0] }
 0x472   :  { %2193 = vmatmul.bf16.vlgmr.msra.gmra.mxu2 %v5364_v62  ;;  %2207 = vmatmul.bf16.vlgmr.msra.gmra.mxu3 %v5366_v2  ;;  %v3109_v3 = vor.u32 %v3416_v7, %v3108_v6  ;;  %v2822_v5 = vld [vmem:[#allocation4 + $0x70] sm:$0xf0]  ;;  %v2788_v23 = vld [vmem:[#allocation4 + $0x10] sm:$0xf]  ;;  %v3249_v29 = vor.u32 %v3445_v53, %v3246_v46  ;;  %v3373_v6 = vld [vmem:[#allocation4 + $0x15c] sm:$0xf] }
 0x473   :  { %2269 = vmatpush.bf16.msra.mxu0 %v3013_v1  ;;  %2283 = vmatpush.bf16.msra.mxu1 %v3269_v31  ;;  %v2820_v1 = vld [vmem:[#allocation4 + $0x50] sm:$0xf]  ;;  %v3404_v34 = vld [vmem:[#allocation4 + $0x254] sm:$0xf]  ;;  %v2958_v7 = vld [vmem:[#allocation4 + $0x178] sm:$0xf0] }
 0x474   :  { %2297 = vmatpush.bf16.msra.mxu2 %v3017_v13  ;;  %2311 = vmatpush.bf16.msra.mxu3 %v3273_v39  ;;  %v3344_v31 = vld [vmem:[#allocation4 + $0x6c] sm:$0xf0]  ;;  %v3078_v60 = vld [vmem:[#allocation4 + $0x270] sm:$0xf0]  ;;  %v3437_v21 = vld [vmem:[#allocation4 + $0x35c] sm:$0xf] }
 0x475   :  { %v3076_v13 = vld [vmem:[#allocation4 + $0x250] sm:$0xf]  ;;  %v2821_v19 = vor.u32 %v3344_v31, %v2820_v1  ;;  %v3332_v22 = vld [vmem:[#allocation4 + $0x14] sm:$0xf]  ;;  %v3214_v59 = vld [vmem:[#allocation4 + $0x378] sm:$0xf0]  ;;  %v2961_v1 = vor.u32 %v3373_v6, %v2958_v7 }
 0x476   :  { %v3408_v39 = vld [vmem:[#allocation4 + $0x26c] sm:$0xf0]  ;;  %v2790_v48 = vld [vmem:[#allocation4 + $0x30] sm:$0xf0]  ;;  %v3217_v31 = vor.u32 %v3437_v21, %v3214_v59  ;;  %v2860_v10 = vld [vmem:[#allocation4 + $0x98] sm:$0xf] }
 0x477   :  { %2270 = vmatpush.bf16.msra.mxu0 %v2981_v9  ;;  %2284 = vmatpush.bf16.msra.mxu1 %v3237_v27  ;;  %v3077_v9 = vor.u32 %v3408_v39, %v3076_v13  ;;  %v3336_v27 = vld [vmem:[#allocation4 + $0x2c] sm:$0xf0]  ;;  %v3396_v12 = vld [vmem:[#allocation4 + $0x214] sm:$0xf]  ;;  %v2793_v11 = vor.u32 %v3332_v22, %v2790_v48  ;;  %v3365_v13 = vld [vmem:[#allocation4 + $0x11c] sm:$0xf] }
 0x478   :  { %2298 = vmatpush.bf16.msra.mxu2 %v2985_v50  ;;  %2312 = vmatpush.bf16.msra.mxu3 %v3241_v16  ;;  %v3044_v58 = vld [vmem:[#allocation4 + $0x210] sm:$0xf]  ;;  %v2825_v50 = vor.u32 %v3340_v37, %v2822_v5  ;;  %v3081_v16 = vor.u32 %v3404_v34, %v3078_v60  ;;  %v3046_v4 = vld [vmem:[#allocation4 + $0x230] sm:$0xf0]  ;;  %v2789_v28 = vor.u32 %v3336_v27, %v2788_v23  ;;  %v2926_v39 = vld [vmem:[#allocation4 + $0x138] sm:$0xf0] }
 0x479   :  { %v3400_v49 = vld [vmem:[#allocation4 + $0x22c] sm:$0xf0]  ;;  %v3049_v55 = vor.u32 %v3396_v12, %v3046_v4  ;;  %v3429_v37 = vld [vmem:[#allocation4 + $0x31c] sm:$0xf]  ;;  %v2892_v23 = vld [vmem:[#allocation4 + $0xd8] sm:$0xf] }
 0x47a   :  { %v3182_v5 = vld [vmem:[#allocation4 + $0x338] sm:$0xf0]  ;;  %v3353_v43 = vld [vmem:[#allocation4 + $0xb4] sm:$0xf0] }
 0x47b   :  { %2271 = vmatpush.bf16.msra.mxu0 %v2949_v24  ;;  %2285 = vmatpush.bf16.msra.mxu1 %v3205_v33  ;;  %v3276_v24 = vld [vmem:[#allocation4 + $0x3d8] sm:$0xf]  ;;  %v3185_v27 = vor.u32 %v3429_v37, %v3182_v5  ;;  %v3421_v22 = vld [vmem:[#allocation4 + $0x2dc] sm:$0xf]  ;;  %v5387_v5 = vld [vmem:[%s5454_s3] sm:$0xff] }
 0x47c   :  { %2299 = vmatpush.bf16.msra.mxu2 %v2953_v17  ;;  %2313 = vmatpush.bf16.msra.mxu3 %v3209_v30  ;;  %v3457_v33 = vld [vmem:[#allocation4 + $0x3f4] sm:$0xf0]  ;;  %v3045_v17 = vor.u32 %v3400_v49, %v3044_v58  ;;  %v3022_v30 = vld [vmem:[#allocation4 + $0x1f8] sm:$0xf0] }
 0x47d   :  { %v3277_v47 = vor.u32 %v3457_v33, %v3276_v24  ;;  %v3025_v20 = vor.u32 %v3389_v26, %v3022_v30  ;;  %v3148_v58 = vld [vmem:[#allocation4 + $0x2d8] sm:$0xf]  ;;  %v3150_v48 = vld [vmem:[#allocation4 + $0x2f8] sm:$0xf0] }
 0x47e   :  { %v3425_v49 = vld [vmem:[#allocation4 + $0x2f4] sm:$0xf0]  ;;  %v3153_v33 = vor.u32 %v3421_v22, %v3150_v48  ;;  %v2862_v30 = vld [vmem:[#allocation4 + $0xb8] sm:$0xf0] }
 0x47f   :  { %2272 = vmatpush.bf16.msra.mxu0 %v2917_v32  ;;  %2286 = vmatpush.bf16.msra.mxu1 %v3173_v40  ;;  %v2988_v32 = vld [vmem:[#allocation4 + $0x198] sm:$0xf]  ;;  %v3149_v4 = vor.u32 %v3425_v49, %v3148_v58  ;;  %v3413_v54 = vld [vmem:[#allocation4 + $0x29c] sm:$0xf] }
 0x480   :  { %2300 = vmatpush.bf16.msra.mxu2 %v2921_v42  ;;  %2314 = vmatpush.bf16.msra.mxu3 %v3177_v36  ;;  %v3385_v40 = vld [vmem:[#allocation4 + $0x1b4] sm:$0xf0]  ;;  %v3118_v25 = vld [vmem:[#allocation4 + $0x2b8] sm:$0xf0] }
 0x481   :  { %2221 = vmatmul.bf16.vlgmr.msrb.gmra.mxu0 %v5364_v62  ;;  %2235 = vmatmul.bf16.vlgmr.msrb.gmra.mxu1 %v5366_v2  ;;  %v3244_v42 = vld [vmem:[#allocation4 + $0x398] sm:$0xf]  ;;  %v2989_v57 = vor.u32 %v3385_v40, %v2988_v32  ;;  %v3121_v40 = vor.u32 %v3413_v54, %v3118_v25  ;;  %v3405_v0 = vld [vmem:[#allocation4 + $0x25c] sm:$0xf] }
 0x482   :  { %2249 = vmatmul.bf16.vlgmr.msrb.gmra.mxu2 %v5364_v62  ;;  %2263 = vmatmul.bf16.vlgmr.msrb.gmra.mxu3 %v5366_v2  ;;  %v3449_v36 = vld [vmem:[#allocation4 + $0x3b4] sm:$0xf0]  ;;  %v3086_v45 = vld [vmem:[#allocation4 + $0x278] sm:$0xf0] }
 0x483   :  { %2273 = vmatpush.bf16.msra.mxu0 %v2885_v8  ;;  %2287 = vmatpush.bf16.msra.mxu1 %v3141_v56  ;;  %v3245_v18 = vor.u32 %v3449_v36, %v3244_v42  ;;  %v2956_v8 = vld [vmem:[#allocation4 + $0x158] sm:$0xf]  ;;  %v3341_v42 = vld [vmem:[#allocation4 + $0x5c] sm:$0xf] }
 0x484   :  { %2301 = vmatpush.bf16.msra.mxu2 %v2889_v15  ;;  %2315 = vmatpush.bf16.msra.mxu3 %v3145_v63  ;;  %v3377_v56 = vld [vmem:[#allocation4 + $0x174] sm:$0xf0]  ;;  %v2830_v36 = vld [vmem:[#allocation4 + $0x78] sm:$0xf0] }
 0x485   :  { %v3212_v15 = vld [vmem:[#allocation4 + $0x358] sm:$0xf]  ;;  %v2957_v51 = vor.u32 %v3377_v56, %v2956_v8  ;;  %v2833_v8 = vor.u32 %v3341_v42, %v2830_v36  ;;  %v3089_v56 = vor.u32 %v3405_v0, %v3086_v45  ;;  %v3397_v6 = vld [vmem:[#allocation4 + $0x21c] sm:$0xf] }
 0x486   :  { %v3441_v63 = vld [vmem:[#allocation4 + $0x374] sm:$0xf0]  ;;  %v3054_v7 = vld [vmem:[#allocation4 + $0x238] sm:$0xf0] }
 0x487   :  { %2274 = vmatpush.bf16.msra.mxu0 %v2853_v38  ;;  %2288 = vmatpush.bf16.msra.mxu1 %v3109_v3  ;;  %v3213_v61 = vor.u32 %v3441_v63, %v3212_v15  ;;  %v2924_v38 = vld [vmem:[#allocation4 + $0x118] sm:$0xf]  ;;  %v3333_v15 = vld [vmem:[#allocation4 + $0x1c] sm:$0xf] }
 0x488   :  { %2302 = vmatpush.bf16.msra.mxu2 %v2857_v52  ;;  %2316 = vmatpush.bf16.msra.mxu3 %v3113_v41  ;;  %v3369_v3 = vld [vmem:[#allocation4 + $0x134] sm:$0xf0]  ;;  %v2798_v63 = vld [vmem:[#allocation4 + $0x38] sm:$0xf0] }
 0x489   :  { %v3180_v52 = vld [vmem:[#allocation4 + $0x318] sm:$0xf]  ;;  %v2925_v34 = vor.u32 %v3369_v3, %v2924_v38 }
 0x48a   :  { %v3433_v41 = vld [vmem:[#allocation4 + $0x334] sm:$0xf0] }
 0x48b   :  { %2275 = vmatpush.bf16.msra.mxu0 %v2821_v19  ;;  %2289 = vmatpush.bf16.msra.mxu1 %v3077_v9  ;;  %v3181_v60 = vor.u32 %v3433_v41, %v3180_v52  ;;  %v3361_v19 = vld [vmem:[#allocation4 + $0xf4] sm:$0xf0]  ;;  %v2929_v9 = vor.u32 %v3365_v13, %v2926_v39 }
 0x48c   :  { %2303 = vmatpush.bf16.msra.mxu2 %v2825_v50  ;;  %2317 = vmatpush.bf16.msra.mxu3 %v3081_v16  ;;  %v3357_v50 = vld [vmem:[#allocation4 + $0xdc] sm:$0xf]  ;;  %v2893_v12 = vor.u32 %v3361_v19, %v2892_v23  ;;  %v3116_v26 = vld [vmem:[#allocation4 + $0x298] sm:$0xf] }
 0x48d   :  { %v2894_v16 = vld [vmem:[#allocation4 + $0xf8] sm:$0xf0] }
 0x48e   :  { %v2897_v24 = vor.u32 %v3357_v50, %v2894_v16  ;;  %v3461_v36 = vld [vmem:[%s5454_s3 + $0x18] sm:$0xff] }
 0x48f   :  { %2276 = vmatpush.bf16.msra.mxu0 %v2789_v28  ;;  %2290 = vmatpush.bf16.msra.mxu1 %v3045_v17  ;;  %v3417_v28 = vld [vmem:[#allocation4 + $0x2b4] sm:$0xf0]  ;;  %v3349_v17 = vld [vmem:[#allocation4 + $0x9c] sm:$0xf] }
 0x490   :  { %2304 = vmatpush.bf16.msra.mxu2 %v2793_v11  ;;  %2318 = vmatpush.bf16.msra.mxu3 %v3049_v55  ;;  %v2861_v11 = vor.u32 %v3353_v43, %v2860_v10  ;;  %v3117_v55 = vor.u32 %v3417_v28, %v3116_v26  ;;  %v2865_v32 = vor.u32 %v3349_v17, %v2862_v30 }
 0x492   :  { %2277 = vmatmul.bf16.vlgmr.msra.gmra.mxu0 %v5364_v62  ;;  %2291 = vmatmul.bf16.vlgmr.msra.gmra.mxu1 %v5366_v2 }
 0x493   :  { %2325 = vmatpush.bf16.msrb.mxu0 %v3021_v44  ;;  %2339 = vmatpush.bf16.msrb.mxu1 %v3277_v47  ;;  %v2828_v44 = vld [vmem:[#allocation4 + $0x58] sm:$0xf] }
 0x494   :  { %2353 = vmatpush.bf16.msrb.mxu2 %v3025_v20  ;;  %2367 = vmatpush.bf16.msrb.mxu3 %v3281_v35  ;;  %v3345_v47 = vld [vmem:[#allocation4 + $0x74] sm:$0xf0] }
 0x495   :  { %2305 = vmatmul.bf16.vlgmr.msra.gmra.mxu2 %v5364_v62  ;;  %2319 = vmatmul.bf16.vlgmr.msra.gmra.mxu3 %v5366_v2  ;;  %v3084_v20 = vld [vmem:[#allocation4 + $0x258] sm:$0xf]  ;;  %v2829_v53 = vor.u32 %v3345_v47, %v2828_v44  ;;  %v3460_v47 = vld [vmem:[%s5454_s3 + $0x10] sm:$0xff] }
 0x496   :  { %v3409_v35 = vld [vmem:[#allocation4 + $0x274] sm:$0xf0] }
 0x497   :  { %2326 = vmatpush.bf16.msrb.mxu0 %v2989_v57  ;;  %2340 = vmatpush.bf16.msrb.mxu1 %v3245_v18  ;;  %v3085_v46 = vor.u32 %v3409_v35, %v3084_v20  ;;  %v2796_v57 = vld [vmem:[#allocation4 + $0x18] sm:$0xf] }
 0x498   :  { %2354 = vmatpush.bf16.msrb.mxu2 %v2993_v14  ;;  %2368 = vmatpush.bf16.msrb.mxu3 %v3249_v29  ;;  %v3337_v18 = vld [vmem:[#allocation4 + $0x34] sm:$0xf0] }
 0x499   :  { %v3052_v14 = vld [vmem:[#allocation4 + $0x218] sm:$0xf]  ;;  %v2797_v21 = vor.u32 %v3337_v18, %v2796_v57 }
 0x49a   :  { %v3401_v29 = vld [vmem:[#allocation4 + $0x234] sm:$0xf0] }
 0x49b   :  { %2327 = vmatpush.bf16.msrb.mxu0 %v2957_v51  ;;  %2341 = vmatpush.bf16.msrb.mxu1 %v3213_v61  ;;  %v3053_v59 = vor.u32 %v3401_v29, %v3052_v14  ;;  %v2801_v51 = vor.u32 %v3333_v15, %v2798_v63  ;;  %v3057_v61 = vor.u32 %v3397_v6, %v3054_v7 }
 0x49c   :  { %2355 = vmatpush.bf16.msrb.mxu2 %v2961_v1  ;;  %2369 = vmatpush.bf16.msrb.mxu3 %v3217_v31 }
 0x49f   :  { %2328 = vmatpush.bf16.msrb.mxu0 %v2925_v34  ;;  %2342 = vmatpush.bf16.msrb.mxu1 %v3181_v60 }
 0x4a0   :  { %2356 = vmatpush.bf16.msrb.mxu2 %v2929_v9  ;;  %2370 = vmatpush.bf16.msrb.mxu3 %v3185_v27 }
 0x4a3   :  { %2329 = vmatpush.bf16.msrb.mxu0 %v2893_v12  ;;  %2343 = vmatpush.bf16.msrb.mxu1 %v3149_v4  ;;  %v5396_v12 = vld [vmem:[%s5454_s3 + $0x8] sm:$0xff]  ;;  %s3543_s3 = smov [#allocation7]  }
 0x4a4   :  { %2357 = vmatpush.bf16.msrb.mxu2 %v2897_v24  ;;  %2371 = vmatpush.bf16.msrb.mxu3 %v3153_v33  ;;  %s2730_s12 = sshll.u32 %s3543_s3, 4  ;;  %s2731_s12 = int_to_ptr.vmem [resolvable:$true] %s2730_s12 }
 0x4a7   :  { %2330 = vmatpush.bf16.msrb.mxu0 %v2861_v11  ;;  %2344 = vmatpush.bf16.msrb.mxu1 %v3117_v55 }
 0x4a8   :  { %2358 = vmatpush.bf16.msrb.mxu2 %v2865_v32  ;;  %2372 = vmatpush.bf16.msrb.mxu3 %v3121_v40 }
 0x4ab   :  { %2331 = vmatpush.bf16.msrb.mxu0 %v2829_v53  ;;  %2345 = vmatpush.bf16.msrb.mxu1 %v3085_v46 }
 0x4ac   :  { %2359 = vmatpush.bf16.msrb.mxu2 %v2833_v8  ;;  %2373 = vmatpush.bf16.msrb.mxu3 %v3089_v56 }
 0x4af   :  { %2332 = vmatpush.bf16.msrb.mxu0 %v2797_v21  ;;  %2346 = vmatpush.bf16.msrb.mxu1 %v3053_v59 }
 0x4b0   :  { %2360 = vmatpush.bf16.msrb.mxu2 %v2801_v51  ;;  %2374 = vmatpush.bf16.msrb.mxu3 %v3057_v61 }
 0x4b2   :  { %2333 = vmatmul.bf16.vlgmr.msrb.gmra.mxu0 %v5364_v62  ;;  %2347 = vmatmul.bf16.vlgmr.msrb.gmra.mxu1 %v5366_v2 }
 0x4b3   :  { %2361 = vmatmul.bf16.vlgmr.msrb.gmra.mxu2 %v5364_v62  ;;  %2375 = vmatmul.bf16.vlgmr.msrb.gmra.mxu3 %v5366_v2 }
 0x4ee   :  { %v2166_v38 = vpop.f32.mrf.mxu0  ;;  %v2180_v3 = vpop.f32.mrf.mxu1 }
 0x4ef   :  { %v2181_v13 = vadd.f32 %v2180_v3, %v2166_v38 }
 0x4f5   :  { %v2194_v1 = vpop.f32.mrf.mxu2  ;;  %v2208_v31 = vpop.f32.mrf.mxu3 }
 0x4f6   :  { %v2168_v52 = vpop.f32.mrf.mxu0  ;;  %v2182_v41 = vpop.f32.mrf.mxu1  ;;  %v2209_v62 = vadd.f32 %v2208_v31, %v2194_v1 }
 0x4f7   :  { %v2183_v39 = vadd.f32 %v2182_v41, %v2168_v52 }
 0x4f9   :  { %v2389_v37 = vpack.c.bf16 %v2183_v39, %v2181_v13 }
 0x4fb   :  { %2437 = vmatpush.bf16.msra.mxu0 %v2389_v37 }
 0x4fd   :  { %v2196_v34 = vpop.f32.mrf.mxu2  ;;  %v2210_v60 = vpop.f32.mrf.mxu3 }
 0x4fe   :  { %v2211_v2 = vadd.f32 %v2210_v60, %v2196_v34  ;;  %v2222_v23 = vpop.f32.mrf.mxu0  ;;  %v2236_v19 = vpop.f32.mrf.mxu1  ;;  %3298 = vmatmul.msk.bf16.vlgmr.msra.gmra.mxu0 %vm2417_vm10, %v5387_v5 }
 0x4ff   :  { %v2237_v16 = vadd.f32 %v2236_v19, %v2222_v23 }
 0x500   :  { %v2390_v9 = vpack.c.bf16 %v2211_v2, %v2209_v62 }
 0x502   :  { %2466 = vmatpush.bf16.msra.mxu1 %v2390_v9 }
 0x505   :  { %v2250_v27 = vpop.f32.mrf.mxu2  ;;  %v2264_v58 = vpop.f32.mrf.mxu3  ;;  %3302 = vmatmul.msk.bf16.vlgmr.msra.gmra.mxu1 %vm2417_vm10, %v5387_v5 }
 0x506   :  { %v2224_v49 = vpop.f32.mrf.mxu0  ;;  %v2238_v50 = vpop.f32.mrf.mxu1  ;;  %v2265_v43 = vadd.f32 %v2264_v58, %v2250_v27 }
 0x507   :  { %v2239_v22 = vadd.f32 %v2238_v50, %v2224_v49 }
 0x509   :  { %v2391_v48 = vpack.c.bf16 %v2239_v22, %v2237_v16 }
 0x50b   :  { %2495 = vmatpush.bf16.msra.mxu2 %v2391_v48 }
 0x50d   :  { %v2252_v4 = vpop.f32.mrf.mxu2  ;;  %v2266_v10 = vpop.f32.mrf.mxu3 }
 0x50e   :  { %v2267_v24 = vadd.f32 %v2266_v10, %v2252_v4  ;;  %3306 = vmatmul.msk.bf16.vlgmr.msra.gmra.mxu2 %vm2417_vm10, %v5387_v5  ;;  %3299 = vmatmul.msk.bf16.gmra.mxu0 %vm2417_vm10, %v5396_v12 }
 0x50f   :  { %v2278_v26 = vpop.f32.mrf.mxu0  ;;  %v2292_v28 = vpop.f32.mrf.mxu1 }
 0x510   :  { %v2392_v33 = vpack.c.bf16 %v2267_v24, %v2265_v43  ;;  %v2293_v11 = vadd.f32 %v2292_v28, %v2278_v26 }
 0x512   :  { %2524 = vmatpush.bf16.msra.mxu3 %v2392_v33 }
 0x515   :  { %3310 = vmatmul.msk.bf16.vlgmr.msra.gmra.mxu3 %vm2417_vm10, %v5387_v5  ;;  %3303 = vmatmul.msk.bf16.gmra.mxu1 %vm2417_vm10, %v5396_v12 }
 0x517   :  { %v2280_v54 = vpop.f32.mrf.mxu0  ;;  %v2294_v25 = vpop.f32.mrf.mxu1 }
 0x518   :  { %v2306_v17 = vpop.f32.mrf.mxu2  ;;  %v2320_v30 = vpop.f32.mrf.mxu3  ;;  %v2295_v55 = vadd.f32 %v2294_v25, %v2280_v54 }
 0x519   :  { %v2321_v20 = vadd.f32 %v2320_v30, %v2306_v17 }
 0x51a   :  { %v2393_v44 = vpack.c.bf16 %v2295_v55, %v2293_v11 }
 0x51c   :  { %2553 = vmatpush.bf16.msrb.mxu0 %v2393_v44 }
 0x51e   :  { %3307 = vmatmul.msk.bf16.gmra.mxu2 %vm2417_vm10, %v5396_v12  ;;  %3300 = vmatmul.msk.bf16.gmra.mxu0 %vm2417_vm10, %v3460_v47 }
 0x520   :  { %v2308_v32 = vpop.f32.mrf.mxu2  ;;  %v2322_v40 = vpop.f32.mrf.mxu3 }
 0x521   :  { %v2323_v35 = vadd.f32 %v2322_v40, %v2308_v32 }
 0x523   :  { %v2394_v42 = vpack.c.bf16 %v2323_v35, %v2321_v20 }
 0x525   :  { %2582 = vmatpush.bf16.msrb.mxu1 %v2394_v42  ;;  %3311 = vmatmul.msk.bf16.gmra.mxu3 %vm2417_vm10, %v5396_v12 }
 0x526   :  { %3304 = vmatmul.msk.bf16.gmra.mxu1 %vm2417_vm10, %v3460_v47 }
 0x52e   :  { %3308 = vmatmul.msk.bf16.gmra.mxu2 %vm2417_vm10, %v3460_v47  ;;  %3301 = vmatmul.msk.bf16.gmra.mxu0 %vm2417_vm10, %v3461_v36 }
 0x52f   :  { %v2334_v0 = vpop.f32.mrf.mxu0  ;;  %v2348_v45 = vpop.f32.mrf.mxu1 }
 0x530   :  { %v2349_v8 = vadd.f32 %v2348_v45, %v2334_v0 }
 0x535   :  { %3312 = vmatmul.msk.bf16.gmra.mxu3 %vm2417_vm10, %v3460_v47 }
 0x536   :  { %v2362_v53 = vpop.f32.mrf.mxu2  ;;  %v2376_v46 = vpop.f32.mrf.mxu3  ;;  %3305 = vmatmul.msk.bf16.gmra.mxu1 %vm2417_vm10, %v3461_v36 }
 0x537   :  { %v2336_v57 = vpop.f32.mrf.mxu0  ;;  %v2350_v18 = vpop.f32.mrf.mxu1  ;;  %v2377_v63 = vadd.f32 %v2376_v46, %v2362_v53 }
 0x538   :  { %v2351_v56 = vadd.f32 %v2350_v18, %v2336_v57 }
 0x53a   :  { %v2395_v14 = vpack.c.bf16 %v2351_v56, %v2349_v8 }
 0x53c   :  { %2611 = vmatpush.bf16.msrb.mxu2 %v2395_v14 }
 0x53e   :  { %v2364_v29 = vpop.f32.mrf.mxu2  ;;  %v2378_v15 = vpop.f32.mrf.mxu3  ;;  %3309 = vmatmul.msk.bf16.gmra.mxu2 %vm2417_vm10, %v3461_v36  ;;  %3314 = vmatmul.msk.bf16.vlgmr.msrb.gmra.mxu0 %vm2417_vm10, %v5387_v5 }
 0x53f   :  { %v2379_v6 = vadd.f32 %v2378_v15, %v2364_v29 }
 0x541   :  { %v2396_v7 = vpack.c.bf16 %v2379_v6, %v2377_v63 }
 0x543   :  { %2640 = vmatpush.bf16.msrb.mxu3 %v2396_v7 }
 0x545   :  { %3313 = vmatmul.msk.bf16.gmra.mxu3 %vm2417_vm10, %v3461_v36 }
 0x546   :  { %3318 = vmatmul.msk.bf16.vlgmr.msrb.gmra.mxu1 %vm2417_vm10, %v5387_v5 }
 0x54e   :  { %3322 = vmatmul.msk.bf16.vlgmr.msrb.gmra.mxu2 %vm2417_vm10, %v5387_v5  ;;  %3315 = vmatmul.msk.bf16.gmra.mxu0 %vm2417_vm10, %v5396_v12 }
 0x555   :  { %3326 = vmatmul.msk.bf16.vlgmr.msrb.gmra.mxu3 %vm2417_vm10, %v5387_v5 }
 0x556   :  { %3319 = vmatmul.msk.bf16.gmra.mxu1 %vm2417_vm10, %v5396_v12 }
 0x55e   :  { %3323 = vmatmul.msk.bf16.gmra.mxu2 %vm2417_vm10, %v5396_v12  ;;  %3316 = vmatmul.msk.bf16.gmra.mxu0 %vm2417_vm10, %v3460_v47 }
 0x565   :  { %3327 = vmatmul.msk.bf16.gmra.mxu3 %vm2417_vm10, %v5396_v12 }
 0x566   :  { %3320 = vmatmul.msk.bf16.gmra.mxu1 %vm2417_vm10, %v3460_v47 }
 0x56e   :  { %3324 = vmatmul.msk.bf16.gmra.mxu2 %vm2417_vm10, %v3460_v47  ;;  %3317 = vmatmul.msk.bf16.gmra.mxu0 %vm2417_vm10, %v3461_v36 }
 0x575   :  { %3328 = vmatmul.msk.bf16.gmra.mxu3 %vm2417_vm10, %v3460_v47 }
 0x576   :  { %3321 = vmatmul.msk.bf16.gmra.mxu1 %vm2417_vm10, %v3461_v36 }
 0x57b   :  { %v2439_v21 = vpop.f32.mrf.mxu0 }
 0x57c   :  { %2662 = vst [vmem:[#allocation7] sm:$0xff] %v2439_v21 }
 0x57e   :  { %3325 = vmatmul.msk.bf16.gmra.mxu2 %vm2417_vm10, %v3461_v36 }
 0x582   :  { %v2468_v59 = vpop.f32.mrf.mxu1 }
 0x583   :  { %2663 = vst [vmem:[#allocation7 + $0x8] sm:$0xff] %v2468_v59  ;;  %v2441_v51 = vpop.f32.mrf.mxu0 }
 0x584   :  { %2670 = vst [vmem:[#allocation7 + $0x40] sm:$0xff] %v2441_v51 }
 0x585   :  { %3329 = vmatmul.msk.bf16.gmra.mxu3 %vm2417_vm10, %v3461_v36 }
 0x58a   :  { %v2470_v61 = vpop.f32.mrf.mxu1 }
 0x58b   :  { %2671 = vst [vmem:[#allocation7 + $0x48] sm:$0xff] %v2470_v61  ;;  %v2444_v38 = vpop.f32.mrf.mxu0 }
 0x58c   :  { %2678 = vst [vmem:[#allocation7 + $0x80] sm:$0xff] %v2444_v38 }
 0x591   :  { %v2497_v3 = vpop.f32.mrf.mxu2 }
 0x592   :  { %2664 = vst [vmem:[#allocation7 + $0x10] sm:$0xff] %v2497_v3  ;;  %v2473_v1 = vpop.f32.mrf.mxu1 }
 0x593   :  { %2679 = vst [vmem:[#allocation7 + $0x88] sm:$0xff] %v2473_v1  ;;  %v2446_v31 = vpop.f32.mrf.mxu0 }
 0x594   :  { %2686 = vst [vmem:[#allocation7 + $0xc0] sm:$0xff] %v2446_v31 }
 0x598   :  { %v2526_v52 = vpop.f32.mrf.mxu3 }
 0x599   :  { %2665 = vst [vmem:[#allocation7 + $0x18] sm:$0xff] %v2526_v52  ;;  %v2499_v41 = vpop.f32.mrf.mxu2 }
 0x59a   :  { %2672 = vst [vmem:[#allocation7 + $0x50] sm:$0xff] %v2499_v41  ;;  %v2475_v13 = vpop.f32.mrf.mxu1 }
 0x59b   :  { %2687 = vst [vmem:[#allocation7 + $0xc8] sm:$0xff] %v2475_v13  ;;  %v2449_v39 = vpop.f32.mrf.mxu0 }
 0x59c   :  { %2694 = vst [vmem:[#allocation7 + $0x100] sm:$0xff] %v2449_v39 }
 0x5a0   :  { %v2528_v37 = vpop.f32.mrf.mxu3 }
 0x5a1   :  { %2673 = vst [vmem:[#allocation7 + $0x58] sm:$0xff] %v2528_v37  ;;  %v2502_v5 = vpop.f32.mrf.mxu2 }
 0x5a2   :  { %2680 = vst [vmem:[#allocation7 + $0x90] sm:$0xff] %v2502_v5 }
 0x5a3   :  { %v2478_v34 = vpop.f32.mrf.mxu1  ;;  %v2451_v60 = vpop.f32.mrf.mxu0 }
 0x5a4   :  { %2695 = vst [vmem:[#allocation7 + $0x108] sm:$0xff] %v2478_v34 }
 0x5a5   :  { %2702 = vst [vmem:[#allocation7 + $0x140] sm:$0xff] %v2451_v60 }
 0x5a8   :  { %v2531_v62 = vpop.f32.mrf.mxu3 }
 0x5a9   :  { %2681 = vst [vmem:[#allocation7 + $0x98] sm:$0xff] %v2531_v62  ;;  %v2504_v2 = vpop.f32.mrf.mxu2 }
 0x5aa   :  { %2688 = vst [vmem:[#allocation7 + $0xd0] sm:$0xff] %v2504_v2 }
 0x5ab   :  { %v2480_v23 = vpop.f32.mrf.mxu1  ;;  %v2454_v19 = vpop.f32.mrf.mxu0 }
 0x5ac   :  { %2703 = vst [vmem:[#allocation7 + $0x148] sm:$0xff] %v2480_v23 }
 0x5ad   :  { %2710 = vst [vmem:[#allocation7 + $0x180] sm:$0xff] %v2454_v19 }
 0x5b0   :  { %v2533_v9 = vpop.f32.mrf.mxu3 }
 0x5b1   :  { %2689 = vst [vmem:[#allocation7 + $0xd8] sm:$0xff] %v2533_v9  ;;  %v2507_v27 = vpop.f32.mrf.mxu2 }
 0x5b2   :  { %2696 = vst [vmem:[#allocation7 + $0x110] sm:$0xff] %v2507_v27 }
 0x5b3   :  { %v2483_v58 = vpop.f32.mrf.mxu1  ;;  %v2456_v49 = vpop.f32.mrf.mxu0 }
 0x5b4   :  { %2711 = vst [vmem:[#allocation7 + $0x188] sm:$0xff] %v2483_v58 }
 0x5b5   :  { %2718 = vst [vmem:[#allocation7 + $0x1c0] sm:$0xff] %v2456_v49 }
 0x5b8   :  { %v2536_v50 = vpop.f32.mrf.mxu3 }
 0x5b9   :  { %2697 = vst [vmem:[#allocation7 + $0x118] sm:$0xff] %v2536_v50  ;;  %v2509_v16 = vpop.f32.mrf.mxu2 }
 0x5ba   :  { %2704 = vst [vmem:[#allocation7 + $0x150] sm:$0xff] %v2509_v16 }
 0x5bb   :  { %v2485_v22 = vpop.f32.mrf.mxu1  ;;  %v2555_v48 = vpop.f32.mrf.mxu0 }
 0x5bc   :  { %2719 = vst [vmem:[#allocation7 + $0x1c8] sm:$0xff] %v2485_v22 }
 0x5bd   :  { %2666 = vst [vmem:[#allocation7 + $0x20] sm:$0xff] %v2555_v48 }
 0x5c0   :  { %v2538_v12 = vpop.f32.mrf.mxu3 }
 0x5c1   :  { %2705 = vst [vmem:[#allocation7 + $0x158] sm:$0xff] %v2538_v12  ;;  %v2512_v4 = vpop.f32.mrf.mxu2 }
 0x5c2   :  { %2712 = vst [vmem:[#allocation7 + $0x190] sm:$0xff] %v2512_v4 }
 0x5c3   :  { %v2584_v10 = vpop.f32.mrf.mxu1  ;;  %v2557_v43 = vpop.f32.mrf.mxu0 }
 0x5c4   :  { %2667 = vst [vmem:[#allocation7 + $0x28] sm:$0xff] %v2584_v10 }
 0x5c5   :  { %2674 = vst [vmem:[#allocation7 + $0x60] sm:$0xff] %v2557_v43 }
 0x5c8   :  { %v2541_v24 = vpop.f32.mrf.mxu3 }
 0x5c9   :  { %2713 = vst [vmem:[#allocation7 + $0x198] sm:$0xff] %v2541_v24  ;;  %v2514_v33 = vpop.f32.mrf.mxu2 }
 0x5ca   :  { %2720 = vst [vmem:[#allocation7 + $0x1d0] sm:$0xff] %v2514_v33 }
 0x5cb   :  { %v2586_v26 = vpop.f32.mrf.mxu1  ;;  %v2560_v28 = vpop.f32.mrf.mxu0 }
 0x5cc   :  { %2675 = vst [vmem:[#allocation7 + $0x68] sm:$0xff] %v2586_v26 }
 0x5cd   :  { %2682 = vst [vmem:[#allocation7 + $0xa0] sm:$0xff] %v2560_v28 }
 0x5d0   :  { %v2543_v17 = vpop.f32.mrf.mxu3 }
 0x5d1   :  { %2721 = vst [vmem:[#allocation7 + $0x1d8] sm:$0xff] %v2543_v17  ;;  %v2613_v30 = vpop.f32.mrf.mxu2 }
 0x5d2   :  { %2668 = vst [vmem:[#allocation7 + $0x30] sm:$0xff] %v2613_v30 }
 0x5d3   :  { %v2589_v54 = vpop.f32.mrf.mxu1  ;;  %v2562_v25 = vpop.f32.mrf.mxu0 }
 0x5d4   :  { %2683 = vst [vmem:[#allocation7 + $0xa8] sm:$0xff] %v2589_v54 }
 0x5d5   :  { %2690 = vst [vmem:[#allocation7 + $0xe0] sm:$0xff] %v2562_v25 }
 0x5d8   :  { %v2642_v11 = vpop.f32.mrf.mxu3 }
 0x5d9   :  { %2669 = vst [vmem:[#allocation7 + $0x38] sm:$0xff] %v2642_v11  ;;  %v2615_v55 = vpop.f32.mrf.mxu2 }
 0x5da   :  { %2676 = vst [vmem:[#allocation7 + $0x70] sm:$0xff] %v2615_v55 }
 0x5db   :  { %v2591_v44 = vpop.f32.mrf.mxu1  ;;  %v2565_v47 = vpop.f32.mrf.mxu0 }
 0x5dc   :  { %2691 = vst [vmem:[#allocation7 + $0xe8] sm:$0xff] %v2591_v44 }
 0x5dd   :  { %2698 = vst [vmem:[#allocation7 + $0x120] sm:$0xff] %v2565_v47 }
 0x5e0   :  { %v2644_v32 = vpop.f32.mrf.mxu3 }
 0x5e1   :  { %2677 = vst [vmem:[#allocation7 + $0x78] sm:$0xff] %v2644_v32  ;;  %v2618_v40 = vpop.f32.mrf.mxu2 }
 0x5e2   :  { %2684 = vst [vmem:[#allocation7 + $0xb0] sm:$0xff] %v2618_v40 }
 0x5e3   :  { %v2594_v20 = vpop.f32.mrf.mxu1  ;;  %v2567_v35 = vpop.f32.mrf.mxu0 }
 0x5e4   :  { %2699 = vst [vmem:[#allocation7 + $0x128] sm:$0xff] %v2594_v20 }
 0x5e5   :  { %2706 = vst [vmem:[#allocation7 + $0x160] sm:$0xff] %v2567_v35 }
 0x5e8   :  { %v2647_v42 = vpop.f32.mrf.mxu3 }
 0x5e9   :  { %2685 = vst [vmem:[#allocation7 + $0xb8] sm:$0xff] %v2647_v42  ;;  %v2620_v36 = vpop.f32.mrf.mxu2 }
 0x5ea   :  { %2692 = vst [vmem:[#allocation7 + $0xf0] sm:$0xff] %v2620_v36 }
 0x5eb   :  { %v2596_v0 = vpop.f32.mrf.mxu1  ;;  %v2570_v45 = vpop.f32.mrf.mxu0 }
 0x5ec   :  { %2707 = vst [vmem:[#allocation7 + $0x168] sm:$0xff] %v2596_v0 }
 0x5ed   :  { %2714 = vst [vmem:[#allocation7 + $0x1a0] sm:$0xff] %v2570_v45 }
 0x5f0   :  { %v2649_v53 = vpop.f32.mrf.mxu3 }
 0x5f1   :  { %2693 = vst [vmem:[#allocation7 + $0xf8] sm:$0xff] %v2649_v53  ;;  %v2623_v46 = vpop.f32.mrf.mxu2 }
 0x5f2   :  { %2700 = vst [vmem:[#allocation7 + $0x130] sm:$0xff] %v2623_v46 }
 0x5f3   :  { %v2599_v57 = vpop.f32.mrf.mxu1  ;;  %v2572_v18 = vpop.f32.mrf.mxu0 }
 0x5f4   :  { %2715 = vst [vmem:[#allocation7 + $0x1a8] sm:$0xff] %v2599_v57 }
 0x5f5   :  { %2722 = vst [vmem:[#allocation7 + $0x1e0] sm:$0xff] %v2572_v18 }
 0x5f8   :  { %v2652_v8 = vpop.f32.mrf.mxu3 }
 0x5f9   :  { %2701 = vst [vmem:[#allocation7 + $0x138] sm:$0xff] %v2652_v8  ;;  %v2625_v56 = vpop.f32.mrf.mxu2 }
 0x5fa   :  { %2708 = vst [vmem:[#allocation7 + $0x170] sm:$0xff] %v2625_v56 }
 0x5fb   :  { %v2601_v14 = vpop.f32.mrf.mxu1 }
 0x5fc   :  { %2723 = vst [vmem:[#allocation7 + $0x1e8] sm:$0xff] %v2601_v14 }
 0x600   :  { %v2654_v29 = vpop.f32.mrf.mxu3 }
 0x601   :  { %2709 = vst [vmem:[#allocation7 + $0x178] sm:$0xff] %v2654_v29  ;;  %v2628_v15 = vpop.f32.mrf.mxu2 }
 0x602   :  { %2716 = vst [vmem:[#allocation7 + $0x1b0] sm:$0xff] %v2628_v15 }
 0x608   :  { %v2657_v63 = vpop.f32.mrf.mxu3 }
 0x609   :  { %2717 = vst [vmem:[#allocation7 + $0x1b8] sm:$0xff] %v2657_v63  ;;  %v2630_v6 = vpop.f32.mrf.mxu2 }
 0x60a   :  { %2724 = vst [vmem:[#allocation7 + $0x1f0] sm:$0xff] %v2630_v6 }
 0x610   :  { %v2659_v7 = vpop.f32.mrf.mxu3 }
 0x611   :  { %2725 = vst [vmem:[#allocation7 + $0x1f8] sm:$0xff] %v2659_v7 }
 0x612   :  { %2738 = dma.vmem_to_hbm [thread:$0]  %s2731_s12, 8192, %s2733_s15, [#allocation6], %s3544_s16, %s3544_s16, %s3545_s17  }
 0x613   :  { %3535 = dma.done.wait [#allocation6], 8192  }
 0x614   :  { %3536 = vsyncadd [#allocation6], 4294959104 }
 0x615   :  { %2743 = vsyncpa [#allocation5], 1 }
 0x616   :  { %2744 = vsyncpa [#allocation6], 1 }

</bundles_post_ra>
